<compile_context>
chip_gen: v7x
topology: tpu7x:2x2x1
jax: 0.10.0
libtpu: 0.0.40
codegen_flags: <defaults>
</compile_context>

<pallas_src>
import functools
import math

import jax
import jax.numpy as jnp
from jax import lax
from jax.experimental import pallas as pl
from jax.experimental.pallas import tpu as pltpu

CENT_OFFSET = 2051.1487628680297
GN_EPS = 1e-5
_INV_LOG2 = 1.0 / math.log(2.0)


def _sigmoid(x):
    return 1.0 / (1.0 + jnp.exp(-x))


# ----------------------------------------------------------------------------
# Fused conv stack kernel: [f0_to_coarse] + conv0(K=11)+GN+ReLU + 4 ResBlocks.
# Grid over batch; all intermediate activations stay in VMEM.
# ----------------------------------------------------------------------------
def _conv_stack_kernel(in_ref, w0_ref, resw_ref, b_ref, g_ref, bt_ref,
                       indcg_ref, indgc_ref, *rest,
                       K0, T, Cin0, D, G, with_f0):
    if with_f0:
        coarse_ref, out_ref, pad0_sc, pad_sc = rest
    else:
        out_ref, pad0_sc, pad_sc = rest

    indcg = indcg_ref[...]                      # (D, G) group indicator
    indgc = indgc_ref[...]                      # (G, D)
    n_gn = float(T * (D // G))                  # elements per (batch, group)

    def group_norm(y, row):
        # centered two-pass stats via indicator matmuls (no lane-split reshape)
        gamma = g_ref[row:row + 1, :]
        beta = bt_ref[row:row + 1, :]
        colsum = jnp.sum(y, axis=0, keepdims=True)                         # (1, D)
        mean_c = jnp.dot(
            jnp.dot(colsum, indcg, preferred_element_type=jnp.float32) / n_gn,
            indgc, preferred_element_type=jnp.float32)                     # (1, D)
        d = y - mean_c
        ssq = jnp.sum(d * d, axis=0, keepdims=True)                        # (1, D)
        var_c = jnp.dot(
            jnp.dot(ssq, indcg, preferred_element_type=jnp.float32) / n_gn,
            indgc, preferred_element_type=jnp.float32)                     # (1, D)
        return d * lax.rsqrt(var_c + GN_EPS) * gamma + beta

    # ---- input (optionally fused f0_to_coarse, matching the PyTorch scatter) --
    if with_f0:
        f0 = in_ref[0]                                          # (T, 1)
        cent = 1200.0 * _INV_LOG2 * jnp.log(f0 / 10.0)
        idxf = jnp.floor((cent - CENT_OFFSET) / 100.0)
        idx = idxf.astype(jnp.int32)
        weight = 1.0 - (cent - CENT_OFFSET - idxf * 100.0) / 100.0
        idx2 = jnp.minimum(idx + 1, 71)                         # clamp(max=71)
        ch = lax.broadcasted_iota(jnp.int32, (T, Cin0), 1)
        # second scatter (idx+1) overwrites the first when idx == idx2, same as torch
        x0 = jnp.where(ch == idx2, 1.0 - weight,
                       jnp.where(ch == idx, weight, 0.0)).astype(jnp.float32)
        coarse_ref[0] = x0
    else:
        x0 = in_ref[0]                                          # (T, Cin0)

    # zero the halo rows of the padded VMEM buffers once
    pad0_sc[...] = jnp.zeros_like(pad0_sc)
    pad_sc[...] = jnp.zeros_like(pad_sc)

    # ---- conv0: K0 taps as one im2col matmul (T, K0*Cin0) @ (K0*Cin0, D) -------
    p0 = (K0 - 1) // 2
    pad0_sc[p0:p0 + T, :] = x0
    im0 = jnp.concatenate([pad0_sc[k:k + T, :] for k in range(K0)], axis=-1)
    y = jnp.dot(im0, w0_ref[...], preferred_element_type=jnp.float32) \
        + b_ref[0:1, :]
    h = jnp.maximum(group_norm(y, 0), 0.0)

    # ---- 4 ResBlocks (K=5), identity shortcut --------------------------------
    def conv5(xin, row):
        pad_sc[2:2 + T, :] = xin
        im = jnp.concatenate([pad_sc[k:k + T, :] for k in range(5)], axis=-1)
        w = resw_ref[row - 1]                                   # (5*D, D)
        return jnp.dot(im, w, preferred_element_type=jnp.float32) \
            + b_ref[row:row + 1, :]

    for r in range(4):
        ra, rb = 1 + 2 * r, 2 + 2 * r
        a = jnp.maximum(group_norm(conv5(h, ra), ra), 0.0)
        left = group_norm(conv5(a, rb), rb)
        h = jnp.maximum(left + h, 0.0)

    out_ref[0] = h


def pack_stack_params(p, cin0, D, G):
    """Pack per-layer params into a few dense arrays + GN indicator matrices."""
    names = ['conv0'] + [f'res{i}_{s}' for i in range(1, 5) for s in ('a', 'b')]
    w0 = p['conv0']['w'].reshape(11 * cin0, D)                  # im2col weight
    resw = jnp.stack([p[n]['w'].reshape(5 * D, D) for n in names[1:]], axis=0)
    bias = jnp.stack([p[n]['b'] for n in names], axis=0)        # (9, D)
    gamma = jnp.stack([p[n]['gamma'] for n in names], axis=0)
    beta = jnp.stack([p[n]['beta'] for n in names], axis=0)
    ch = jnp.arange(D, dtype=jnp.int32)
    grp = jnp.arange(G, dtype=jnp.int32)
    indcg = (ch[:, None] // (D // G) == grp[None, :]).astype(jnp.float32)
    return dict(w0=w0, resw=resw, bias=bias, gamma=gamma, beta=beta,
                indcg=indcg, indgc=jnp.transpose(indcg))


def conv_stack(x, packed, *, T, B, cin0, D, G, with_f0):
    """x: (B,T,1) f0 if with_f0 else (B,T,cin0).  Returns (coarse,) act (B,T,D)."""
    K0 = 11
    cin_in = 1 if with_f0 else cin0
    kern = functools.partial(_conv_stack_kernel, K0=K0, T=T, Cin0=cin0, D=D, G=G,
                             with_f0=with_f0)
    in_specs = [
        pl.BlockSpec((1, T, cin_in), lambda b: (b, 0, 0)),
        pl.BlockSpec((K0 * cin0, D), lambda b: (0, 0)),
        pl.BlockSpec((8, 5 * D, D), lambda b: (0, 0, 0)),
        pl.BlockSpec((9, D), lambda b: (0, 0)),
        pl.BlockSpec((9, D), lambda b: (0, 0)),
        pl.BlockSpec((9, D), lambda b: (0, 0)),
        pl.BlockSpec((D, G), lambda b: (0, 0)),
        pl.BlockSpec((G, D), lambda b: (0, 0)),
    ]
    args = [x, packed['w0'], packed['resw'], packed['bias'],
            packed['gamma'], packed['beta'], packed['indcg'], packed['indgc']]
    if with_f0:
        out_shape = (jax.ShapeDtypeStruct((B, T, cin0), jnp.float32),
                     jax.ShapeDtypeStruct((B, T, D), jnp.float32))
        out_specs = (pl.BlockSpec((1, T, cin0), lambda b: (b, 0, 0)),
                     pl.BlockSpec((1, T, D), lambda b: (b, 0, 0)))
    else:
        out_shape = jax.ShapeDtypeStruct((B, T, D), jnp.float32)
        out_specs = pl.BlockSpec((1, T, D), lambda b: (b, 0, 0))
    return pl.pallas_call(
        kern,
        out_shape=out_shape,
        grid=(B,),
        in_specs=in_specs,
        out_specs=out_specs,
        scratch_shapes=[pltpu.VMEM((T + K0 - 1, cin0), jnp.float32),   # conv0 halo
                        pltpu.VMEM((T + 4, D), jnp.float32)],          # K=5 halo
        compiler_params=pltpu.CompilerParams(dimension_semantics=("parallel",)),
    )(*args)


# ----------------------------------------------------------------------------
# Fused bidirectional LSTM kernel (+ optional Linear->sigmoid->clamp projection).
# Batch folded into matmul rows; h/c carried in registers; both directions
# interleaved in one time loop; one output store after the loop.
# ----------------------------------------------------------------------------
def _bilstm_kernel(x_ref, wihf_ref, whhf_ref, bf_ref,
                   wihb_ref, whhb_ref, bb_ref, *rest, T, B, H, project):
    if project:
        pw_ref, pb_ref, out_ref, xpf_sc, xpb_sc, h_sc = rest
    else:
        out_ref, xpf_sc, xpb_sc, h_sc = rest

    Din = x_ref.shape[2]
    x2 = x_ref[...].reshape(T * B, Din)                          # rows = (t, b)
    # input projections for the whole sequence: two big MXU matmuls
    xpf_sc[...] = jnp.dot(x2, wihf_ref[...],
                          preferred_element_type=jnp.float32) + bf_ref[...]
    xpb_sc[...] = jnp.dot(x2, wihb_ref[...],
                          preferred_element_type=jnp.float32) + bb_ref[...]

    whhf = whhf_ref[...]
    whhb = whhb_ref[...]

    def cell(gates, c):
        i = _sigmoid(gates[:, 0 * H:1 * H])
        f = _sigmoid(gates[:, 1 * H:2 * H])
        g = jnp.tanh(gates[:, 2 * H:3 * H])
        o = _sigmoid(gates[:, 3 * H:4 * H])
        c_new = f * c + i * g
        return o * jnp.tanh(c_new), c_new

    def step(t, carry):
        hf, cf, hb, cb = carry
        tb = T - 1 - t
        gf = xpf_sc[pl.ds(t * B, B), :] + jnp.dot(
            hf, whhf, preferred_element_type=jnp.float32)        # (B, 4H)
        gb = xpb_sc[pl.ds(tb * B, B), :] + jnp.dot(
            hb, whhb, preferred_element_type=jnp.float32)
        hf, cf = cell(gf, cf)
        hb, cb = cell(gb, cb)
        h_sc[pl.ds(t * B, B), 0:H] = hf
        h_sc[pl.ds(tb * B, B), H:2 * H] = hb
        return hf, cf, hb, cb

    z = jnp.zeros((B, H), jnp.float32)
    lax.fori_loop(0, T, step, (z, z, z, z), unroll=(T <= 32))

    hcat = h_sc[...]                                             # (T*B, 2H)
    if project:
        y = jnp.dot(hcat, pw_ref[...],
                    preferred_element_type=jnp.float32) + pb_ref[...]
        y = jnp.clip(_sigmoid(y), 1e-10, 1.0 - 1e-10)
        out_ref[...] = y.reshape(T, B, y.shape[1])
    else:
        out_ref[...] = hcat.reshape(T, B, 2 * H)


def bilstm_fused(x_tbd, params_fwd, params_bwd, proj=None):
    """x_tbd: (T, B, Din).  Returns (T, B, 2H) or (T, B, Cout) if proj given."""
    T, B, Din = x_tbd.shape
    w_ih_f, w_hh_f, b_ih_f, b_hh_f = params_fwd
    w_ih_b, w_hh_b, b_ih_b, b_hh_b = params_bwd
    H = w_hh_f.shape[1]
    wihf, whhf = jnp.transpose(w_ih_f), jnp.transpose(w_hh_f)    # (Din,4H),(H,4H)
    wihb, whhb = jnp.transpose(w_ih_b), jnp.transpose(w_hh_b)
    bf = (b_ih_f + b_hh_f).reshape(1, 4 * H)
    bb = (b_ih_b + b_hh_b).reshape(1, 4 * H)

    project = proj is not None
    args = [x_tbd, wihf, whhf, bf, wihb, whhb, bb]
    in_specs = [
        pl.BlockSpec((T, B, Din), lambda i: (0, 0, 0)),
        pl.BlockSpec((Din, 4 * H), lambda i: (0, 0)),
        pl.BlockSpec((H, 4 * H), lambda i: (0, 0)),
        pl.BlockSpec((1, 4 * H), lambda i: (0, 0)),
        pl.BlockSpec((Din, 4 * H), lambda i: (0, 0)),
        pl.BlockSpec((H, 4 * H), lambda i: (0, 0)),
        pl.BlockSpec((1, 4 * H), lambda i: (0, 0)),
    ]
    if project:
        pw, pb = proj                                            # (2H, Cout),(Cout,)
        Cout = pw.shape[1]
        args += [pw, pb.reshape(1, Cout)]
        in_specs += [pl.BlockSpec((2 * H, Cout), lambda i: (0, 0)),
                     pl.BlockSpec((1, Cout), lambda i: (0, 0))]
    else:
        Cout = 2 * H

    return pl.pallas_call(
        functools.partial(_bilstm_kernel, T=T, B=B, H=H, project=project),
        out_shape=jax.ShapeDtypeStruct((T, B, Cout), jnp.float32),
        grid=(1,),
        in_specs=in_specs,
        out_specs=pl.BlockSpec((T, B, Cout), lambda i: (0, 0, 0)),
        scratch_shapes=[pltpu.VMEM((T * B, 4 * H), jnp.float32),
                        pltpu.VMEM((T * B, 4 * H), jnp.float32),
                        pltpu.VMEM((T * B, 2 * H), jnp.float32)],
        compiler_params=pltpu.CompilerParams(dimension_semantics=("arbitrary",)),
    )(*args)


# ----------------------------------------------------------------------------
# Model assembly (glue in plain JAX: code slicing/expansion, embedding, concat)
# ----------------------------------------------------------------------------
def pc_forward(params, cfg, x_real, c_trg):
    B, T = x_real.shape
    dim_enc, dim_dec = cfg['dim_enc'], cfg['dim_dec']
    dim_neck, dim_emb, freq = cfg['dim_neck'], cfg['dim_emb'], cfg['freq']
    g_enc = dim_enc // cfg['chs_grp']
    g_dec = dim_dec // cfg['chs_grp']

    enc_packed = pack_stack_params(params['encoder'], 72, dim_enc, g_enc)
    dec_packed = pack_stack_params(params['decoder'], 2 * dim_neck + dim_emb,
                                   dim_dec, g_dec)

    # Encoder: f0_to_coarse + conv stack in one fused kernel (grid over batch)
    x_coarse, enc_act = conv_stack(x_real.reshape(B, T, 1), enc_packed,
                                   T=T, B=B, cin0=72, D=dim_enc, G=g_enc,
                                   with_f0=True)                  # (B,T,72),(B,T,D)
    enc_tb = jnp.transpose(enc_act, (1, 0, 2))                    # (T, B, D)
    lstm_out = bilstm_fused(enc_tb, params['encoder']['lstm_fwd'],
                            params['encoder']['lstm_bwd'])        # (T, B, 2*neck)

    # code slicing / expansion (glue)
    codes = []
    for i in range(0, T, freq):
        codes.append(jnp.concatenate(
            [lstm_out[min(i + freq - 1, T - 1), :, :dim_neck],
             lstm_out[i, :, dim_neck:]], axis=-1))                # (B, 2*neck)
    tmp = [jnp.broadcast_to(c[:, None, :], (B, freq, 2 * dim_neck)) for c in codes]
    code_exp = jnp.concatenate(tmp, axis=1)[:, :T, :]

    emb = jnp.take(params['singer_embed'], c_trg, axis=0)         # (B, dim_emb)
    emb_exp = jnp.broadcast_to(emb[:, None, :], (B, T, dim_emb))
    dec_in = jnp.concatenate([code_exp, emb_exp], axis=-1)        # (B,T,2*neck+emb)

    # Decoder: fused conv stack, then fused biLSTM + Linear/sigmoid/clamp
    dec_act = conv_stack(dec_in, dec_packed, T=T, B=B,
                         cin0=2 * dim_neck + dim_emb, D=dim_dec, G=g_dec,
                         with_f0=False)                           # (B, T, D)
    dec_tb = jnp.transpose(dec_act, (1, 0, 2))                    # (T, B, D)
    dec_out_tb = bilstm_fused(dec_tb, params['decoder']['lstm_fwd'],
                              params['decoder']['lstm_bwd'],
                              proj=(params['decoder']['proj_w'],
                                    params['decoder']['proj_b'])) # (T, B, 72)
    dec_out = jnp.transpose(dec_out_tb, (1, 0, 2))                # (B, T, 72)
    return x_coarse, dec_out


# ----------------------------------------------------------------------------
# Deterministic parameter init (synthetic; matches module shapes)
# ----------------------------------------------------------------------------
def make_conv_gn_params(key, cin, cout, k):
    k1, k2 = jax.random.split(key)
    scale = (2.0 / (cin * k + cout * k)) ** 0.5
    return {
        'w': jax.random.normal(k1, (k, cin, cout), jnp.float32) * scale,
        'b': jax.random.normal(k2, (cout,), jnp.float32) * 0.01,
        'gamma': jnp.ones((cout,), jnp.float32),
        'beta': jnp.zeros((cout,), jnp.float32),
    }


def make_lstm_dir_params(key, in_dim, hidden):
    ks = jax.random.split(key, 4)
    s = 1.0 / (hidden ** 0.5)
    w_ih = jax.random.uniform(ks[0], (4 * hidden, in_dim), jnp.float32, -s, s)
    w_hh = jax.random.uniform(ks[1], (4 * hidden, hidden), jnp.float32, -s, s)
    b_ih = jax.random.uniform(ks[2], (4 * hidden,), jnp.float32, -s, s)
    b_hh = jax.random.uniform(ks[3], (4 * hidden,), jnp.float32, -s, s)
    return (w_ih, w_hh, b_ih, b_hh)


def init_params(key, cfg):
    dim_neck, dim_emb = cfg['dim_neck'], cfg['dim_emb']
    dim_enc, dim_dec = cfg['dim_enc'], cfg['dim_dec']
    keys = jax.random.split(key, 30)
    it = iter(keys)

    def conv_stack_params(cin, dim, hidden):
        p = {'conv0': make_conv_gn_params(next(it), cin, dim, 11)}
        for i in range(1, 5):
            p[f'res{i}_a'] = make_conv_gn_params(next(it), dim, dim, 5)
            p[f'res{i}_b'] = make_conv_gn_params(next(it), dim, dim, 5)
        p['lstm_fwd'] = make_lstm_dir_params(next(it), dim, hidden)
        p['lstm_bwd'] = make_lstm_dir_params(next(it), dim, hidden)
        return p

    params = {
        'singer_embed': jax.random.normal(next(it), (300, dim_emb), jnp.float32)
                        * (dim_emb ** -0.5),
        'encoder': conv_stack_params(72, dim_enc, dim_neck),
    }
    dec = conv_stack_params(2 * dim_neck + dim_emb, dim_dec, dim_dec)
    lim = (6.0 / (2 * dim_dec + 72)) ** 0.5
    dec['proj_w'] = jax.random.uniform(next(it), (2 * dim_dec, 72),
                                       jnp.float32, -lim, lim)
    dec['proj_b'] = jnp.zeros((72,), jnp.float32)
    params['decoder'] = dec
    return params


# ----------------------------------------------------------------------------
if __name__ == "__main__":
    cfg = dict(dim_neck=8, dim_emb=16, dim_enc=32, dim_dec=32, chs_grp=8, freq=4)
    B, T = 2, 16

    key = jax.random.PRNGKey(0)
    k_params, k_f0, k_spk = jax.random.split(key, 3)
    params = init_params(k_params, cfg)

    # f0 contour in Hz (kept well inside the 72-bin coarse range, like the module)
    f0 = jax.random.uniform(k_f0, (B, T), jnp.float32, 80.0, 400.0)
    c_trg = jax.random.randint(k_spk, (B,), 0, 300)

    x_coarse, out = pc_forward(params, cfg, f0, c_trg)
    jax.block_until_ready((x_coarse, out))

    assert x_coarse.shape == (B, T, 72)
    assert out.shape == (B, T, 72)
    assert bool(jnp.all(out > 0.0)) and bool(jnp.all(out < 1.0))
    print("KERNEL_OK")
</pallas_src>

<mosaic_0001>
module attributes {stable_mosaic.version = 11 : i64} {
  func.func @_conv_stack_kernel(%arg0: i32, %arg1: memref<1x16x1xf32, #tpu.memory_space<vmem>>, %arg2: memref<792x32xf32, #tpu.memory_space<vmem>>, %arg3: memref<8x160x32xf32, #tpu.memory_space<vmem>>, %arg4: memref<9x32xf32, #tpu.memory_space<vmem>>, %arg5: memref<9x32xf32, #tpu.memory_space<vmem>>, %arg6: memref<9x32xf32, #tpu.memory_space<vmem>>, %arg7: memref<32x4xf32, #tpu.memory_space<vmem>>, %arg8: memref<4x32xf32, #tpu.memory_space<vmem>>, %arg9: memref<1x16x72xf32, #tpu.memory_space<vmem>>, %arg10: memref<1x16x32xf32, #tpu.memory_space<vmem>>, %arg11: memref<26x72xf32, #tpu.memory_space<vmem>>, %arg12: memref<20x32xf32, #tpu.memory_space<vmem>>) attributes {dimension_semantics = [#tpu.dimension_semantics<parallel>], iteration_bounds = array<i64: 2>, scalar_prefetch = 0 : i64, scratch_operands = 2 : i64, tpu.core_type = #tpu.core_type<tc>, window_params = [{transform_indices = @transform_0, window_bounds = array<i64: 1, 16, 1>}, {pipeline_mode = #tpu.pipeline_mode<synchronous>, transform_indices = @transform_1, window_bounds = array<i64: 792, 32>}, {pipeline_mode = #tpu.pipeline_mode<synchronous>, transform_indices = @transform_2, window_bounds = array<i64: 8, 160, 32>}, {pipeline_mode = #tpu.pipeline_mode<synchronous>, transform_indices = @transform_3, window_bounds = array<i64: 9, 32>}, {pipeline_mode = #tpu.pipeline_mode<synchronous>, transform_indices = @transform_4, window_bounds = array<i64: 9, 32>}, {pipeline_mode = #tpu.pipeline_mode<synchronous>, transform_indices = @transform_5, window_bounds = array<i64: 9, 32>}, {pipeline_mode = #tpu.pipeline_mode<synchronous>, transform_indices = @transform_6, window_bounds = array<i64: 32, 4>}, {pipeline_mode = #tpu.pipeline_mode<synchronous>, transform_indices = @transform_7, window_bounds = array<i64: 4, 32>}, {transform_indices = @transform_8, window_bounds = array<i64: 1, 16, 72>}, {transform_indices = @transform_9, window_bounds = array<i64: 1, 16, 32>}]} {
    %c0 = arith.constant 0 : index
    %c0_0 = arith.constant 0 : index
    %0 = vector.load %arg7[%c0, %c0_0] : memref<32x4xf32, #tpu.memory_space<vmem>>, vector<32x4xf32>
    %c0_1 = arith.constant 0 : index
    %c0_2 = arith.constant 0 : index
    %1 = vector.load %arg8[%c0_1, %c0_2] : memref<4x32xf32, #tpu.memory_space<vmem>>, vector<4x32xf32>
    %c0_3 = arith.constant 0 : index
    %c0_4 = arith.constant 0 : index
    %c0_5 = arith.constant 0 : index
    %2 = vector.load %arg1[%c0_3, %c0_4, %c0_5] : memref<1x16x1xf32, #tpu.memory_space<vmem>>, vector<1x16x1xf32>
    %3 = vector.shape_cast %2 : vector<1x16x1xf32> to vector<16x1xf32>
    %cst = arith.constant 1.000000e+01 : f32
    %4 = vector.broadcast %cst : f32 to vector<16x1xf32>
    %5 = arith.divf %3, %4 : vector<16x1xf32>
    %6 = math.log %5 : vector<16x1xf32>
    %cst_6 = arith.constant 1731.23401 : f32
    %7 = vector.broadcast %cst_6 : f32 to vector<16x1xf32>
    %8 = arith.mulf %7, %6 : vector<16x1xf32>
    %cst_7 = arith.constant 2051.14868 : f32
    %9 = vector.broadcast %cst_7 : f32 to vector<16x1xf32>
    %10 = arith.subf %8, %9 : vector<16x1xf32>
    %cst_8 = arith.constant 1.000000e+02 : f32
    %11 = vector.broadcast %cst_8 : f32 to vector<16x1xf32>
    %12 = arith.divf %10, %11 : vector<16x1xf32>
    %13 = math.floor %12 : vector<16x1xf32>
    %14 = arith.fptosi %13 : vector<16x1xf32> to vector<16x1xi32>
    %cst_9 = arith.constant 2051.14868 : f32
    %15 = vector.broadcast %cst_9 : f32 to vector<16x1xf32>
    %16 = arith.subf %8, %15 : vector<16x1xf32>
    %cst_10 = arith.constant 1.000000e+02 : f32
    %17 = vector.broadcast %cst_10 : f32 to vector<16x1xf32>
    %18 = arith.mulf %13, %17 : vector<16x1xf32>
    %19 = arith.subf %16, %18 : vector<16x1xf32>
    %cst_11 = arith.constant 1.000000e+02 : f32
    %20 = vector.broadcast %cst_11 : f32 to vector<16x1xf32>
    %21 = arith.divf %19, %20 : vector<16x1xf32>
    %cst_12 = arith.constant 1.000000e+00 : f32
    %22 = vector.broadcast %cst_12 : f32 to vector<16x1xf32>
    %23 = arith.subf %22, %21 : vector<16x1xf32>
    %c1_i32 = arith.constant 1 : i32
    %24 = vector.broadcast %c1_i32 : i32 to vector<16x1xi32>
    %25 = arith.addi %14, %24 : vector<16x1xi32>
    %c71_i32 = arith.constant 71 : i32
    %26 = vector.broadcast %c71_i32 : i32 to vector<16x1xi32>
    %27 = arith.minsi %25, %26 : vector<16x1xi32>
    %28 = tpu.iota {dimensions = array<i32: 1>} : vector<16x72xi32>
    %29 = vector.broadcast %27 : vector<16x1xi32> to vector<16x72xi32>
    %30 = arith.cmpi eq, %28, %29 : vector<16x72xi32>
    %cst_13 = arith.constant 1.000000e+00 : f32
    %31 = vector.broadcast %cst_13 : f32 to vector<16x1xf32>
    %32 = arith.subf %31, %23 : vector<16x1xf32>
    %33 = vector.broadcast %14 : vector<16x1xi32> to vector<16x72xi32>
    %34 = arith.cmpi eq, %28, %33 : vector<16x72xi32>
    %cst_14 = arith.constant 0.000000e+00 : f32
    %35 = vector.shape_cast %23 : vector<16x1xf32> to vector<16x1xf32>
    %36 = vector.broadcast %35 : vector<16x1xf32> to vector<16x72xf32>
    %37 = vector.broadcast %cst_14 : f32 to vector<16x72xf32>
    %38 = arith.select %34, %36, %37 : vector<16x72xi1>, vector<16x72xf32>
    %39 = vector.shape_cast %32 : vector<16x1xf32> to vector<16x1xf32>
    %40 = vector.broadcast %39 : vector<16x1xf32> to vector<16x72xf32>
    %41 = arith.select %30, %40, %38 : vector<16x72xi1>, vector<16x72xf32>
    %c0_15 = arith.constant 0 : index
    %c0_16 = arith.constant 0 : index
    %c0_17 = arith.constant 0 : index
    %42 = vector.load %arg9[%c0_15, %c0_16, %c0_17] : memref<1x16x72xf32, #tpu.memory_space<vmem>>, vector<1x16x72xf32>
    %43 = vector.shape_cast %42 : vector<1x16x72xf32> to vector<16x72xf32>
    %44 = vector.shape_cast %41 : vector<16x72xf32> to vector<1x16x72xf32>
    tpu.vector_store %arg9[%c0_15, %c0_16, %c0_17], %44 {strides = array<i32>} : memref<1x16x72xf32, #tpu.memory_space<vmem>>, vector<1x16x72xf32>,
    %cst_18 = arith.constant 0.000000e+00 : f32
    %45 = vector.broadcast %cst_18 : f32 to vector<26x72xf32>
    %c0_19 = arith.constant 0 : index
    %c0_20 = arith.constant 0 : index
    %46 = vector.load %arg11[%c0_19, %c0_20] : memref<26x72xf32, #tpu.memory_space<vmem>>, vector<26x72xf32>
    tpu.vector_store %arg11[%c0_19, %c0_20], %45 {strides = array<i32>} : memref<26x72xf32, #tpu.memory_space<vmem>>, vector<26x72xf32>,
    %cst_21 = arith.constant 0.000000e+00 : f32
    %47 = vector.broadcast %cst_21 : f32 to vector<20x32xf32>
    %c0_22 = arith.constant 0 : index
    %c0_23 = arith.constant 0 : index
    %48 = vector.load %arg12[%c0_22, %c0_23] : memref<20x32xf32, #tpu.memory_space<vmem>>, vector<20x32xf32>
    tpu.vector_store %arg12[%c0_22, %c0_23], %47 {strides = array<i32>} : memref<20x32xf32, #tpu.memory_space<vmem>>, vector<20x32xf32>,
    %c5 = arith.constant 5 : index
    %c0_24 = arith.constant 0 : index
    %49 = vector.load %arg11[%c5, %c0_24] : memref<26x72xf32, #tpu.memory_space<vmem>>, vector<16x72xf32>
    tpu.vector_store %arg11[%c5, %c0_24], %41 {strides = array<i32>} : memref<26x72xf32, #tpu.memory_space<vmem>>, vector<16x72xf32>,
    %c0_25 = arith.constant 0 : index
    %c0_26 = arith.constant 0 : index
    %50 = vector.load %arg11[%c0_25, %c0_26] : memref<26x72xf32, #tpu.memory_space<vmem>>, vector<16x72xf32>
    %c1 = arith.constant 1 : index
    %c0_27 = arith.constant 0 : index
    %51 = vector.load %arg11[%c1, %c0_27] : memref<26x72xf32, #tpu.memory_space<vmem>>, vector<16x72xf32>
    %c2 = arith.constant 2 : index
    %c0_28 = arith.constant 0 : index
    %52 = vector.load %arg11[%c2, %c0_28] : memref<26x72xf32, #tpu.memory_space<vmem>>, vector<16x72xf32>
    %c3 = arith.constant 3 : index
    %c0_29 = arith.constant 0 : index
    %53 = vector.load %arg11[%c3, %c0_29] : memref<26x72xf32, #tpu.memory_space<vmem>>, vector<16x72xf32>
    %c4 = arith.constant 4 : index
    %c0_30 = arith.constant 0 : index
    %54 = vector.load %arg11[%c4, %c0_30] : memref<26x72xf32, #tpu.memory_space<vmem>>, vector<16x72xf32>
    %c5_31 = arith.constant 5 : index
    %c0_32 = arith.constant 0 : index
    %55 = vector.load %arg11[%c5_31, %c0_32] : memref<26x72xf32, #tpu.memory_space<vmem>>, vector<16x72xf32>
    %c6 = arith.constant 6 : index
    %c0_33 = arith.constant 0 : index
    %56 = vector.load %arg11[%c6, %c0_33] : memref<26x72xf32, #tpu.memory_space<vmem>>, vector<16x72xf32>
    %c7 = arith.constant 7 : index
    %c0_34 = arith.constant 0 : index
    %57 = vector.load %arg11[%c7, %c0_34] : memref<26x72xf32, #tpu.memory_space<vmem>>, vector<16x72xf32>
    %c8 = arith.constant 8 : index
    %c0_35 = arith.constant 0 : index
    %58 = vector.load %arg11[%c8, %c0_35] : memref<26x72xf32, #tpu.memory_space<vmem>>, vector<16x72xf32>
    %c9 = arith.constant 9 : index
    %c0_36 = arith.constant 0 : index
    %59 = vector.load %arg11[%c9, %c0_36] : memref<26x72xf32, #tpu.memory_space<vmem>>, vector<16x72xf32>
    %c10 = arith.constant 10 : index
    %c0_37 = arith.constant 0 : index
    %60 = vector.load %arg11[%c10, %c0_37] : memref<26x72xf32, #tpu.memory_space<vmem>>, vector<16x72xf32>
    %61 = tpu.concatenate %50, %51, %52, %53, %54, %55, %56, %57, %58, %59, %60 in 1 : vector<16x72xf32>, vector<16x72xf32>, vector<16x72xf32>, vector<16x72xf32>, vector<16x72xf32>, vector<16x72xf32>, vector<16x72xf32>, vector<16x72xf32>, vector<16x72xf32>, vector<16x72xf32>, vector<16x72xf32> -> vector<16x792xf32>
    %c0_38 = arith.constant 0 : index
    %c0_39 = arith.constant 0 : index
    %62 = vector.load %arg2[%c0_38, %c0_39] : memref<792x32xf32, #tpu.memory_space<vmem>>, vector<792x32xf32>
    %cst_40 = arith.constant dense<0.000000e+00> : vector<16x32xf32>
    %63 = tpu.matmul %61, %62, %cst_40 {dimension_numbers = #tpu.dot_dimension_numbers<[1], [0], [0], [1], [0, 0, 1, 1], [], []>} : vector<16x792xf32>, vector<792x32xf32>, vector<16x32xf32> -> vector<16x32xf32>
    %c0_41 = arith.constant 0 : index
    %c0_42 = arith.constant 0 : index
    %64 = vector.load %arg4[%c0_41, %c0_42] : memref<9x32xf32, #tpu.memory_space<vmem>>, vector<1x32xf32>
    %65 = vector.broadcast %64 : vector<1x32xf32> to vector<16x32xf32>
    %66 = arith.addf %63, %65 : vector<16x32xf32>
    %c0_43 = arith.constant 0 : index
    %c0_44 = arith.constant 0 : index
    %67 = vector.load %arg5[%c0_43, %c0_44] : memref<9x32xf32, #tpu.memory_space<vmem>>, vector<1x32xf32>
    %c0_45 = arith.constant 0 : index
    %c0_46 = arith.constant 0 : index
    %68 = vector.load %arg6[%c0_45, %c0_46] : memref<9x32xf32, #tpu.memory_space<vmem>>, vector<1x32xf32>
    %cst_47 = arith.constant dense<0.000000e+00> : vector<32xf32>
    %69 = vector.multi_reduction <add>, %66, %cst_47 [0] : vector<16x32xf32> to vector<32xf32>
    %70 = vector.shape_cast %69 : vector<32xf32> to vector<1x32xf32>
    %cst_48 = arith.constant dense<0.000000e+00> : vector<1x4xf32>
    %71 = tpu.matmul %70, %0, %cst_48 {dimension_numbers = #tpu.dot_dimension_numbers<[1], [0], [0], [1], [0, 0, 1, 1], [], []>} : vector<1x32xf32>, vector<32x4xf32>, vector<1x4xf32> -> vector<1x4xf32>
    %cst_49 = arith.constant 1.280000e+02 : f32
    %72 = vector.broadcast %cst_49 : f32 to vector<1x4xf32>
    %73 = arith.divf %71, %72 : vector<1x4xf32>
    %cst_50 = arith.constant dense<0.000000e+00> : vector<1x32xf32>
    %74 = tpu.matmul %73, %1, %cst_50 {dimension_numbers = #tpu.dot_dimension_numbers<[1], [0], [0], [1], [0, 0, 1, 1], [], []>} : vector<1x4xf32>, vector<4x32xf32>, vector<1x32xf32> -> vector<1x32xf32>
    %75 = vector.broadcast %74 : vector<1x32xf32> to vector<16x32xf32>
    %76 = arith.subf %66, %75 : vector<16x32xf32>
    %77 = arith.mulf %76, %76 : vector<16x32xf32>
    %cst_51 = arith.constant dense<0.000000e+00> : vector<32xf32>
    %78 = vector.multi_reduction <add>, %77, %cst_51 [0] : vector<16x32xf32> to vector<32xf32>
    %79 = vector.shape_cast %78 : vector<32xf32> to vector<1x32xf32>
    %cst_52 = arith.constant dense<0.000000e+00> : vector<1x4xf32>
    %80 = tpu.matmul %79, %0, %cst_52 {dimension_numbers = #tpu.dot_dimension_numbers<[1], [0], [0], [1], [0, 0, 1, 1], [], []>} : vector<1x32xf32>, vector<32x4xf32>, vector<1x4xf32> -> vector<1x4xf32>
    %cst_53 = arith.constant 1.280000e+02 : f32
    %81 = vector.broadcast %cst_53 : f32 to vector<1x4xf32>
    %82 = arith.divf %80, %81 : vector<1x4xf32>
    %cst_54 = arith.constant dense<0.000000e+00> : vector<1x32xf32>
    %83 = tpu.matmul %82, %1, %cst_54 {dimension_numbers = #tpu.dot_dimension_numbers<[1], [0], [0], [1], [0, 0, 1, 1], [], []>} : vector<1x4xf32>, vector<4x32xf32>, vector<1x32xf32> -> vector<1x32xf32>
    %cst_55 = arith.constant 9.99999974E-6 : f32
    %84 = vector.broadcast %cst_55 : f32 to vector<1x32xf32>
    %85 = arith.addf %83, %84 : vector<1x32xf32>
    %86 = math.rsqrt %85 : vector<1x32xf32>
    %87 = vector.broadcast %86 : vector<1x32xf32> to vector<16x32xf32>
    %88 = arith.mulf %76, %87 : vector<16x32xf32>
    %89 = vector.broadcast %67 : vector<1x32xf32> to vector<16x32xf32>
    %90 = arith.mulf %88, %89 : vector<16x32xf32>
    %91 = vector.broadcast %68 : vector<1x32xf32> to vector<16x32xf32>
    %92 = arith.addf %90, %91 : vector<16x32xf32>
    %cst_56 = arith.constant 0.000000e+00 : f32
    %93 = vector.broadcast %cst_56 : f32 to vector<16x32xf32>
    %94 = arith.maximumf %92, %93 : vector<16x32xf32>
    %c2_57 = arith.constant 2 : index
    %c0_58 = arith.constant 0 : index
    %95 = vector.load %arg12[%c2_57, %c0_58] : memref<20x32xf32, #tpu.memory_space<vmem>>, vector<16x32xf32>
    tpu.vector_store %arg12[%c2_57, %c0_58], %94 {strides = array<i32>} : memref<20x32xf32, #tpu.memory_space<vmem>>, vector<16x32xf32>,
    %c0_59 = arith.constant 0 : index
    %c0_60 = arith.constant 0 : index
    %96 = vector.load %arg12[%c0_59, %c0_60] : memref<20x32xf32, #tpu.memory_space<vmem>>, vector<16x32xf32>
    %c1_61 = arith.constant 1 : index
    %c0_62 = arith.constant 0 : index
    %97 = vector.load %arg12[%c1_61, %c0_62] : memref<20x32xf32, #tpu.memory_space<vmem>>, vector<16x32xf32>
    %c2_63 = arith.constant 2 : index
    %c0_64 = arith.constant 0 : index
    %98 = vector.load %arg12[%c2_63, %c0_64] : memref<20x32xf32, #tpu.memory_space<vmem>>, vector<16x32xf32>
    %c3_65 = arith.constant 3 : index
    %c0_66 = arith.constant 0 : index
    %99 = vector.load %arg12[%c3_65, %c0_66] : memref<20x32xf32, #tpu.memory_space<vmem>>, vector<16x32xf32>
    %c4_67 = arith.constant 4 : index
    %c0_68 = arith.constant 0 : index
    %100 = vector.load %arg12[%c4_67, %c0_68] : memref<20x32xf32, #tpu.memory_space<vmem>>, vector<16x32xf32>
    %101 = tpu.concatenate %96, %97, %98, %99, %100 in 1 : vector<16x32xf32>, vector<16x32xf32>, vector<16x32xf32>, vector<16x32xf32>, vector<16x32xf32> -> vector<16x160xf32>
    %c0_69 = arith.constant 0 : index
    %c0_70 = arith.constant 0 : index
    %c0_71 = arith.constant 0 : index
    %102 = vector.load %arg3[%c0_69, %c0_70, %c0_71] : memref<8x160x32xf32, #tpu.memory_space<vmem>>, vector<1x160x32xf32>
    %103 = vector.shape_cast %102 : vector<1x160x32xf32> to vector<160x32xf32>
    %cst_72 = arith.constant dense<0.000000e+00> : vector<16x32xf32>
    %104 = tpu.matmul %101, %103, %cst_72 {dimension_numbers = #tpu.dot_dimension_numbers<[1], [0], [0], [1], [0, 0, 1, 1], [], []>} : vector<16x160xf32>, vector<160x32xf32>, vector<16x32xf32> -> vector<16x32xf32>
    %c1_73 = arith.constant 1 : index
    %c0_74 = arith.constant 0 : index
    %105 = vector.load %arg4[%c1_73, %c0_74] : memref<9x32xf32, #tpu.memory_space<vmem>>, vector<1x32xf32>
    %106 = vector.broadcast %105 : vector<1x32xf32> to vector<16x32xf32>
    %107 = arith.addf %104, %106 : vector<16x32xf32>
    %c1_75 = arith.constant 1 : index
    %c0_76 = arith.constant 0 : index
    %108 = vector.load %arg5[%c1_75, %c0_76] : memref<9x32xf32, #tpu.memory_space<vmem>>, vector<1x32xf32>
    %c1_77 = arith.constant 1 : index
    %c0_78 = arith.constant 0 : index
    %109 = vector.load %arg6[%c1_77, %c0_78] : memref<9x32xf32, #tpu.memory_space<vmem>>, vector<1x32xf32>
    %cst_79 = arith.constant dense<0.000000e+00> : vector<32xf32>
    %110 = vector.multi_reduction <add>, %107, %cst_79 [0] : vector<16x32xf32> to vector<32xf32>
    %111 = vector.shape_cast %110 : vector<32xf32> to vector<1x32xf32>
    %cst_80 = arith.constant dense<0.000000e+00> : vector<1x4xf32>
    %112 = tpu.matmul %111, %0, %cst_80 {dimension_numbers = #tpu.dot_dimension_numbers<[1], [0], [0], [1], [0, 0, 1, 1], [], []>} : vector<1x32xf32>, vector<32x4xf32>, vector<1x4xf32> -> vector<1x4xf32>
    %cst_81 = arith.constant 1.280000e+02 : f32
    %113 = vector.broadcast %cst_81 : f32 to vector<1x4xf32>
    %114 = arith.divf %112, %113 : vector<1x4xf32>
    %cst_82 = arith.constant dense<0.000000e+00> : vector<1x32xf32>
    %115 = tpu.matmul %114, %1, %cst_82 {dimension_numbers = #tpu.dot_dimension_numbers<[1], [0], [0], [1], [0, 0, 1, 1], [], []>} : vector<1x4xf32>, vector<4x32xf32>, vector<1x32xf32> -> vector<1x32xf32>
    %116 = vector.broadcast %115 : vector<1x32xf32> to vector<16x32xf32>
    %117 = arith.subf %107, %116 : vector<16x32xf32>
    %118 = arith.mulf %117, %117 : vector<16x32xf32>
    %cst_83 = arith.constant dense<0.000000e+00> : vector<32xf32>
    %119 = vector.multi_reduction <add>, %118, %cst_83 [0] : vector<16x32xf32> to vector<32xf32>
    %120 = vector.shape_cast %119 : vector<32xf32> to vector<1x32xf32>
    %cst_84 = arith.constant dense<0.000000e+00> : vector<1x4xf32>
    %121 = tpu.matmul %120, %0, %cst_84 {dimension_numbers = #tpu.dot_dimension_numbers<[1], [0], [0], [1], [0, 0, 1, 1], [], []>} : vector<1x32xf32>, vector<32x4xf32>, vector<1x4xf32> -> vector<1x4xf32>
    %cst_85 = arith.constant 1.280000e+02 : f32
    %122 = vector.broadcast %cst_85 : f32 to vector<1x4xf32>
    %123 = arith.divf %121, %122 : vector<1x4xf32>
    %cst_86 = arith.constant dense<0.000000e+00> : vector<1x32xf32>
    %124 = tpu.matmul %123, %1, %cst_86 {dimension_numbers = #tpu.dot_dimension_numbers<[1], [0], [0], [1], [0, 0, 1, 1], [], []>} : vector<1x4xf32>, vector<4x32xf32>, vector<1x32xf32> -> vector<1x32xf32>
    %cst_87 = arith.constant 9.99999974E-6 : f32
    %125 = vector.broadcast %cst_87 : f32 to vector<1x32xf32>
    %126 = arith.addf %124, %125 : vector<1x32xf32>
    %127 = math.rsqrt %126 : vector<1x32xf32>
    %128 = vector.broadcast %127 : vector<1x32xf32> to vector<16x32xf32>
    %129 = arith.mulf %117, %128 : vector<16x32xf32>
    %130 = vector.broadcast %108 : vector<1x32xf32> to vector<16x32xf32>
    %131 = arith.mulf %129, %130 : vector<16x32xf32>
    %132 = vector.broadcast %109 : vector<1x32xf32> to vector<16x32xf32>
    %133 = arith.addf %131, %132 : vector<16x32xf32>
    %cst_88 = arith.constant 0.000000e+00 : f32
    %134 = vector.broadcast %cst_88 : f32 to vector<16x32xf32>
    %135 = arith.maximumf %133, %134 : vector<16x32xf32>
    %c2_89 = arith.constant 2 : index
    %c0_90 = arith.constant 0 : index
    %136 = vector.load %arg12[%c2_89, %c0_90] : memref<20x32xf32, #tpu.memory_space<vmem>>, vector<16x32xf32>
    tpu.vector_store %arg12[%c2_89, %c0_90], %135 {strides = array<i32>} : memref<20x32xf32, #tpu.memory_space<vmem>>, vector<16x32xf32>,
    %c0_91 = arith.constant 0 : index
    %c0_92 = arith.constant 0 : index
    %137 = vector.load %arg12[%c0_91, %c0_92] : memref<20x32xf32, #tpu.memory_space<vmem>>, vector<16x32xf32>
    %c1_93 = arith.constant 1 : index
    %c0_94 = arith.constant 0 : index
    %138 = vector.load %arg12[%c1_93, %c0_94] : memref<20x32xf32, #tpu.memory_space<vmem>>, vector<16x32xf32>
    %c2_95 = arith.constant 2 : index
    %c0_96 = arith.constant 0 : index
    %139 = vector.load %arg12[%c2_95, %c0_96] : memref<20x32xf32, #tpu.memory_space<vmem>>, vector<16x32xf32>
    %c3_97 = arith.constant 3 : index
    %c0_98 = arith.constant 0 : index
    %140 = vector.load %arg12[%c3_97, %c0_98] : memref<20x32xf32, #tpu.memory_space<vmem>>, vector<16x32xf32>
    %c4_99 = arith.constant 4 : index
    %c0_100 = arith.constant 0 : index
    %141 = vector.load %arg12[%c4_99, %c0_100] : memref<20x32xf32, #tpu.memory_space<vmem>>, vector<16x32xf32>
    %142 = tpu.concatenate %137, %138, %139, %140, %141 in 1 : vector<16x32xf32>, vector<16x32xf32>, vector<16x32xf32>, vector<16x32xf32>, vector<16x32xf32> -> vector<16x160xf32>
    %c1_101 = arith.constant 1 : index
    %c0_102 = arith.constant 0 : index
    %c0_103 = arith.constant 0 : index
    %143 = vector.load %arg3[%c1_101, %c0_102, %c0_103] : memref<8x160x32xf32, #tpu.memory_space<vmem>>, vector<1x160x32xf32>
    %144 = vector.shape_cast %143 : vector<1x160x32xf32> to vector<160x32xf32>
    %cst_104 = arith.constant dense<0.000000e+00> : vector<16x32xf32>
    %145 = tpu.matmul %142, %144, %cst_104 {dimension_numbers = #tpu.dot_dimension_numbers<[1], [0], [0], [1], [0, 0, 1, 1], [], []>} : vector<16x160xf32>, vector<160x32xf32>, vector<16x32xf32> -> vector<16x32xf32>
    %c2_105 = arith.constant 2 : index
    %c0_106 = arith.constant 0 : index
    %146 = vector.load %arg4[%c2_105, %c0_106] : memref<9x32xf32, #tpu.memory_space<vmem>>, vector<1x32xf32>
    %147 = vector.broadcast %146 : vector<1x32xf32> to vector<16x32xf32>
    %148 = arith.addf %145, %147 : vector<16x32xf32>
    %c2_107 = arith.constant 2 : index
    %c0_108 = arith.constant 0 : index
    %149 = vector.load %arg5[%c2_107, %c0_108] : memref<9x32xf32, #tpu.memory_space<vmem>>, vector<1x32xf32>
    %c2_109 = arith.constant 2 : index
    %c0_110 = arith.constant 0 : index
    %150 = vector.load %arg6[%c2_109, %c0_110] : memref<9x32xf32, #tpu.memory_space<vmem>>, vector<1x32xf32>
    %cst_111 = arith.constant dense<0.000000e+00> : vector<32xf32>
    %151 = vector.multi_reduction <add>, %148, %cst_111 [0] : vector<16x32xf32> to vector<32xf32>
    %152 = vector.shape_cast %151 : vector<32xf32> to vector<1x32xf32>
    %cst_112 = arith.constant dense<0.000000e+00> : vector<1x4xf32>
    %153 = tpu.matmul %152, %0, %cst_112 {dimension_numbers = #tpu.dot_dimension_numbers<[1], [0], [0], [1], [0, 0, 1, 1], [], []>} : vector<1x32xf32>, vector<32x4xf32>, vector<1x4xf32> -> vector<1x4xf32>
    %cst_113 = arith.constant 1.280000e+02 : f32
    %154 = vector.broadcast %cst_113 : f32 to vector<1x4xf32>
    %155 = arith.divf %153, %154 : vector<1x4xf32>
    %cst_114 = arith.constant dense<0.000000e+00> : vector<1x32xf32>
    %156 = tpu.matmul %155, %1, %cst_114 {dimension_numbers = #tpu.dot_dimension_numbers<[1], [0], [0], [1], [0, 0, 1, 1], [], []>} : vector<1x4xf32>, vector<4x32xf32>, vector<1x32xf32> -> vector<1x32xf32>
    %157 = vector.broadcast %156 : vector<1x32xf32> to vector<16x32xf32>
    %158 = arith.subf %148, %157 : vector<16x32xf32>
    %159 = arith.mulf %158, %158 : vector<16x32xf32>
    %cst_115 = arith.constant dense<0.000000e+00> : vector<32xf32>
    %160 = vector.multi_reduction <add>, %159, %cst_115 [0] : vector<16x32xf32> to vector<32xf32>
    %161 = vector.shape_cast %160 : vector<32xf32> to vector<1x32xf32>
    %cst_116 = arith.constant dense<0.000000e+00> : vector<1x4xf32>
    %162 = tpu.matmul %161, %0, %cst_116 {dimension_numbers = #tpu.dot_dimension_numbers<[1], [0], [0], [1], [0, 0, 1, 1], [], []>} : vector<1x32xf32>, vector<32x4xf32>, vector<1x4xf32> -> vector<1x4xf32>
    %cst_117 = arith.constant 1.280000e+02 : f32
    %163 = vector.broadcast %cst_117 : f32 to vector<1x4xf32>
    %164 = arith.divf %162, %163 : vector<1x4xf32>
    %cst_118 = arith.constant dense<0.000000e+00> : vector<1x32xf32>
    %165 = tpu.matmul %164, %1, %cst_118 {dimension_numbers = #tpu.dot_dimension_numbers<[1], [0], [0], [1], [0, 0, 1, 1], [], []>} : vector<1x4xf32>, vector<4x32xf32>, vector<1x32xf32> -> vector<1x32xf32>
    %cst_119 = arith.constant 9.99999974E-6 : f32
    %166 = vector.broadcast %cst_119 : f32 to vector<1x32xf32>
    %167 = arith.addf %165, %166 : vector<1x32xf32>
    %168 = math.rsqrt %167 : vector<1x32xf32>
    %169 = vector.broadcast %168 : vector<1x32xf32> to vector<16x32xf32>
    %170 = arith.mulf %158, %169 : vector<16x32xf32>
    %171 = vector.broadcast %149 : vector<1x32xf32> to vector<16x32xf32>
    %172 = arith.mulf %170, %171 : vector<16x32xf32>
    %173 = vector.broadcast %150 : vector<1x32xf32> to vector<16x32xf32>
    %174 = arith.addf %172, %173 : vector<16x32xf32>
    %175 = arith.addf %174, %94 : vector<16x32xf32>
    %cst_120 = arith.constant 0.000000e+00 : f32
    %176 = vector.broadcast %cst_120 : f32 to vector<16x32xf32>
    %177 = arith.maximumf %175, %176 : vector<16x32xf32>
    %c2_121 = arith.constant 2 : index
    %c0_122 = arith.constant 0 : index
    %178 = vector.load %arg12[%c2_121, %c0_122] : memref<20x32xf32, #tpu.memory_space<vmem>>, vector<16x32xf32>
    tpu.vector_store %arg12[%c2_121, %c0_122], %177 {strides = array<i32>} : memref<20x32xf32, #tpu.memory_space<vmem>>, vector<16x32xf32>,
    %c0_123 = arith.constant 0 : index
    %c0_124 = arith.constant 0 : index
    %179 = vector.load %arg12[%c0_123, %c0_124] : memref<20x32xf32, #tpu.memory_space<vmem>>, vector<16x32xf32>
    %c1_125 = arith.constant 1 : index
    %c0_126 = arith.constant 0 : index
    %180 = vector.load %arg12[%c1_125, %c0_126] : memref<20x32xf32, #tpu.memory_space<vmem>>, vector<16x32xf32>
    %c2_127 = arith.constant 2 : index
    %c0_128 = arith.constant 0 : index
    %181 = vector.load %arg12[%c2_127, %c0_128] : memref<20x32xf32, #tpu.memory_space<vmem>>, vector<16x32xf32>
    %c3_129 = arith.constant 3 : index
    %c0_130 = arith.constant 0 : index
    %182 = vector.load %arg12[%c3_129, %c0_130] : memref<20x32xf32, #tpu.memory_space<vmem>>, vector<16x32xf32>
    %c4_131 = arith.constant 4 : index
    %c0_132 = arith.constant 0 : index
    %183 = vector.load %arg12[%c4_131, %c0_132] : memref<20x32xf32, #tpu.memory_space<vmem>>, vector<16x32xf32>
    %184 = tpu.concatenate %179, %180, %181, %182, %183 in 1 : vector<16x32xf32>, vector<16x32xf32>, vector<16x32xf32>, vector<16x32xf32>, vector<16x32xf32> -> vector<16x160xf32>
    %c2_133 = arith.constant 2 : index
    %c0_134 = arith.constant 0 : index
    %c0_135 = arith.constant 0 : index
    %185 = vector.load %arg3[%c2_133, %c0_134, %c0_135] : memref<8x160x32xf32, #tpu.memory_space<vmem>>, vector<1x160x32xf32>
    %186 = vector.shape_cast %185 : vector<1x160x32xf32> to vector<160x32xf32>
    %cst_136 = arith.constant dense<0.000000e+00> : vector<16x32xf32>
    %187 = tpu.matmul %184, %186, %cst_136 {dimension_numbers = #tpu.dot_dimension_numbers<[1], [0], [0], [1], [0, 0, 1, 1], [], []>} : vector<16x160xf32>, vector<160x32xf32>, vector<16x32xf32> -> vector<16x32xf32>
    %c3_137 = arith.constant 3 : index
    %c0_138 = arith.constant 0 : index
    %188 = vector.load %arg4[%c3_137, %c0_138] : memref<9x32xf32, #tpu.memory_space<vmem>>, vector<1x32xf32>
    %189 = vector.broadcast %188 : vector<1x32xf32> to vector<16x32xf32>
    %190 = arith.addf %187, %189 : vector<16x32xf32>
    %c3_139 = arith.constant 3 : index
    %c0_140 = arith.constant 0 : index
    %191 = vector.load %arg5[%c3_139, %c0_140] : memref<9x32xf32, #tpu.memory_space<vmem>>, vector<1x32xf32>
    %c3_141 = arith.constant 3 : index
    %c0_142 = arith.constant 0 : index
    %192 = vector.load %arg6[%c3_141, %c0_142] : memref<9x32xf32, #tpu.memory_space<vmem>>, vector<1x32xf32>
    %cst_143 = arith.constant dense<0.000000e+00> : vector<32xf32>
    %193 = vector.multi_reduction <add>, %190, %cst_143 [0] : vector<16x32xf32> to vector<32xf32>
    %194 = vector.shape_cast %193 : vector<32xf32> to vector<1x32xf32>
    %cst_144 = arith.constant dense<0.000000e+00> : vector<1x4xf32>
    %195 = tpu.matmul %194, %0, %cst_144 {dimension_numbers = #tpu.dot_dimension_numbers<[1], [0], [0], [1], [0, 0, 1, 1], [], []>} : vector<1x32xf32>, vector<32x4xf32>, vector<1x4xf32> -> vector<1x4xf32>
    %cst_145 = arith.constant 1.280000e+02 : f32
    %196 = vector.broadcast %cst_145 : f32 to vector<1x4xf32>
    %197 = arith.divf %195, %196 : vector<1x4xf32>
    %cst_146 = arith.constant dense<0.000000e+00> : vector<1x32xf32>
    %198 = tpu.matmul %197, %1, %cst_146 {dimension_numbers = #tpu.dot_dimension_numbers<[1], [0], [0], [1], [0, 0, 1, 1], [], []>} : vector<1x4xf32>, vector<4x32xf32>, vector<1x32xf32> -> vector<1x32xf32>
    %199 = vector.broadcast %198 : vector<1x32xf32> to vector<16x32xf32>
    %200 = arith.subf %190, %199 : vector<16x32xf32>
    %201 = arith.mulf %200, %200 : vector<16x32xf32>
    %cst_147 = arith.constant dense<0.000000e+00> : vector<32xf32>
    %202 = vector.multi_reduction <add>, %201, %cst_147 [0] : vector<16x32xf32> to vector<32xf32>
    %203 = vector.shape_cast %202 : vector<32xf32> to vector<1x32xf32>
    %cst_148 = arith.constant dense<0.000000e+00> : vector<1x4xf32>
    %204 = tpu.matmul %203, %0, %cst_148 {dimension_numbers = #tpu.dot_dimension_numbers<[1], [0], [0], [1], [0, 0, 1, 1], [], []>} : vector<1x32xf32>, vector<32x4xf32>, vector<1x4xf32> -> vector<1x4xf32>
    %cst_149 = arith.constant 1.280000e+02 : f32
    %205 = vector.broadcast %cst_149 : f32 to vector<1x4xf32>
    %206 = arith.divf %204, %205 : vector<1x4xf32>
    %cst_150 = arith.constant dense<0.000000e+00> : vector<1x32xf32>
    %207 = tpu.matmul %206, %1, %cst_150 {dimension_numbers = #tpu.dot_dimension_numbers<[1], [0], [0], [1], [0, 0, 1, 1], [], []>} : vector<1x4xf32>, vector<4x32xf32>, vector<1x32xf32> -> vector<1x32xf32>
    %cst_151 = arith.constant 9.99999974E-6 : f32
    %208 = vector.broadcast %cst_151 : f32 to vector<1x32xf32>
    %209 = arith.addf %207, %208 : vector<1x32xf32>
    %210 = math.rsqrt %209 : vector<1x32xf32>
    %211 = vector.broadcast %210 : vector<1x32xf32> to vector<16x32xf32>
    %212 = arith.mulf %200, %211 : vector<16x32xf32>
    %213 = vector.broadcast %191 : vector<1x32xf32> to vector<16x32xf32>
    %214 = arith.mulf %212, %213 : vector<16x32xf32>
    %215 = vector.broadcast %192 : vector<1x32xf32> to vector<16x32xf32>
    %216 = arith.addf %214, %215 : vector<16x32xf32>
    %cst_152 = arith.constant 0.000000e+00 : f32
    %217 = vector.broadcast %cst_152 : f32 to vector<16x32xf32>
    %218 = arith.maximumf %216, %217 : vector<16x32xf32>
    %c2_153 = arith.constant 2 : index
    %c0_154 = arith.constant 0 : index
    %219 = vector.load %arg12[%c2_153, %c0_154] : memref<20x32xf32, #tpu.memory_space<vmem>>, vector<16x32xf32>
    tpu.vector_store %arg12[%c2_153, %c0_154], %218 {strides = array<i32>} : memref<20x32xf32, #tpu.memory_space<vmem>>, vector<16x32xf32>,
    %c0_155 = arith.constant 0 : index
    %c0_156 = arith.constant 0 : index
    %220 = vector.load %arg12[%c0_155, %c0_156] : memref<20x32xf32, #tpu.memory_space<vmem>>, vector<16x32xf32>
    %c1_157 = arith.constant 1 : index
    %c0_158 = arith.constant 0 : index
    %221 = vector.load %arg12[%c1_157, %c0_158] : memref<20x32xf32, #tpu.memory_space<vmem>>, vector<16x32xf32>
    %c2_159 = arith.constant 2 : index
    %c0_160 = arith.constant 0 : index
    %222 = vector.load %arg12[%c2_159, %c0_160] : memref<20x32xf32, #tpu.memory_space<vmem>>, vector<16x32xf32>
    %c3_161 = arith.constant 3 : index
    %c0_162 = arith.constant 0 : index
    %223 = vector.load %arg12[%c3_161, %c0_162] : memref<20x32xf32, #tpu.memory_space<vmem>>, vector<16x32xf32>
    %c4_163 = arith.constant 4 : index
    %c0_164 = arith.constant 0 : index
    %224 = vector.load %arg12[%c4_163, %c0_164] : memref<20x32xf32, #tpu.memory_space<vmem>>, vector<16x32xf32>
    %225 = tpu.concatenate %220, %221, %222, %223, %224 in 1 : vector<16x32xf32>, vector<16x32xf32>, vector<16x32xf32>, vector<16x32xf32>, vector<16x32xf32> -> vector<16x160xf32>
    %c3_165 = arith.constant 3 : index
    %c0_166 = arith.constant 0 : index
    %c0_167 = arith.constant 0 : index
    %226 = vector.load %arg3[%c3_165, %c0_166, %c0_167] : memref<8x160x32xf32, #tpu.memory_space<vmem>>, vector<1x160x32xf32>
    %227 = vector.shape_cast %226 : vector<1x160x32xf32> to vector<160x32xf32>
    %cst_168 = arith.constant dense<0.000000e+00> : vector<16x32xf32>
    %228 = tpu.matmul %225, %227, %cst_168 {dimension_numbers = #tpu.dot_dimension_numbers<[1], [0], [0], [1], [0, 0, 1, 1], [], []>} : vector<16x160xf32>, vector<160x32xf32>, vector<16x32xf32> -> vector<16x32xf32>
    %c4_169 = arith.constant 4 : index
    %c0_170 = arith.constant 0 : index
    %229 = vector.load %arg4[%c4_169, %c0_170] : memref<9x32xf32, #tpu.memory_space<vmem>>, vector<1x32xf32>
    %230 = vector.broadcast %229 : vector<1x32xf32> to vector<16x32xf32>
    %231 = arith.addf %228, %230 : vector<16x32xf32>
    %c4_171 = arith.constant 4 : index
    %c0_172 = arith.constant 0 : index
    %232 = vector.load %arg5[%c4_171, %c0_172] : memref<9x32xf32, #tpu.memory_space<vmem>>, vector<1x32xf32>
    %c4_173 = arith.constant 4 : index
    %c0_174 = arith.constant 0 : index
    %233 = vector.load %arg6[%c4_173, %c0_174] : memref<9x32xf32, #tpu.memory_space<vmem>>, vector<1x32xf32>
    %cst_175 = arith.constant dense<0.000000e+00> : vector<32xf32>
    %234 = vector.multi_reduction <add>, %231, %cst_175 [0] : vector<16x32xf32> to vector<32xf32>
    %235 = vector.shape_cast %234 : vector<32xf32> to vector<1x32xf32>
    %cst_176 = arith.constant dense<0.000000e+00> : vector<1x4xf32>
    %236 = tpu.matmul %235, %0, %cst_176 {dimension_numbers = #tpu.dot_dimension_numbers<[1], [0], [0], [1], [0, 0, 1, 1], [], []>} : vector<1x32xf32>, vector<32x4xf32>, vector<1x4xf32> -> vector<1x4xf32>
    %cst_177 = arith.constant 1.280000e+02 : f32
    %237 = vector.broadcast %cst_177 : f32 to vector<1x4xf32>
    %238 = arith.divf %236, %237 : vector<1x4xf32>
    %cst_178 = arith.constant dense<0.000000e+00> : vector<1x32xf32>
    %239 = tpu.matmul %238, %1, %cst_178 {dimension_numbers = #tpu.dot_dimension_numbers<[1], [0], [0], [1], [0, 0, 1, 1], [], []>} : vector<1x4xf32>, vector<4x32xf32>, vector<1x32xf32> -> vector<1x32xf32>
    %240 = vector.broadcast %239 : vector<1x32xf32> to vector<16x32xf32>
    %241 = arith.subf %231, %240 : vector<16x32xf32>
    %242 = arith.mulf %241, %241 : vector<16x32xf32>
    %cst_179 = arith.constant dense<0.000000e+00> : vector<32xf32>
    %243 = vector.multi_reduction <add>, %242, %cst_179 [0] : vector<16x32xf32> to vector<32xf32>
    %244 = vector.shape_cast %243 : vector<32xf32> to vector<1x32xf32>
    %cst_180 = arith.constant dense<0.000000e+00> : vector<1x4xf32>
    %245 = tpu.matmul %244, %0, %cst_180 {dimension_numbers = #tpu.dot_dimension_numbers<[1], [0], [0], [1], [0, 0, 1, 1], [], []>} : vector<1x32xf32>, vector<32x4xf32>, vector<1x4xf32> -> vector<1x4xf32>
    %cst_181 = arith.constant 1.280000e+02 : f32
    %246 = vector.broadcast %cst_181 : f32 to vector<1x4xf32>
    %247 = arith.divf %245, %246 : vector<1x4xf32>
    %cst_182 = arith.constant dense<0.000000e+00> : vector<1x32xf32>
    %248 = tpu.matmul %247, %1, %cst_182 {dimension_numbers = #tpu.dot_dimension_numbers<[1], [0], [0], [1], [0, 0, 1, 1], [], []>} : vector<1x4xf32>, vector<4x32xf32>, vector<1x32xf32> -> vector<1x32xf32>
    %cst_183 = arith.constant 9.99999974E-6 : f32
    %249 = vector.broadcast %cst_183 : f32 to vector<1x32xf32>
    %250 = arith.addf %248, %249 : vector<1x32xf32>
    %251 = math.rsqrt %250 : vector<1x32xf32>
    %252 = vector.broadcast %251 : vector<1x32xf32> to vector<16x32xf32>
    %253 = arith.mulf %241, %252 : vector<16x32xf32>
    %254 = vector.broadcast %232 : vector<1x32xf32> to vector<16x32xf32>
    %255 = arith.mulf %253, %254 : vector<16x32xf32>
    %256 = vector.broadcast %233 : vector<1x32xf32> to vector<16x32xf32>
    %257 = arith.addf %255, %256 : vector<16x32xf32>
    %258 = arith.addf %257, %177 : vector<16x32xf32>
    %cst_184 = arith.constant 0.000000e+00 : f32
    %259 = vector.broadcast %cst_184 : f32 to vector<16x32xf32>
    %260 = arith.maximumf %258, %259 : vector<16x32xf32>
    %c2_185 = arith.constant 2 : index
    %c0_186 = arith.constant 0 : index
    %261 = vector.load %arg12[%c2_185, %c0_186] : memref<20x32xf32, #tpu.memory_space<vmem>>, vector<16x32xf32>
    tpu.vector_store %arg12[%c2_185, %c0_186], %260 {strides = array<i32>} : memref<20x32xf32, #tpu.memory_space<vmem>>, vector<16x32xf32>,
    %c0_187 = arith.constant 0 : index
    %c0_188 = arith.constant 0 : index
    %262 = vector.load %arg12[%c0_187, %c0_188] : memref<20x32xf32, #tpu.memory_space<vmem>>, vector<16x32xf32>
    %c1_189 = arith.constant 1 : index
    %c0_190 = arith.constant 0 : index
    %263 = vector.load %arg12[%c1_189, %c0_190] : memref<20x32xf32, #tpu.memory_space<vmem>>, vector<16x32xf32>
    %c2_191 = arith.constant 2 : index
    %c0_192 = arith.constant 0 : index
    %264 = vector.load %arg12[%c2_191, %c0_192] : memref<20x32xf32, #tpu.memory_space<vmem>>, vector<16x32xf32>
    %c3_193 = arith.constant 3 : index
    %c0_194 = arith.constant 0 : index
    %265 = vector.load %arg12[%c3_193, %c0_194] : memref<20x32xf32, #tpu.memory_space<vmem>>, vector<16x32xf32>
    %c4_195 = arith.constant 4 : index
    %c0_196 = arith.constant 0 : index
    %266 = vector.load %arg12[%c4_195, %c0_196] : memref<20x32xf32, #tpu.memory_space<vmem>>, vector<16x32xf32>
    %267 = tpu.concatenate %262, %263, %264, %265, %266 in 1 : vector<16x32xf32>, vector<16x32xf32>, vector<16x32xf32>, vector<16x32xf32>, vector<16x32xf32> -> vector<16x160xf32>
    %c4_197 = arith.constant 4 : index
    %c0_198 = arith.constant 0 : index
    %c0_199 = arith.constant 0 : index
    %268 = vector.load %arg3[%c4_197, %c0_198, %c0_199] : memref<8x160x32xf32, #tpu.memory_space<vmem>>, vector<1x160x32xf32>
    %269 = vector.shape_cast %268 : vector<1x160x32xf32> to vector<160x32xf32>
    %cst_200 = arith.constant dense<0.000000e+00> : vector<16x32xf32>
    %270 = tpu.matmul %267, %269, %cst_200 {dimension_numbers = #tpu.dot_dimension_numbers<[1], [0], [0], [1], [0, 0, 1, 1], [], []>} : vector<16x160xf32>, vector<160x32xf32>, vector<16x32xf32> -> vector<16x32xf32>
    %c5_201 = arith.constant 5 : index
    %c0_202 = arith.constant 0 : index
    %271 = vector.load %arg4[%c5_201, %c0_202] : memref<9x32xf32, #tpu.memory_space<vmem>>, vector<1x32xf32>
    %272 = vector.broadcast %271 : vector<1x32xf32> to vector<16x32xf32>
    %273 = arith.addf %270, %272 : vector<16x32xf32>
    %c5_203 = arith.constant 5 : index
    %c0_204 = arith.constant 0 : index
    %274 = vector.load %arg5[%c5_203, %c0_204] : memref<9x32xf32, #tpu.memory_space<vmem>>, vector<1x32xf32>
    %c5_205 = arith.constant 5 : index
    %c0_206 = arith.constant 0 : index
    %275 = vector.load %arg6[%c5_205, %c0_206] : memref<9x32xf32, #tpu.memory_space<vmem>>, vector<1x32xf32>
    %cst_207 = arith.constant dense<0.000000e+00> : vector<32xf32>
    %276 = vector.multi_reduction <add>, %273, %cst_207 [0] : vector<16x32xf32> to vector<32xf32>
    %277 = vector.shape_cast %276 : vector<32xf32> to vector<1x32xf32>
    %cst_208 = arith.constant dense<0.000000e+00> : vector<1x4xf32>
    %278 = tpu.matmul %277, %0, %cst_208 {dimension_numbers = #tpu.dot_dimension_numbers<[1], [0], [0], [1], [0, 0, 1, 1], [], []>} : vector<1x32xf32>, vector<32x4xf32>, vector<1x4xf32> -> vector<1x4xf32>
    %cst_209 = arith.constant 1.280000e+02 : f32
    %279 = vector.broadcast %cst_209 : f32 to vector<1x4xf32>
    %280 = arith.divf %278, %279 : vector<1x4xf32>
    %cst_210 = arith.constant dense<0.000000e+00> : vector<1x32xf32>
    %281 = tpu.matmul %280, %1, %cst_210 {dimension_numbers = #tpu.dot_dimension_numbers<[1], [0], [0], [1], [0, 0, 1, 1], [], []>} : vector<1x4xf32>, vector<4x32xf32>, vector<1x32xf32> -> vector<1x32xf32>
    %282 = vector.broadcast %281 : vector<1x32xf32> to vector<16x32xf32>
    %283 = arith.subf %273, %282 : vector<16x32xf32>
    %284 = arith.mulf %283, %283 : vector<16x32xf32>
    %cst_211 = arith.constant dense<0.000000e+00> : vector<32xf32>
    %285 = vector.multi_reduction <add>, %284, %cst_211 [0] : vector<16x32xf32> to vector<32xf32>
    %286 = vector.shape_cast %285 : vector<32xf32> to vector<1x32xf32>
    %cst_212 = arith.constant dense<0.000000e+00> : vector<1x4xf32>
    %287 = tpu.matmul %286, %0, %cst_212 {dimension_numbers = #tpu.dot_dimension_numbers<[1], [0], [0], [1], [0, 0, 1, 1], [], []>} : vector<1x32xf32>, vector<32x4xf32>, vector<1x4xf32> -> vector<1x4xf32>
    %cst_213 = arith.constant 1.280000e+02 : f32
    %288 = vector.broadcast %cst_213 : f32 to vector<1x4xf32>
    %289 = arith.divf %287, %288 : vector<1x4xf32>
    %cst_214 = arith.constant dense<0.000000e+00> : vector<1x32xf32>
    %290 = tpu.matmul %289, %1, %cst_214 {dimension_numbers = #tpu.dot_dimension_numbers<[1], [0], [0], [1], [0, 0, 1, 1], [], []>} : vector<1x4xf32>, vector<4x32xf32>, vector<1x32xf32> -> vector<1x32xf32>
    %cst_215 = arith.constant 9.99999974E-6 : f32
    %291 = vector.broadcast %cst_215 : f32 to vector<1x32xf32>
    %292 = arith.addf %290, %291 : vector<1x32xf32>
    %293 = math.rsqrt %292 : vector<1x32xf32>
    %294 = vector.broadcast %293 : vector<1x32xf32> to vector<16x32xf32>
    %295 = arith.mulf %283, %294 : vector<16x32xf32>
    %296 = vector.broadcast %274 : vector<1x32xf32> to vector<16x32xf32>
    %297 = arith.mulf %295, %296 : vector<16x32xf32>
    %298 = vector.broadcast %275 : vector<1x32xf32> to vector<16x32xf32>
    %299 = arith.addf %297, %298 : vector<16x32xf32>
    %cst_216 = arith.constant 0.000000e+00 : f32
    %300 = vector.broadcast %cst_216 : f32 to vector<16x32xf32>
    %301 = arith.maximumf %299, %300 : vector<16x32xf32>
    %c2_217 = arith.constant 2 : index
    %c0_218 = arith.constant 0 : index
    %302 = vector.load %arg12[%c2_217, %c0_218] : memref<20x32xf32, #tpu.memory_space<vmem>>, vector<16x32xf32>
    tpu.vector_store %arg12[%c2_217, %c0_218], %301 {strides = array<i32>} : memref<20x32xf32, #tpu.memory_space<vmem>>, vector<16x32xf32>,
    %c0_219 = arith.constant 0 : index
    %c0_220 = arith.constant 0 : index
    %303 = vector.load %arg12[%c0_219, %c0_220] : memref<20x32xf32, #tpu.memory_space<vmem>>, vector<16x32xf32>
    %c1_221 = arith.constant 1 : index
    %c0_222 = arith.constant 0 : index
    %304 = vector.load %arg12[%c1_221, %c0_222] : memref<20x32xf32, #tpu.memory_space<vmem>>, vector<16x32xf32>
    %c2_223 = arith.constant 2 : index
    %c0_224 = arith.constant 0 : index
    %305 = vector.load %arg12[%c2_223, %c0_224] : memref<20x32xf32, #tpu.memory_space<vmem>>, vector<16x32xf32>
    %c3_225 = arith.constant 3 : index
    %c0_226 = arith.constant 0 : index
    %306 = vector.load %arg12[%c3_225, %c0_226] : memref<20x32xf32, #tpu.memory_space<vmem>>, vector<16x32xf32>
    %c4_227 = arith.constant 4 : index
    %c0_228 = arith.constant 0 : index
    %307 = vector.load %arg12[%c4_227, %c0_228] : memref<20x32xf32, #tpu.memory_space<vmem>>, vector<16x32xf32>
    %308 = tpu.concatenate %303, %304, %305, %306, %307 in 1 : vector<16x32xf32>, vector<16x32xf32>, vector<16x32xf32>, vector<16x32xf32>, vector<16x32xf32> -> vector<16x160xf32>
    %c5_229 = arith.constant 5 : index
    %c0_230 = arith.constant 0 : index
    %c0_231 = arith.constant 0 : index
    %309 = vector.load %arg3[%c5_229, %c0_230, %c0_231] : memref<8x160x32xf32, #tpu.memory_space<vmem>>, vector<1x160x32xf32>
    %310 = vector.shape_cast %309 : vector<1x160x32xf32> to vector<160x32xf32>
    %cst_232 = arith.constant dense<0.000000e+00> : vector<16x32xf32>
    %311 = tpu.matmul %308, %310, %cst_232 {dimension_numbers = #tpu.dot_dimension_numbers<[1], [0], [0], [1], [0, 0, 1, 1], [], []>} : vector<16x160xf32>, vector<160x32xf32>, vector<16x32xf32> -> vector<16x32xf32>
    %c6_233 = arith.constant 6 : index
    %c0_234 = arith.constant 0 : index
    %312 = vector.load %arg4[%c6_233, %c0_234] : memref<9x32xf32, #tpu.memory_space<vmem>>, vector<1x32xf32>
    %313 = vector.broadcast %312 : vector<1x32xf32> to vector<16x32xf32>
    %314 = arith.addf %311, %313 : vector<16x32xf32>
    %c6_235 = arith.constant 6 : index
    %c0_236 = arith.constant 0 : index
    %315 = vector.load %arg5[%c6_235, %c0_236] : memref<9x32xf32, #tpu.memory_space<vmem>>, vector<1x32xf32>
    %c6_237 = arith.constant 6 : index
    %c0_238 = arith.constant 0 : index
    %316 = vector.load %arg6[%c6_237, %c0_238] : memref<9x32xf32, #tpu.memory_space<vmem>>, vector<1x32xf32>
    %cst_239 = arith.constant dense<0.000000e+00> : vector<32xf32>
    %317 = vector.multi_reduction <add>, %314, %cst_239 [0] : vector<16x32xf32> to vector<32xf32>
    %318 = vector.shape_cast %317 : vector<32xf32> to vector<1x32xf32>
    %cst_240 = arith.constant dense<0.000000e+00> : vector<1x4xf32>
    %319 = tpu.matmul %318, %0, %cst_240 {dimension_numbers = #tpu.dot_dimension_numbers<[1], [0], [0], [1], [0, 0, 1, 1], [], []>} : vector<1x32xf32>, vector<32x4xf32>, vector<1x4xf32> -> vector<1x4xf32>
    %cst_241 = arith.constant 1.280000e+02 : f32
    %320 = vector.broadcast %cst_241 : f32 to vector<1x4xf32>
    %321 = arith.divf %319, %320 : vector<1x4xf32>
    %cst_242 = arith.constant dense<0.000000e+00> : vector<1x32xf32>
    %322 = tpu.matmul %321, %1, %cst_242 {dimension_numbers = #tpu.dot_dimension_numbers<[1], [0], [0], [1], [0, 0, 1, 1], [], []>} : vector<1x4xf32>, vector<4x32xf32>, vector<1x32xf32> -> vector<1x32xf32>
    %323 = vector.broadcast %322 : vector<1x32xf32> to vector<16x32xf32>
    %324 = arith.subf %314, %323 : vector<16x32xf32>
    %325 = arith.mulf %324, %324 : vector<16x32xf32>
    %cst_243 = arith.constant dense<0.000000e+00> : vector<32xf32>
    %326 = vector.multi_reduction <add>, %325, %cst_243 [0] : vector<16x32xf32> to vector<32xf32>
    %327 = vector.shape_cast %326 : vector<32xf32> to vector<1x32xf32>
    %cst_244 = arith.constant dense<0.000000e+00> : vector<1x4xf32>
    %328 = tpu.matmul %327, %0, %cst_244 {dimension_numbers = #tpu.dot_dimension_numbers<[1], [0], [0], [1], [0, 0, 1, 1], [], []>} : vector<1x32xf32>, vector<32x4xf32>, vector<1x4xf32> -> vector<1x4xf32>
    %cst_245 = arith.constant 1.280000e+02 : f32
    %329 = vector.broadcast %cst_245 : f32 to vector<1x4xf32>
    %330 = arith.divf %328, %329 : vector<1x4xf32>
    %cst_246 = arith.constant dense<0.000000e+00> : vector<1x32xf32>
    %331 = tpu.matmul %330, %1, %cst_246 {dimension_numbers = #tpu.dot_dimension_numbers<[1], [0], [0], [1], [0, 0, 1, 1], [], []>} : vector<1x4xf32>, vector<4x32xf32>, vector<1x32xf32> -> vector<1x32xf32>
    %cst_247 = arith.constant 9.99999974E-6 : f32
    %332 = vector.broadcast %cst_247 : f32 to vector<1x32xf32>
    %333 = arith.addf %331, %332 : vector<1x32xf32>
    %334 = math.rsqrt %333 : vector<1x32xf32>
    %335 = vector.broadcast %334 : vector<1x32xf32> to vector<16x32xf32>
    %336 = arith.mulf %324, %335 : vector<16x32xf32>
    %337 = vector.broadcast %315 : vector<1x32xf32> to vector<16x32xf32>
    %338 = arith.mulf %336, %337 : vector<16x32xf32>
    %339 = vector.broadcast %316 : vector<1x32xf32> to vector<16x32xf32>
    %340 = arith.addf %338, %339 : vector<16x32xf32>
    %341 = arith.addf %340, %260 : vector<16x32xf32>
    %cst_248 = arith.constant 0.000000e+00 : f32
    %342 = vector.broadcast %cst_248 : f32 to vector<16x32xf32>
    %343 = arith.maximumf %341, %342 : vector<16x32xf32>
    %c2_249 = arith.constant 2 : index
    %c0_250 = arith.constant 0 : index
    %344 = vector.load %arg12[%c2_249, %c0_250] : memref<20x32xf32, #tpu.memory_space<vmem>>, vector<16x32xf32>
    tpu.vector_store %arg12[%c2_249, %c0_250], %343 {strides = array<i32>} : memref<20x32xf32, #tpu.memory_space<vmem>>, vector<16x32xf32>,
    %c0_251 = arith.constant 0 : index
    %c0_252 = arith.constant 0 : index
    %345 = vector.load %arg12[%c0_251, %c0_252] : memref<20x32xf32, #tpu.memory_space<vmem>>, vector<16x32xf32>
    %c1_253 = arith.constant 1 : index
    %c0_254 = arith.constant 0 : index
    %346 = vector.load %arg12[%c1_253, %c0_254] : memref<20x32xf32, #tpu.memory_space<vmem>>, vector<16x32xf32>
    %c2_255 = arith.constant 2 : index
    %c0_256 = arith.constant 0 : index
    %347 = vector.load %arg12[%c2_255, %c0_256] : memref<20x32xf32, #tpu.memory_space<vmem>>, vector<16x32xf32>
    %c3_257 = arith.constant 3 : index
    %c0_258 = arith.constant 0 : index
    %348 = vector.load %arg12[%c3_257, %c0_258] : memref<20x32xf32, #tpu.memory_space<vmem>>, vector<16x32xf32>
    %c4_259 = arith.constant 4 : index
    %c0_260 = arith.constant 0 : index
    %349 = vector.load %arg12[%c4_259, %c0_260] : memref<20x32xf32, #tpu.memory_space<vmem>>, vector<16x32xf32>
    %350 = tpu.concatenate %345, %346, %347, %348, %349 in 1 : vector<16x32xf32>, vector<16x32xf32>, vector<16x32xf32>, vector<16x32xf32>, vector<16x32xf32> -> vector<16x160xf32>
    %c6_261 = arith.constant 6 : index
    %c0_262 = arith.constant 0 : index
    %c0_263 = arith.constant 0 : index
    %351 = vector.load %arg3[%c6_261, %c0_262, %c0_263] : memref<8x160x32xf32, #tpu.memory_space<vmem>>, vector<1x160x32xf32>
    %352 = vector.shape_cast %351 : vector<1x160x32xf32> to vector<160x32xf32>
    %cst_264 = arith.constant dense<0.000000e+00> : vector<16x32xf32>
    %353 = tpu.matmul %350, %352, %cst_264 {dimension_numbers = #tpu.dot_dimension_numbers<[1], [0], [0], [1], [0, 0, 1, 1], [], []>} : vector<16x160xf32>, vector<160x32xf32>, vector<16x32xf32> -> vector<16x32xf32>
    %c7_265 = arith.constant 7 : index
    %c0_266 = arith.constant 0 : index
    %354 = vector.load %arg4[%c7_265, %c0_266] : memref<9x32xf32, #tpu.memory_space<vmem>>, vector<1x32xf32>
    %355 = vector.broadcast %354 : vector<1x32xf32> to vector<16x32xf32>
    %356 = arith.addf %353, %355 : vector<16x32xf32>
    %c7_267 = arith.constant 7 : index
    %c0_268 = arith.constant 0 : index
    %357 = vector.load %arg5[%c7_267, %c0_268] : memref<9x32xf32, #tpu.memory_space<vmem>>, vector<1x32xf32>
    %c7_269 = arith.constant 7 : index
    %c0_270 = arith.constant 0 : index
    %358 = vector.load %arg6[%c7_269, %c0_270] : memref<9x32xf32, #tpu.memory_space<vmem>>, vector<1x32xf32>
    %cst_271 = arith.constant dense<0.000000e+00> : vector<32xf32>
    %359 = vector.multi_reduction <add>, %356, %cst_271 [0] : vector<16x32xf32> to vector<32xf32>
    %360 = vector.shape_cast %359 : vector<32xf32> to vector<1x32xf32>
    %cst_272 = arith.constant dense<0.000000e+00> : vector<1x4xf32>
    %361 = tpu.matmul %360, %0, %cst_272 {dimension_numbers = #tpu.dot_dimension_numbers<[1], [0], [0], [1], [0, 0, 1, 1], [], []>} : vector<1x32xf32>, vector<32x4xf32>, vector<1x4xf32> -> vector<1x4xf32>
    %cst_273 = arith.constant 1.280000e+02 : f32
    %362 = vector.broadcast %cst_273 : f32 to vector<1x4xf32>
    %363 = arith.divf %361, %362 : vector<1x4xf32>
    %cst_274 = arith.constant dense<0.000000e+00> : vector<1x32xf32>
    %364 = tpu.matmul %363, %1, %cst_274 {dimension_numbers = #tpu.dot_dimension_numbers<[1], [0], [0], [1], [0, 0, 1, 1], [], []>} : vector<1x4xf32>, vector<4x32xf32>, vector<1x32xf32> -> vector<1x32xf32>
    %365 = vector.broadcast %364 : vector<1x32xf32> to vector<16x32xf32>
    %366 = arith.subf %356, %365 : vector<16x32xf32>
    %367 = arith.mulf %366, %366 : vector<16x32xf32>
    %cst_275 = arith.constant dense<0.000000e+00> : vector<32xf32>
    %368 = vector.multi_reduction <add>, %367, %cst_275 [0] : vector<16x32xf32> to vector<32xf32>
    %369 = vector.shape_cast %368 : vector<32xf32> to vector<1x32xf32>
    %cst_276 = arith.constant dense<0.000000e+00> : vector<1x4xf32>
    %370 = tpu.matmul %369, %0, %cst_276 {dimension_numbers = #tpu.dot_dimension_numbers<[1], [0], [0], [1], [0, 0, 1, 1], [], []>} : vector<1x32xf32>, vector<32x4xf32>, vector<1x4xf32> -> vector<1x4xf32>
    %cst_277 = arith.constant 1.280000e+02 : f32
    %371 = vector.broadcast %cst_277 : f32 to vector<1x4xf32>
    %372 = arith.divf %370, %371 : vector<1x4xf32>
    %cst_278 = arith.constant dense<0.000000e+00> : vector<1x32xf32>
    %373 = tpu.matmul %372, %1, %cst_278 {dimension_numbers = #tpu.dot_dimension_numbers<[1], [0], [0], [1], [0, 0, 1, 1], [], []>} : vector<1x4xf32>, vector<4x32xf32>, vector<1x32xf32> -> vector<1x32xf32>
    %cst_279 = arith.constant 9.99999974E-6 : f32
    %374 = vector.broadcast %cst_279 : f32 to vector<1x32xf32>
    %375 = arith.addf %373, %374 : vector<1x32xf32>
    %376 = math.rsqrt %375 : vector<1x32xf32>
    %377 = vector.broadcast %376 : vector<1x32xf32> to vector<16x32xf32>
    %378 = arith.mulf %366, %377 : vector<16x32xf32>
    %379 = vector.broadcast %357 : vector<1x32xf32> to vector<16x32xf32>
    %380 = arith.mulf %378, %379 : vector<16x32xf32>
    %381 = vector.broadcast %358 : vector<1x32xf32> to vector<16x32xf32>
    %382 = arith.addf %380, %381 : vector<16x32xf32>
    %cst_280 = arith.constant 0.000000e+00 : f32
    %383 = vector.broadcast %cst_280 : f32 to vector<16x32xf32>
    %384 = arith.maximumf %382, %383 : vector<16x32xf32>
    %c2_281 = arith.constant 2 : index
    %c0_282 = arith.constant 0 : index
    %385 = vector.load %arg12[%c2_281, %c0_282] : memref<20x32xf32, #tpu.memory_space<vmem>>, vector<16x32xf32>
    tpu.vector_store %arg12[%c2_281, %c0_282], %384 {strides = array<i32>} : memref<20x32xf32, #tpu.memory_space<vmem>>, vector<16x32xf32>,
    %c0_283 = arith.constant 0 : index
    %c0_284 = arith.constant 0 : index
    %386 = vector.load %arg12[%c0_283, %c0_284] : memref<20x32xf32, #tpu.memory_space<vmem>>, vector<16x32xf32>
    %c1_285 = arith.constant 1 : index
    %c0_286 = arith.constant 0 : index
    %387 = vector.load %arg12[%c1_285, %c0_286] : memref<20x32xf32, #tpu.memory_space<vmem>>, vector<16x32xf32>
    %c2_287 = arith.constant 2 : index
    %c0_288 = arith.constant 0 : index
    %388 = vector.load %arg12[%c2_287, %c0_288] : memref<20x32xf32, #tpu.memory_space<vmem>>, vector<16x32xf32>
    %c3_289 = arith.constant 3 : index
    %c0_290 = arith.constant 0 : index
    %389 = vector.load %arg12[%c3_289, %c0_290] : memref<20x32xf32, #tpu.memory_space<vmem>>, vector<16x32xf32>
    %c4_291 = arith.constant 4 : index
    %c0_292 = arith.constant 0 : index
    %390 = vector.load %arg12[%c4_291, %c0_292] : memref<20x32xf32, #tpu.memory_space<vmem>>, vector<16x32xf32>
    %391 = tpu.concatenate %386, %387, %388, %389, %390 in 1 : vector<16x32xf32>, vector<16x32xf32>, vector<16x32xf32>, vector<16x32xf32>, vector<16x32xf32> -> vector<16x160xf32>
    %c7_293 = arith.constant 7 : index
    %c0_294 = arith.constant 0 : index
    %c0_295 = arith.constant 0 : index
    %392 = vector.load %arg3[%c7_293, %c0_294, %c0_295] : memref<8x160x32xf32, #tpu.memory_space<vmem>>, vector<1x160x32xf32>
    %393 = vector.shape_cast %392 : vector<1x160x32xf32> to vector<160x32xf32>
    %cst_296 = arith.constant dense<0.000000e+00> : vector<16x32xf32>
    %394 = tpu.matmul %391, %393, %cst_296 {dimension_numbers = #tpu.dot_dimension_numbers<[1], [0], [0], [1], [0, 0, 1, 1], [], []>} : vector<16x160xf32>, vector<160x32xf32>, vector<16x32xf32> -> vector<16x32xf32>
    %c8_297 = arith.constant 8 : index
    %c0_298 = arith.constant 0 : index
    %395 = vector.load %arg4[%c8_297, %c0_298] : memref<9x32xf32, #tpu.memory_space<vmem>>, vector<1x32xf32>
    %396 = vector.broadcast %395 : vector<1x32xf32> to vector<16x32xf32>
    %397 = arith.addf %394, %396 : vector<16x32xf32>
    %c8_299 = arith.constant 8 : index
    %c0_300 = arith.constant 0 : index
    %398 = vector.load %arg5[%c8_299, %c0_300] : memref<9x32xf32, #tpu.memory_space<vmem>>, vector<1x32xf32>
    %c8_301 = arith.constant 8 : index
    %c0_302 = arith.constant 0 : index
    %399 = vector.load %arg6[%c8_301, %c0_302] : memref<9x32xf32, #tpu.memory_space<vmem>>, vector<1x32xf32>
    %cst_303 = arith.constant dense<0.000000e+00> : vector<32xf32>
    %400 = vector.multi_reduction <add>, %397, %cst_303 [0] : vector<16x32xf32> to vector<32xf32>
    %401 = vector.shape_cast %400 : vector<32xf32> to vector<1x32xf32>
    %cst_304 = arith.constant dense<0.000000e+00> : vector<1x4xf32>
    %402 = tpu.matmul %401, %0, %cst_304 {dimension_numbers = #tpu.dot_dimension_numbers<[1], [0], [0], [1], [0, 0, 1, 1], [], []>} : vector<1x32xf32>, vector<32x4xf32>, vector<1x4xf32> -> vector<1x4xf32>
    %cst_305 = arith.constant 1.280000e+02 : f32
    %403 = vector.broadcast %cst_305 : f32 to vector<1x4xf32>
    %404 = arith.divf %402, %403 : vector<1x4xf32>
    %cst_306 = arith.constant dense<0.000000e+00> : vector<1x32xf32>
    %405 = tpu.matmul %404, %1, %cst_306 {dimension_numbers = #tpu.dot_dimension_numbers<[1], [0], [0], [1], [0, 0, 1, 1], [], []>} : vector<1x4xf32>, vector<4x32xf32>, vector<1x32xf32> -> vector<1x32xf32>
    %406 = vector.broadcast %405 : vector<1x32xf32> to vector<16x32xf32>
    %407 = arith.subf %397, %406 : vector<16x32xf32>
    %408 = arith.mulf %407, %407 : vector<16x32xf32>
    %cst_307 = arith.constant dense<0.000000e+00> : vector<32xf32>
    %409 = vector.multi_reduction <add>, %408, %cst_307 [0] : vector<16x32xf32> to vector<32xf32>
    %410 = vector.shape_cast %409 : vector<32xf32> to vector<1x32xf32>
    %cst_308 = arith.constant dense<0.000000e+00> : vector<1x4xf32>
    %411 = tpu.matmul %410, %0, %cst_308 {dimension_numbers = #tpu.dot_dimension_numbers<[1], [0], [0], [1], [0, 0, 1, 1], [], []>} : vector<1x32xf32>, vector<32x4xf32>, vector<1x4xf32> -> vector<1x4xf32>
    %cst_309 = arith.constant 1.280000e+02 : f32
    %412 = vector.broadcast %cst_309 : f32 to vector<1x4xf32>
    %413 = arith.divf %411, %412 : vector<1x4xf32>
    %cst_310 = arith.constant dense<0.000000e+00> : vector<1x32xf32>
    %414 = tpu.matmul %413, %1, %cst_310 {dimension_numbers = #tpu.dot_dimension_numbers<[1], [0], [0], [1], [0, 0, 1, 1], [], []>} : vector<1x4xf32>, vector<4x32xf32>, vector<1x32xf32> -> vector<1x32xf32>
    %cst_311 = arith.constant 9.99999974E-6 : f32
    %415 = vector.broadcast %cst_311 : f32 to vector<1x32xf32>
    %416 = arith.addf %414, %415 : vector<1x32xf32>
    %417 = math.rsqrt %416 : vector<1x32xf32>
    %418 = vector.broadcast %417 : vector<1x32xf32> to vector<16x32xf32>
    %419 = arith.mulf %407, %418 : vector<16x32xf32>
    %420 = vector.broadcast %398 : vector<1x32xf32> to vector<16x32xf32>
    %421 = arith.mulf %419, %420 : vector<16x32xf32>
    %422 = vector.broadcast %399 : vector<1x32xf32> to vector<16x32xf32>
    %423 = arith.addf %421, %422 : vector<16x32xf32>
    %424 = arith.addf %423, %343 : vector<16x32xf32>
    %cst_312 = arith.constant 0.000000e+00 : f32
    %425 = vector.broadcast %cst_312 : f32 to vector<16x32xf32>
    %426 = arith.maximumf %424, %425 : vector<16x32xf32>
    %c0_313 = arith.constant 0 : index
    %c0_314 = arith.constant 0 : index
    %c0_315 = arith.constant 0 : index
    %427 = vector.load %arg10[%c0_313, %c0_314, %c0_315] : memref<1x16x32xf32, #tpu.memory_space<vmem>>, vector<1x16x32xf32>
    %428 = vector.shape_cast %427 : vector<1x16x32xf32> to vector<16x32xf32>
    %429 = vector.shape_cast %426 : vector<16x32xf32> to vector<1x16x32xf32>
    tpu.vector_store %arg10[%c0_313, %c0_314, %c0_315], %429 {strides = array<i32>} : memref<1x16x32xf32, #tpu.memory_space<vmem>>, vector<1x16x32xf32>,
    return
  }
  func.func @transform_0(%arg0: i32) -> (i32, i32, i32) {
    %c0_i32 = arith.constant 0 : i32
    %c0_i32_0 = arith.constant 0 : i32
    %c0_i32_1 = arith.constant 0 : i32
    return %arg0, %c0_i32, %c0_i32_0 : i32, i32, i32
  }
  func.func @transform_1(%arg0: i32) -> (i32, i32) {
    %c0_i32 = arith.constant 0 : i32
    %c0_i32_0 = arith.constant 0 : i32
    %c0_i32_1 = arith.constant 0 : i32
    return %c0_i32, %c0_i32_0 : i32, i32
  }
  func.func @transform_2(%arg0: i32) -> (i32, i32, i32) {
    %c0_i32 = arith.constant 0 : i32
    %c0_i32_0 = arith.constant 0 : i32
    %c0_i32_1 = arith.constant 0 : i32
    %c0_i32_2 = arith.constant 0 : i32
    return %c0_i32, %c0_i32_0, %c0_i32_1 : i32, i32, i32
  }
  func.func @transform_3(%arg0: i32) -> (i32, i32) {
    %c0_i32 = arith.constant 0 : i32
    %c0_i32_0 = arith.constant 0 : i32
    %c0_i32_1 = arith.constant 0 : i32
    return %c0_i32, %c0_i32_0 : i32, i32
  }
  func.func @transform_4(%arg0: i32) -> (i32, i32) {
    %c0_i32 = arith.constant 0 : i32
    %c0_i32_0 = arith.constant 0 : i32
    %c0_i32_1 = arith.constant 0 : i32
    return %c0_i32, %c0_i32_0 : i32, i32
  }
  func.func @transform_5(%arg0: i32) -> (i32, i32) {
    %c0_i32 = arith.constant 0 : i32
    %c0_i32_0 = arith.constant 0 : i32
    %c0_i32_1 = arith.constant 0 : i32
    return %c0_i32, %c0_i32_0 : i32, i32
  }
  func.func @transform_6(%arg0: i32) -> (i32, i32) {
    %c0_i32 = arith.constant 0 : i32
    %c0_i32_0 = arith.constant 0 : i32
    %c0_i32_1 = arith.constant 0 : i32
    return %c0_i32, %c0_i32_0 : i32, i32
  }
  func.func @transform_7(%arg0: i32) -> (i32, i32) {
    %c0_i32 = arith.constant 0 : i32
    %c0_i32_0 = arith.constant 0 : i32
    %c0_i32_1 = arith.constant 0 : i32
    return %c0_i32, %c0_i32_0 : i32, i32
  }
  func.func @transform_8(%arg0: i32) -> (i32, i32, i32) {
    %c0_i32 = arith.constant 0 : i32
    %c0_i32_0 = arith.constant 0 : i32
    %c0_i32_1 = arith.constant 0 : i32
    return %arg0, %c0_i32, %c0_i32_0 : i32, i32, i32
  }
  func.func @transform_9(%arg0: i32) -> (i32, i32, i32) {
    %c0_i32 = arith.constant 0 : i32
    %c0_i32_0 = arith.constant 0 : i32
    %c0_i32_1 = arith.constant 0 : i32
    return %arg0, %c0_i32, %c0_i32_0 : i32, i32, i32
  }
}

</mosaic_0001>

<bundles_post_ra>
// kernel: tpu_custom_call.1
= control target key start
LH: loop header
LB: loop body
LE: loop exit
PB: predicated region body
PF: predicated region fallthrough
CT: control target
= control target key end

     0   :  { %s8680_s0 = inlined_call_operand.vmem [shape: f32[2,16,1], index: 0, kind: input, shape index: {}]   ;;  %s8681_s1 = inlined_call_operand.vmem [shape: f32[792,32], index: 1, kind: input, shape index: {}]   ;;  %s8682_s2 = inlined_call_operand.vmem [shape: f32[8,160,32], index: 2, kind: input, shape index: {}]   ;;  %s8683_s3 = inlined_call_operand.vmem [shape: f32[9,32], index: 3, kind: input, shape index: {}]   ;;  %s8684_s4 = inlined_call_operand.vmem [shape: f32[9,32], index: 4, kind: input, shape index: {}]   ;;  %s8685_s5 = inlined_call_operand.vmem [shape: f32[9,32], index: 5, kind: input, shape index: {}]   ;;  %s8686_s6 = inlined_call_operand.vmem [shape: f32[32,4], index: 6, kind: input, shape index: {}]   ;;  %s8687_s7 = inlined_call_operand.vmem [shape: f32[4,32], index: 7, kind: input, shape index: {}]   ;;  %s8688_s8 = inlined_call_operand.hbm [shape: f32[2,16,72], index: 8, kind: output, shape index: {0}]   ;;  %s8689_s9 = inlined_call_operand.hbm [shape: f32[2,16,32], index: 9, kind: output, shape index: {1}]  }
   0x1   :  { %8692 = sst [smem:[#allocation11_spill]] %s8680_s0 }
   0x2   :  { %15 = vsyncpa [#allocation5], 0 }
   0x3   :  { %17 = vsyncpa [#allocation5 + $0x1], 0 }
   0x4   :  { %18 = vsyncpa [#allocation7], 0 }
   0x5   :  { %20 = vsyncpa [#allocation7 + $0x1], 0  ;;  %s6927_s30 = smov 0   ;;  %s6929_s10 = smov 0  }
   0x6   :  { %s6931_s11 = smov 0   ;;  %s6933_s12 = smov 0  }
   0x7 LB: > { %s6948_s13 = sadd.s32 4294967295, %s6857_s12   ;;  %s5398_s14 = sadd.s32 4294967294, %s6857_s12   ;;  %s6857_s12 = sphi %s6933_s12, %s8704_s12   ;;  %s6853_s11 = sphi %s6931_s11, %s8703_s11   ;;  %s6849_s10 = sphi %s6929_s10, %s8702_s10   ;;  %s6845_s30 = sphi %s6927_s30, %s8701_s30  }
   0x8   : > { %s6952_s15 = sadd.s32 1, %s6857_s12   ;;  %s206_s16 = sadd.s32 1, %s6853_s11 }
   0x9   : > { %s203_s17 = ssub.s32 %s6857_s12, %s6952_s15  ;;  %p216_p0 = scmp.ne.s32.totalorder %s6853_s11, %s6849_s10 }
   0xa   : > { %p204_p1 = scmp.eq.s32.totalorder %s203_s17, 0  ;;  %p217_p2 = scmp.eq.s32.totalorder %s6948_s13, 1 }
   0xb   : > { %p222_p3 = scmp.ne.s32.totalorder %s6849_s10, %s6845_s30  ;;  %p223_p4 = scmp.eq.s32.totalorder %s5398_s14, 1 }
   0xc   : > { %s6963_s18 = scalar_select %p204_p1, %s6853_s11, %s206_s16  }
   0xd   : > { %p6965_p5 = por %p217_p2, %p216_p0  ;;  %p6969_p6 = por %p223_p4, %p222_p3 }
   0xe   : > { %8693 = sst [smem:[#allocation10_spill]] %s6963_s18  ;;  %p5401_p7 = scmp.ge.s32.totalorder %s6857_s12, 1 }
   0xf   : > { %p296_p8 = scmp.lt.s32.totalorder %s6857_s12, 3 }
  0x11   : > { %p297_p9 = pnand %p5401_p7, %p296_p8 }
  0x12   : > { %p337_p10 = scmp.lt.s32.totalorder (!%p297_p9), %s6948_s13, 1  ;;  %v6859_v0 = vmov (!%p297_p9), 0   ;;  %s8696_s0 = sld [smem:[#allocation11_spill]] (!%p297_p9)  ;;  %vm425_vm1 = vcmask (!%p297_p9), 588800   ;;  %v6860_v32 = vmov (!%p297_p9), 0.0   ;;  %vm431_vm3 = vcmask (!%p297_p9), 582656  }
  0x13   : > { %300 = sbr.rel (%p297_p9) target bundleno = 11593 (0x2d49), region = 52  ;;  %6712 = vset.pattern.permute.xlu0 (!%p297_p9), %v6859_v0  ;;  %6713 = vset.pattern.permute.xlu1 (!%p297_p9), %v6859_v0  ;;  %428 = vst.msk [vmem:[#allocation2] sm:$0xff] (!%p297_p9), %vm425_vm1, %v6860_v32  ;;  %429 = vst.msk [vmem:[#allocation2 + $0x8] sm:$0xff] (!%p297_p9), %vm425_vm1, %v6860_v32  ;;  %v581_v36 = vld [vmem:[%s8681_s1 + $0x80] sm:$0xff] (!%p297_p9)  ;;  %v582_v37 = vld [vmem:[%s8681_s1 + $0x88] sm:$0xff] (!%p297_p9)  ;;  %s7097_s26 = sand.u32 (!%p297_p9), 1, %s6849_s10  }
  0x14   : > { %430 = vst.msk [vmem:[#allocation2 + $0x10] sm:$0xff] (!%p297_p9), %vm425_vm1, %v6860_v32  ;;  %v565_v38 = vld [vmem:[%s8681_s1] sm:$0xff] (!%p297_p9)  ;;  %v6200_v39 = vpack.c.bf16 (!%p297_p9), %v582_v37, %v581_v36  ;;  %v566_v40 = vld [vmem:[%s8681_s1 + $0x8] sm:$0xff] (!%p297_p9)  ;;  %v583_v41 = vld [vmem:[%s8681_s1 + $0x90] sm:$0xff] (!%p297_p9)  ;;  %s8697_s24 = sshll.u32 (!%p297_p9), %s7097_s26, 4  ;;  %s6861_s27 = smov (!%p297_p9), 16  }
  0x15   : > { %432 = vst.msk [vmem:[#allocation2 + $0x18] sm:$0x3] (!%p297_p9), %vm431_vm3, %v6860_v32  ;;  %v584_v42 = vld [vmem:[%s8681_s1 + $0x98] sm:$0xff] (!%p297_p9)  ;;  %v6202_v43 = vpack.c.bf16 (!%p297_p9), %v566_v40, %v565_v38  ;;  %v567_v45 = vld [vmem:[%s8681_s1 + $0x10] sm:$0xff] (!%p297_p9)  ;;  %v585_v47 = vld [vmem:[%s8681_s1 + $0xa0] sm:$0xff] (!%p297_p9)  ;;  %s6863_s23 = smov (!%p297_p9), 88  }
  0x16   : > { %v6204_v44 = vpack.c.bf16 (!%p297_p9), %v584_v42, %v583_v41  ;;  %v568_v46 = vld [vmem:[%s8681_s1 + $0x18] sm:$0xff] (!%p297_p9)  ;;  %6201 = vmatprep.subr.bf16.mxu0 (!%p297_p9), %v6200_v39  ;;  %v586_v48 = vld [vmem:[%s8681_s1 + $0xa8] sm:$0xff] (!%p297_p9)  ;;  %v569_v51 = vld [vmem:[%s8681_s1 + $0x20] sm:$0xff] (!%p297_p9)  ;;  %vm433_vm8 = vcmask (!%p297_p9), 261120   ;;  %s6865_s17 = smov (!%p297_p9), 32   ;;  %s6870_s28 = smov (!%p297_p9), 80  }
  0x17   : > { %6203 = vmatpush3.bf16.msra.mxu0 (!%p297_p9), %v6202_v43  ;;  %v6206_v49 = vpack.c.bf16 (!%p297_p9), %v568_v46, %v567_v45  ;;  %v6208_v50 = vpack.c.bf16 (!%p297_p9), %v586_v48, %v585_v47  ;;  %v570_v52 = vld [vmem:[%s8681_s1 + $0x28] sm:$0xff] (!%p297_p9)  ;;  %v587_v53 = vld [vmem:[%s8681_s1 + $0xb0] sm:$0xff] (!%p297_p9)  ;;  %v588_v54 = vld [vmem:[%s8681_s1 + $0xb8] sm:$0xff] (!%p297_p9)  ;;  %434 = vst.msk [vmem:[#allocation3] sm:$0xff] (!%p297_p9), %vm433_vm8, %v6860_v32  ;;  %vm539_vm9 = vcmask (!%p297_p9), 130048   ;;  %vm542_vm10 = vcmask (!%p297_p9), 719872  }
  0x18   : > { %6205 = vmatprep.subr.bf16.mxu0 (!%p297_p9), %v6204_v44  ;;  %v613_v55 = vld [vmem:[%s8681_s1 + $0x180] sm:$0xff] (!%p297_p9)  ;;  %v614_v56 = vld [vmem:[%s8681_s1 + $0x188] sm:$0xff] (!%p297_p9)  ;;  %v6210_v57 = vpack.c.bf16 (!%p297_p9), %v570_v52, %v569_v51  ;;  %v571_v58 = vld [vmem:[%s8681_s1 + $0x30] sm:$0xff] (!%p297_p9)  ;;  %v6212_v62 = vpack.c.bf16 (!%p297_p9), %v588_v54, %v587_v53  ;;  %435 = vst.msk [vmem:[#allocation3 + $0x8] sm:$0xff] (!%p297_p9), %vm433_vm8, %v6860_v32  ;;  %vm550_vm11 = vcmask (!%p297_p9), 392192   ;;  %vm553_vm12 = vcmask (!%p297_p9), 982016  }
  0x19   : > { %v6232_v59 = vpack.c.bf16 (!%p297_p9), %v614_v56, %v613_v55  ;;  %v597_v60 = vld [vmem:[%s8681_s1 + $0x100] sm:$0xff] (!%p297_p9)  ;;  %v598_v61 = vld [vmem:[%s8681_s1 + $0x108] sm:$0xff] (!%p297_p9)  ;;  %v572_v63 = vld [vmem:[%s8681_s1 + $0x38] sm:$0xff] (!%p297_p9)  ;;  %vm547_vm13 = vcmask (!%p297_p9), 850944   ;;  %vm559_vm14 = vcmask (!%p297_p9), 64512   ;;  %vm562_vm15 = vcmask (!%p297_p9), 654336  }
  0x1a   : > { %s338_s21 = scalar_select %p337_p10, %s6948_s13, 1  ;;  %v6234_v0 = vpack.c.bf16 %v598_v61, %v597_v60  ;;  %v596_v36 = vld [vmem:[%s8681_s1 + $0xf8] sm:$0xff]  ;;  %v601_v37 = vld [vmem:[%s8681_s1 + $0x120] sm:$0xff]  ;;  %v602_v38 = vld [vmem:[%s8681_s1 + $0x128] sm:$0xff]  ;;  %vm1064_vm3 = vcmask 1043456  }
  0x1b   : > { %6207 = vmatpush3.bf16.msra.mxu0 %v6206_v49  ;;  %6233 = vmatprep.subr.bf16.mxu1 %v6232_v59  ;;  %v6242_v40 = vpack.c.bf16 %v602_v38, %v601_v37  ;;  %v579_v41 = vld [vmem:[%s8681_s1 + $0x70] sm:$0xff]  ;;  %v580_v42 = vld [vmem:[%s8681_s1 + $0x78] sm:$0xff]  ;;  %v645_v53 = vld [vmem:[%s8681_s1 + $0x280] sm:$0xff]  ;;  %s6873_s14 = smov 96  }
  0x1c   : > { %s5655_s22 = sshll.u32 %s338_s21, 4  ;;  %6209 = vmatprep.subr.bf16.mxu0 %v6208_v50  ;;  %6235 = vmatpush3.bf16.msra.mxu1 %v6234_v0  ;;  %v6230_v46 = vpack.c.bf16 %v580_v42, %v579_v41  ;;  %v619_v47 = vld [vmem:[%s8681_s1 + $0x1b0] sm:$0xff]  ;;  %v620_v48 = vld [vmem:[%s8681_s1 + $0x1b8] sm:$0xff]  ;;  %v646_v55 = vld [vmem:[%s8681_s1 + $0x288] sm:$0xff]  ;;  %s6864_s21 = smov 104  }
  0x1d   : > { %s341_s25 = scalar_lea.vmem %s8696_s0, %s5655_s22  ;;  %v6244_v50 = vpack.c.bf16 %v620_v48, %v619_v47  ;;  %v603_v51 = vld [vmem:[%s8681_s1 + $0x130] sm:$0xff]  ;;  %v604_v52 = vld [vmem:[%s8681_s1 + $0x138] sm:$0xff]  ;;  %v621_v59 = vld [vmem:[%s8681_s1 + $0x1c0] sm:$0xff]  ;;  %s6862_s22 = smov 72  }
  0x1e   : > { %v347_v1 = vld [vmem:[%s341_s25] sm:$0xff]  ;;  %v348_v2 = vld [vmem:[%s341_s25 + $0x8] sm:$0xff]  ;;  %s7132_s25 = scalar_lea.vmem [#allocation4], %s8697_s24  ;;  %v6246_v54 = vpack.c.bf16 %v604_v52, %v603_v51  ;;  %s6866_s0 = smov 48  }
  0x1f   : > { %v350_v3 = vmul.f32 0.1, %v347_v1  ;;  %v351_v4 = vmul.f32 0.1, %v348_v2  ;;  %v615_v1 = vld [vmem:[%s8681_s1 + $0x190] sm:$0xff]  ;;  %v616_v2 = vld [vmem:[%s8681_s1 + $0x198] sm:$0xff]  ;;  %6211 = vmatpush3.bf16.msra.mxu0 %v6210_v57  ;;  %v6264_v57 = vpack.c.bf16 %v646_v55, %v645_v53 }
  0x20   : > { %6213 = vmatprep.subr.bf16.mxu0 %v6212_v62  ;;  %v622_v60 = vld [vmem:[%s8681_s1 + $0x1c8] sm:$0xff]  ;;  %v605_v61 = vld [vmem:[%s8681_s1 + $0x140] sm:$0xff]  ;;  %s8690_s24 = smov 8   ;;  %v648_v55 = vld [vmem:[%s8681_s1 + $0x298] sm:$0xff] }
  0x21   : > { %6739 = vlog2.f32 %v350_v3  ;;  %v589_v3 = vld [vmem:[%s8681_s1 + $0xc0] sm:$0xff]  ;;  %v6248_v62 = vpack.c.bf16 %v622_v60, %v621_v59  ;;  %v630_v53 = vld [vmem:[%s8681_s1 + $0x208] sm:$0xff] }
  0x22   : > { %6741 = vlog2.f32 %v351_v4  ;;  %v590_v4 = vld [vmem:[%s8681_s1 + $0xc8] sm:$0xff]  ;;  %v629_v52 = vld [vmem:[%s8681_s1 + $0x200] sm:$0xff] }
  0x2b   : > { %v6740_v5 = vpop.eup %6739 }
  0x2c   : > { %v6742_v6 = vpop.eup %6741  ;;  %v353_v7 = vmul.f32 0.6931472, %v6740_v5  ;;  %v6236_v5 = vpack.c.bf16 %v616_v2, %v615_v1 }
  0x2d   : > { %v355_v8 = vmul.f32 0.6931472, %v6742_v6  ;;  %v599_v6 = vld [vmem:[%s8681_s1 + $0x110] sm:$0xff] }
  0x2e   : > { %v356_v9 = vmul.f32 1731.234, %v353_v7  ;;  %v600_v7 = vld [vmem:[%s8681_s1 + $0x118] sm:$0xff]  ;;  %6237 = vmatprep.subr.bf16.mxu1 %v6236_v5 }
  0x2f   : > { %v357_v10 = vmul.f32 1731.234, %v355_v8  ;;  %v6214_v8 = vpack.c.bf16 %v572_v63, %v571_v58  ;;  %v606_v63 = vld [vmem:[%s8681_s1 + $0x148] sm:$0xff] }
  0x30   : > { %v5406_v11 = vadd.f32 -2051.1487, %v356_v9  ;;  %v6238_v9 = vpack.c.bf16 %v600_v7, %v599_v6  ;;  %v6250_v0 = vpack.c.bf16 %v606_v63, %v605_v61  ;;  %v623_v6 = vld [vmem:[%s8681_s1 + $0x1d0] sm:$0xff]  ;;  %v624_v7 = vld [vmem:[%s8681_s1 + $0x1d8] sm:$0xff] }
  0x31   : > { %v5407_v12 = vadd.f32 -2051.1487, %v357_v10  ;;  %v6216_v10 = vpack.c.bf16 %v590_v4, %v589_v3  ;;  %6215 = vmatpush3.bf16.msra.mxu0 %v6214_v8  ;;  %v607_v8 = vld [vmem:[%s8681_s1 + $0x150] sm:$0xff]  ;;  %v632_v63 = vld [vmem:[%s8681_s1 + $0x218] sm:$0xff] }
  0x32   : > { %v361_v13 = vmul.f32 0.01, %v5406_v11  ;;  %6239 = vmatpush3.bf16.msra.mxu1 %v6238_v9  ;;  %v6252_v9 = vpack.c.bf16 %v624_v7, %v623_v6  ;;  %v633_v7 = vld [vmem:[%s8681_s1 + $0x220] sm:$0xff] }
  0x33   : > { %v362_v14 = vmul.f32 0.01, %v5407_v12  ;;  %6217 = vmatprep.subr.bf16.mxu0 %v6216_v10  ;;  %v608_v10 = vld [vmem:[%s8681_s1 + $0x158] sm:$0xff] }
  0x34   : > { %v363_v15 = vfloor.f32 %v361_v13  ;;  %v591_v13 = vld [vmem:[%s8681_s1 + $0xd0] sm:$0xff] }
  0x35   : > { %v364_v16 = vfloor.f32 %v362_v14  ;;  %v592_v14 = vld [vmem:[%s8681_s1 + $0xd8] sm:$0xff] }
  0x36   : > { %v6648_v17 = vtrunc.f32 %v363_v15  ;;  %v367_v18 = vmul.f32 100.0, %v363_v15 }
  0x37   : > { %v6650_v19 = vtrunc.f32 %v364_v16  ;;  %v368_v20 = vmul.f32 100.0, %v364_v16  ;;  %v6220_v16 = vpack.c.bf16 %v592_v14, %v591_v13  ;;  %v625_v13 = vld [vmem:[%s8681_s1 + $0x1e0] sm:$0xff]  ;;  %v626_v14 = vld [vmem:[%s8681_s1 + $0x1e8] sm:$0xff] }
  0x38   : > { %v6649_v21 = vcvt.f32.s32 %v6648_v17  ;;  %v369_v22 = vsub.f32 %v5406_v11, %v367_v18  ;;  %v573_v11 = vld [vmem:[%s8681_s1 + $0x40] sm:$0xff]  ;;  %v575_v17 = vld [vmem:[%s8681_s1 + $0x50] sm:$0xff]  ;;  %v576_v18 = vld [vmem:[%s8681_s1 + $0x58] sm:$0xff] }
  0x39   : > { %v6651_v23 = vcvt.f32.s32 %v6650_v19  ;;  %v370_v26 = vsub.f32 %v5407_v12, %v368_v20  ;;  %v574_v12 = vld [vmem:[%s8681_s1 + $0x48] sm:$0xff]  ;;  %v593_v19 = vld [vmem:[%s8681_s1 + $0xe0] sm:$0xff] }
  0x3a   : > { %394 = vperm.xlu0 %6712, %v6649_v21   ;;  %v375_v24 = vadd.s32 1, %v6649_v21  ;;  %v371_v25 = vmul.f32 0.01, %v369_v22  ;;  %v6218_v15 = vpack.c.bf16 %v574_v12, %v573_v11  ;;  %v594_v20 = vld [vmem:[%s8681_s1 + $0xe8] sm:$0xff]  ;;  %v6222_v21 = vpack.c.bf16 %v576_v18, %v575_v17 }
  0x3b   : > { %v376_v28 = vadd.s32 1, %v6651_v23  ;;  %v372_v31 = vmul.f32 0.01, %v370_v26  ;;  %v6224_v22 = vpack.c.bf16 %v594_v20, %v593_v19  ;;  %v381_v26 = vlaneseq }
  0x3c   : > { %v373_v27 = vsub.f32 1.0, %v371_v25  ;;  %vm377_vm0 = vcmp.lt.s32.totalorder %v375_v24, 71  ;;  %6219 = vmatpush3.bf16.msra.mxu0 %v6218_v15  ;;  %v6254_v12 = vpack.c.bf16 %v608_v10, %v607_v8  ;;  %v609_v15 = vld [vmem:[%s8681_s1 + $0x160] sm:$0xff]  ;;  %v6256_v17 = vpack.c.bf16 %v626_v14, %v625_v13  ;;  %v634_v8 = vld [vmem:[%s8681_s1 + $0x228] sm:$0xff]  ;;  %v652_v10 = vld [vmem:[%s8681_s1 + $0x2b8] sm:$0xff] }
  0x3d   : > { %v378_v29 = vsel %vm377_vm0, %v375_v24, 71  ;;  %vm379_vm2 = vcmp.lt.s32.totalorder %v376_v28, 71  ;;  %v374_v33 = vsub.f32 1.0, %v372_v31  ;;  %6221 = vmatprep.subr.bf16.mxu0 %v6220_v16  ;;  %v578_v24 = vld [vmem:[%s8681_s1 + $0x68] sm:$0xff]  ;;  %v617_v31 = vld [vmem:[%s8681_s1 + $0x1a0] sm:$0xff]  ;;  %v6274_v14 = vpack.c.bf16 %v634_v8, %v633_v7  ;;  %v644_v7 = vld [vmem:[%s8681_s1 + $0x278] sm:$0xff] }
  0x3e   : > { %403 = vperm.xlu1 %6713, %v373_v27   ;;  %v391_v30 = vsub.f32 1.0, %v373_v27  ;;  %384 = vperm.xlu0 %6712, %v378_v29   ;;  %v380_v34 = vsel %vm379_vm2, %v376_v28, 71  ;;  %v382_v28 = vand.u32 127, %v381_v26  ;;  %v610_v16 = vld [vmem:[%s8681_s1 + $0x168] sm:$0xff]  ;;  %vm669_vm0 = vcmask 195584  }
  0x3f   : > { %v392_v35 = vsub.f32 1.0, %v374_v33  ;;  %v6258_v18 = vpack.c.bf16 %v610_v16, %v609_v15  ;;  %vm6872_vm2 = vmmov 0  }
  0x40   : > { %6223 = vmatpush3.bf16.msra.mxu0 %v6222_v21 }
  0x41   : > { %6225 = vmatprep.subr.bf16.mxu0 %v6224_v22 }
  0x42   : > { %415 = vperm.xlu1 %6713, %v391_v30   ;;  %397 = vperm.xlu0 %6712, %v6651_v23   ;;  %v577_v23 = vld [vmem:[%s8681_s1 + $0x60] sm:$0xff] }
  0x43   : > { %v6226_v25 = vpack.c.bf16 %v578_v24, %v577_v23 }
  0x45   : > { %6227 = vmatpush3.bf16.msra.mxu0 %v6226_v25 }
  0x46   : > { %387 = vperm.xlu1 %6713, %v380_v34   ;;  %408 = vperm.xlu0 %6712, %v374_v33   ;;  %v618_v33 = vld [vmem:[%s8681_s1 + $0x1a8] sm:$0xff]  ;;  %v595_v34 = vld [vmem:[%s8681_s1 + $0xf0] sm:$0xff] }
  0x47   : > { %v6228_v39 = vpack.c.bf16 %v596_v36, %v595_v34  ;;  %v612_v34 = vld [vmem:[%s8681_s1 + $0x178] sm:$0xff] }
  0x49   : > { %6229 = vmatprep.subr.bf16.mxu0 %v6228_v39 }
  0x4a   : > { %420 = vperm.xlu1 %6713, %v392_v35   ;;  %v6240_v35 = vpack.c.bf16 %v618_v33, %v617_v31  ;;  %6231 = vmatpush3.bf16.msra.mxu0 %v6230_v46  ;;  %v611_v33 = vld [vmem:[%s8681_s1 + $0x170] sm:$0xff] }
  0x4b   : > { %6265 = vmatprep.subr.bf16.mxu0 %v6264_v57  ;;  %v6262_v36 = vpack.c.bf16 %v612_v34, %v611_v33 }
  0x4c   : > { %6241 = vmatprep.subr.bf16.mxu1 %v6240_v35 }
  0x4d   : > { %6243 = vmatpush3.bf16.msra.mxu1 %v6242_v40 }
  0x4e   : > { %6245 = vmatprep.subr.bf16.mxu1 %v6244_v50 }
  0x51   : > { %6247 = vmatpush3.bf16.msra.mxu1 %v6246_v54  ;;  %v647_v54 = vld [vmem:[%s8681_s1 + $0x290] sm:$0xff] }
  0x52   : > { %6249 = vmatprep.subr.bf16.mxu1 %v6248_v62  ;;  %v6268_v61 = vpack.c.bf16 %v648_v55, %v647_v54  ;;  %v631_v62 = vld [vmem:[%s8681_s1 + $0x210] sm:$0xff] }
  0x55   : > { %6251 = vmatpush3.bf16.msra.mxu1 %v6250_v0 }
  0x56   : > { %6253 = vmatprep.subr.bf16.mxu1 %v6252_v9  ;;  %v651_v9 = vld [vmem:[%s8681_s1 + $0x2b0] sm:$0xff] }
  0x57   : > { %v6276_v16 = vpack.c.bf16 %v652_v10, %v651_v9 }
  0x59   : > { %6255 = vmatpush3.bf16.msra.mxu1 %v6254_v12 }
  0x5a   : > { %6257 = vmatprep.subr.bf16.mxu1 %v6256_v17  ;;  %v635_v17 = vld [vmem:[%s8681_s1 + $0x230] sm:$0xff] }
  0x5d   : > { %6259 = vmatpush3.bf16.msra.mxu1 %v6258_v18  ;;  %v636_v18 = vld [vmem:[%s8681_s1 + $0x238] sm:$0xff] }
  0xb9   : > { %v395_v27 = vpop.permute.xlu0 %394 }
  0xba   : > { %vm399_vm4 = vcmp.eq.s32.totalorder %v382_v28, %v395_v27 }
  0xbd   : > { %v404_v29 = vpop.permute.xlu1 %403  ;;  %v385_v30 = vpop.permute.xlu0 %384 }
  0xbe   : > { %v411_v43 = vsel %vm399_vm4, %v404_v29, 0.0  ;;  %vm389_vm5 = vcmp.eq.s32.totalorder %v382_v28, %v385_v30  ;;  %v627_v29 = vld [vmem:[%s8681_s1 + $0x1f0] sm:$0xff]  ;;  %v628_v30 = vld [vmem:[%s8681_s1 + $0x1f8] sm:$0xff]  ;;  %vm1060_vm4 = vcmask 31744  }
  0xbf   : > { %v6260_v31 = vpack.c.bf16 %v628_v30, %v627_v29  ;;  %v638_v29 = vld [vmem:[%s8681_s1 + $0x248] sm:$0xff]  ;;  %v655_v30 = vld [vmem:[%s8681_s1 + $0x2d0] sm:$0xff] }
  0xc1   : > { %v416_v44 = vpop.permute.xlu1 %415  ;;  %v398_v45 = vpop.permute.xlu0 %397  ;;  %6261 = vmatprep.subr.bf16.mxu1 %v6260_v31  ;;  %v656_v31 = vld [vmem:[%s8681_s1 + $0x2d8] sm:$0xff] }
  0xc2   : > { %v423_v49 = vsel %vm389_vm5, %v416_v44, %v411_v43  ;;  %vm400_vm6 = vcmp.eq.s32.totalorder %v382_v28, %v398_v45  ;;  %6263 = vmatpush3.bf16.msra.mxu1 %v6262_v36  ;;  %v661_v43 = vld [vmem:[%s8681_s1 + $0x300] sm:$0xff]  ;;  %v662_v44 = vld [vmem:[%s8681_s1 + $0x308] sm:$0xff]  ;;  %vm436_vm5 = vcmask 257024  }
  0xc3   : > { %426 = vst.msk [vmem:[%s7132_s25] sm:$0xff] %vm425_vm1, %v423_v49  ;;  %438 = vst.msk [vmem:[#allocation2 + $0x5] sm:$0xff] %vm425_vm1, %v423_v49  ;;  %v7213_v45 = vpack.c.bf16 %v662_v44, %v661_v43 }
  0xc4   : > { %437 = vst.msk [vmem:[#allocation3 + $0x10] sm:$0xf] %vm436_vm5, %v6860_v32 }
  0xc5   : > { %v388_v56 = vpop.permute.xlu1 %387  ;;  %v409_v58 = vpop.permute.xlu0 %408  ;;  %6297 = vmatprep.subr.bf16.mxu1 %v7213_v45 }
  0xc6   : > { %vm390_vm7 = vcmp.eq.s32.totalorder %v382_v28, %v388_v56  ;;  %v412_v1 = vsel %vm400_vm6, %v409_v58, 0.0  ;;  %v6266_v58 = vpack.c.bf16 %v630_v53, %v629_v52  ;;  %vm1363_vm6 = vcmask 785408  }
  0xc9   : > { %v421_v2 = vpop.permute.xlu1 %420 }
  0xca   : > { %v424_v3 = vsel %vm390_vm7, %v421_v2, %v412_v1  ;;  %v444_v4 = vld [vmem:[#allocation2 + $0x2] sm:$0xff] }
  0xcb   : > { %v442_v5 = vld [vmem:[#allocation2 + $0x1] sm:$0xff]  ;;  %427 = vst.msk [vmem:[%s7132_s25 + $0x8] sm:$0xff] %vm425_vm1, %v424_v3  ;;  %439 = vst.msk [vmem:[#allocation2 + $0xd] sm:$0xff] %vm425_vm1, %v424_v3  ;;  %469 = vrot.lane.b32.xlu1 %v444_v4, %s6861_s27 }
  0xcc   : > { %461 = vrot.lane.b32.xlu0 %v442_v5, %s6862_s22  ;;  %v446_v11 = vld [vmem:[#allocation2 + $0x3] sm:$0xff]  ;;  %v6270_v5 = vpack.c.bf16 %v632_v63, %v631_v62 }
  0xcd   : > { %v450_v22 = vld [vmem:[#allocation2 + $0x5] sm:$0xff] }
  0xce   : > { %v448_v35 = vld [vmem:[#allocation2 + $0x4] sm:$0xff] }
  0xcf   : > { %v440_v60 = vld [vmem:[#allocation2] sm:$0xff]  ;;  %v650_v2 = vld [vmem:[%s8681_s1 + $0x2a8] sm:$0xff] }
  0xd0   : > { %477 = vrot.lane.b32.xlu0 %v446_v11, %s6863_s23  ;;  %v649_v1 = vld [vmem:[%s8681_s1 + $0x2a0] sm:$0xff] }
  0xd1   : > { %v6272_v6 = vpack.c.bf16 %v650_v2, %v649_v1  ;;  %v641_v63 = vld [vmem:[%s8681_s1 + $0x260] sm:$0xff]  ;;  %v659_v2 = vld [vmem:[%s8681_s1 + $0x2f0] sm:$0xff] }
  0xd2   : > { %v445_v19 = vld [vmem:[#allocation2 + $0xa] sm:$0xff]  ;;  %v458_v49 = vld [vmem:[#allocation2 + $0x12] sm:$0xff] }
  0xd3   : > { %v443_v20 = vld [vmem:[#allocation2 + $0x9] sm:$0xff]  ;;  %v457_v48 = vld [vmem:[#allocation2 + $0x11] sm:$0xff] }
  0xd4   : > { %v451_v21 = vld [vmem:[#allocation2 + $0xd] sm:$0xff]  ;;  %471 = vrot.lane.b32.xlu0 %v445_v19, %s6861_s27  ;;  %463 = vrot.lane.b32.xlu1 %v443_v20, %s6862_s22  ;;  %s6867_s22 = smov 120  }
  0xd5   : > { %v6714_v23 = vpack.i.bf16 %v451_v21, %v450_v22  ;;  %v447_v24 = vld [vmem:[#allocation2 + $0xb] sm:$0xff] }
  0xd6   : > { %v449_v25 = vld [vmem:[#allocation2 + $0xc] sm:$0xff] }
  0xd7   : > { %v452_v27 = vld [vmem:[#allocation2 + $0x6] sm:$0xff]  ;;  %v453_v28 = vld [vmem:[#allocation2 + $0xe] sm:$0xff]  ;;  %v6724_v37 = vpack.i.bf16 %v449_v25, %v448_v35 }
  0xd8   : > { %6715 = vrot.lane.b32.xlu0 %v6714_v23, %s6864_s21  ;;  %479 = vrot.lane.b32.xlu1 %v447_v24, %s6863_s23  ;;  %v6719_v38 = vpack.i.bf16 %v453_v28, %v452_v27  ;;  %v454_v39 = vld [vmem:[#allocation2 + $0x7] sm:$0xff]  ;;  %v455_v40 = vld [vmem:[#allocation2 + $0xf] sm:$0xff]  ;;  %s6868_s21 = smov 64   ;;  %v6278_v24 = vpack.c.bf16 %v636_v18, %v635_v17  ;;  %s6874_s23 = smov [#allocation4]  }
  0xd9   : > { %v7204_v41 = vld [vmem:[#allocation2 + $0x8] sm:$0xff]  ;;  %v456_v42 = vld [vmem:[#allocation2 + $0x10] sm:$0xff]  ;;  %v6729_v46 = vpack.i.bf16 %v455_v40, %v454_v39  ;;  %v637_v25 = vld [vmem:[%s8681_s1 + $0x240] sm:$0xff]  ;;  %v6284_v39 = vpack.c.bf16 %v656_v31, %v655_v30 }
  0xda   : > { %v6734_v47 = vpack.i.bf16 %v456_v42, %v7204_v41  ;;  %v654_v21 = vld [vmem:[%s8681_s1 + $0x2c8] sm:$0xff]  ;;  %v639_v40 = vld [vmem:[%s8681_s1 + $0x250] sm:$0xff]  ;;  %v5408_v30 = vld [vmem:[%s8683_s3] ss:$0 sm:$0xff] }
  0xdb   : > { %v343_v17 = vld [vmem:[%s8686_s6 + $0x8] sm:$0xff] }
  0xdc   : > { %6725 = vrot.lane.b32.xlu0 %v6724_v37, %s6865_s17  ;;  %6720 = vrot.lane.b32.xlu1 %v6719_v38, %s6866_s0  ;;  %v6282_v38 = vpack.c.bf16 %v638_v29, %v637_v25  ;;  %s5656_s0 = sshll.u32 %s6948_s13, 8 }
  0xe0   : > { %6730 = vrot.lane.b32.xlu1 %v6729_v46, %s6867_s22  ;;  %6735 = vrot.lane.b32.xlu0 %v6734_v47, %s6868_s21  ;;  %v657_v47 = vld [vmem:[%s8681_s1 + $0x2e0] sm:$0xff]  ;;  %s8583_s22 = scalar_lea.hbm %s8688_s8, %s5656_s0 }
  0xe4   : > { %524 = vrot.lane.b32.xlu1 %v443_v20, %s8690_s24  ;;  %531 = vrot.lane.b32.xlu0 %v445_v19, %s6870_s28  ;;  %v653_v20 = vld [vmem:[%s8681_s1 + $0x2c0] sm:$0xff] }
  0xe5   : > { %v6280_v28 = vpack.c.bf16 %v654_v21, %v653_v20  ;;  %v344_v20 = vld [vmem:[%s8686_s6 + $0x10] sm:$0xff]  ;;  %v345_v21 = vld [vmem:[%s8686_s6 + $0x18] sm:$0xff] }
  0xe8   : > { %526 = vrot.lane.b32.xlu1 %v457_v48, %s8690_s24  ;;  %533 = vrot.lane.b32.xlu0 %v458_v49, %s6870_s28  ;;  %v658_v48 = vld [vmem:[%s8681_s1 + $0x2e8] sm:$0xff]  ;;  %s5270_s28 = scalar_lea.sflag [#allocation5], %s7097_s26 }
 0x13d   : > { %v470_v51 = vpop.permute.xlu1 %469 }
 0x13e   : > { %v462_v50 = vpop.permute.xlu0 %461 }
 0x13f   : > { %v540_v56 = vsel %vm539_vm9, %v462_v50, %v470_v51  ;;  %v537_v0 = vsel %vm425_vm1, %v440_v60, %v462_v50 }
 0x142   : > { %v7233_v57 = vpop.permute.xlu0 %477 }
 0x143   : > { %v543_v59 = vsel %vm542_vm10, %v540_v56, %v7233_v57 }
 0x144   : > { %738 = vmatprep.mubr.f32.mxu0 %v543_v59  ;;  %v663_v59 = vld [vmem:[%s8681_s1 + $0x310] sm:$0xff] }
 0x145   : > { %739 = vmatmul.mubr.f32.vlgmr.msra.gmra.mrb[0].mxu0 %v537_v0  ;;  %v642_v0 = vld [vmem:[%s8681_s1 + $0x268] sm:$0xff] }
 0x146   : > { %6267 = vmatpush3.bf16.msra.mxu0 %v6266_v58  ;;  %v464_v3 = vpop.permute.xlu1 %463  ;;  %v472_v4 = vpop.permute.xlu0 %471  ;;  %v6288_v58 = vpack.c.bf16 %v658_v48, %v657_v47 }
 0x147   : > { %6269 = vmatprep.subr.bf16.mxu0 %v6268_v61  ;;  %v541_v11 = vsel %vm539_vm9, %v464_v3, %v472_v4  ;;  %v538_v19 = vsel %vm425_vm1, %v7204_v41, %v464_v3  ;;  %v640_v41 = vld [vmem:[%s8681_s1 + $0x258] sm:$0xff]  ;;  %vm556_vm1 = vcmask 523264  }
 0x148   : > { %v6286_v53 = vpack.c.bf16 %v640_v41, %v639_v40  ;;  %v660_v3 = vld [vmem:[%s8681_s1 + $0x2f8] sm:$0xff] }
 0x14a   : > { %6271 = vmatpush3.bf16.msra.mxu0 %v6270_v5  ;;  %v7263_v12 = vpop.permute.xlu1 %479  ;;  %v7265_v13 = vpop.permute.xlu0 %6715  ;;  %v6290_v5 = vpack.c.bf16 %v642_v0, %v641_v63  ;;  %v7389_v0 = vld [vmem:[%s8687_s7] sm:$0xf] }
 0x14b   : > { %v544_v15 = vsel %vm542_vm10, %v541_v11, %v7263_v12  ;;  %6273 = vmatprep.subr.bf16.mxu0 %v6272_v6  ;;  %v6717_v34 = vunpack.i.l.bf16 %v7265_v13  ;;  %v6718_v49 = vunpack.i.h.bf16 %v7265_v13  ;;  %v6292_v6 = vpack.c.bf16 %v660_v3, %v659_v2 }
 0x14c   : > { %743 = vmatprep.mubr.f32.mxu0 %v544_v15 }
 0x14d   : > { %744 = vmatmul.mubr.f32.gmra.mrb[2].mxu0 %v538_v19  ;;  %v6871_v19 = vmov 0.0|0.0  }
 0x14e   : > { %6275 = vmatpush3.bf16.msra.mxu0 %v6274_v14  ;;  %v6721_v22 = vpop.permute.xlu1 %6720  ;;  %v6726_v23 = vpop.permute.xlu0 %6725 }
 0x14f   : > { %v6727_v27 = vunpack.i.l.bf16 %v6726_v23  ;;  %6277 = vmatprep.subr.bf16.mxu0 %v6276_v16  ;;  %v6722_v33 = vunpack.i.l.bf16 %v6721_v22  ;;  %v6723_v35 = vunpack.i.h.bf16 %v6721_v22  ;;  %v6728_v42 = vunpack.i.h.bf16 %v6726_v23  ;;  %v342_v16 = vld [vmem:[%s8686_s6] sm:$0xff] }
 0x150   : > { %v7363_v18 = vpack.c.bf16 %v343_v17, %v342_v16  ;;  %v7375_v22 = vpack.c.bf16 %v345_v21, %v344_v20 }
 0x151   : > { %v545_v46 = vsel %vm433_vm8, %v7233_v57, %v6727_v27  ;;  %v551_v50 = vsel %vm550_vm11, %v6717_v34, %v6722_v33  ;;  %v552_v57 = vsel %vm550_vm11, %v6718_v49, %v6723_v35  ;;  %v546_v62 = vsel %vm433_vm8, %v7263_v12, %v6728_v42 }
 0x152   : > { %6279 = vmatpush3.bf16.msra.mxu0 %v6278_v24  ;;  %v7296_v36 = vpop.permute.xlu1 %6730  ;;  %v7298_v37 = vpop.permute.xlu0 %6735  ;;  %v548_v56 = vsel %vm547_vm13, %v545_v46, %v6717_v34  ;;  %v549_v4 = vsel %vm547_vm13, %v546_v62, %v6718_v49 }
 0x153   : > { %v6733_v43 = vunpack.i.h.bf16 %v7296_v36  ;;  %v6732_v44 = vunpack.i.l.bf16 %v7296_v36  ;;  %6281 = vmatprep.subr.bf16.mxu0 %v6280_v28  ;;  %v6737_v51 = vunpack.i.l.bf16 %v7298_v37  ;;  %v6738_v11 = vunpack.i.h.bf16 %v7298_v37 }
 0x155   : > { %v554_v52 = vsel %vm553_vm12, %v551_v50, %v6732_v44  ;;  %v555_v61 = vsel %vm553_vm12, %v552_v57, %v6733_v43  ;;  %v557_v13 = vsel %vm556_vm1, %v6732_v44, %v6737_v51  ;;  %v558_v15 = vsel %vm556_vm1, %v6733_v43, %v6738_v11 }
 0x156   : > { %6283 = vmatpush3.bf16.msra.mxu0 %v6282_v38  ;;  %v525_v54 = vpop.permute.xlu1 %524  ;;  %v532_v55 = vpop.permute.xlu0 %531  ;;  %813 = vmatprep.mubr.f32.mxu1 %v554_v52 }
 0x157   : > { %v560_v60 = vsel %vm559_vm14, %v6737_v51, %v525_v54  ;;  %814 = vmatmul.mubr.f32.vlgmr.msra.gmra.mrb[0].mxu1 %v548_v56  ;;  %6285 = vmatprep.subr.bf16.mxu0 %v6284_v39 }
 0x158   : > { %818 = vmatprep.mubr.f32.mxu1 %v555_v61  ;;  %v563_v1 = vsel %vm562_vm15, %v560_v60, %v532_v55  ;;  %6299 = vmatpush3.bf16.msra.mxu1 %v7213_v45  ;;  %v643_v45 = vld [vmem:[%s8681_s1 + $0x270] sm:$0xff] }
 0x159   : > { %888 = vmatprep.mubr.f32.mxu0 %v563_v1  ;;  %5907 = vmatprep.subr.mxu1 %v663_v59  ;;  %v6294_v9 = vpack.c.bf16 %v644_v7, %v643_v45 }
 0x15a   : > { %6287 = vmatpush3.bf16.msra.mxu0 %v6286_v53  ;;  %v534_v8 = vpop.permute.xlu0 %533  ;;  %v527_v10 = vpop.permute.xlu1 %526 }
 0x15b   : > { %819 = vmatmul.mubr.f32.gmra.mrb[2].mxu1 %v549_v4  ;;  %6289 = vmatprep.subr.bf16.mxu0 %v6288_v58  ;;  %v561_v12 = vsel %vm559_vm14, %v6738_v11, %v527_v10  ;;  %v1139_v4 = vshrl.u32 %v381_v26, 7 }
 0x15c   : > { %5909 = vmatprep.mubr.msk.f32.mxu1 %vm669_vm0, %v532_v55  ;;  %5908 = vmatpush3.msra.mxu1 %v663_v59  ;;  %v564_v14 = vsel %vm562_vm15, %v561_v12, %v534_v8 }
 0x15d   : > { %6300 = vmatprep.subr.bf16.mxu1 %v6871_v19 }
 0x15e   : > { %6291 = vmatpush3.bf16.msra.mxu0 %v6290_v5  ;;  %v7405_v5 = vsub.s32 0, %v1139_v4 }
 0x15f   : > { %5910 = vmatmul.mubr.msk.f32.vlgmr.msra.gmra.mrb[4].mxu1 %vm669_vm0, %v534_v8  ;;  %6293 = vmatprep.subr.bf16.mxu0 %v6292_v6 }
 0x160   : > { %6302 = vmatpush3.bf16.msra.mxu1 %v7363_v18  ;;  %5920 = vmatprep.mubr.msk.f32.mxu1 %vm6872_vm2, %v6860_v32 }
 0x161   : > { %6303 = vmatprep.subr.bf16.mxu1 %v6871_v19 }
 0x162   : > { %6295 = vmatpush3.bf16.msra.mxu0 %v6294_v9 }
 0x163   : > { %6312 = vmatprep.subr.bf16.mxu0 %v6871_v19 }
 0x164   : > { %6305 = vmatpush3.bf16.msra.mxu1 %v7375_v22 }
 0x165   : > { %889 = vmatmul.mubr.f32.vlgmr.msra.gmra.mrb[4].mxu0 %v557_v13  ;;  %5923 = vmatprep.subr.mxu1 %v6860_v32 }
 0x166   : > { %893 = vmatprep.mubr.f32.mxu0 %v564_v14 }
 0x169   : > { %894 = vmatmul.mubr.f32.gmra.mrb[6].mxu0 %v558_v15 }
 0x218   : > { %v5690_v23 = vpop.f32.mrb[0].mxu0 }
 0x219   : > { %v5691_v24 = vpop.f32.mrb[1].mxu0 }
 0x21a   : > { %v5692_v25 = vadd.f32 %v5691_v24, %v5690_v23 }
 0x21c   : > { %v741_v34 = vadd.f32 %v5692_v25, %v5408_v30 }
 0x220   : > { %v5693_v27 = vpop.f32.mrb[2].mxu0 }
 0x221   : > { %v5694_v28 = vpop.f32.mrb[3].mxu0 }
 0x222   : > { %v5695_v29 = vadd.f32 %v5694_v28, %v5693_v27  ;;  %v1366_v27 = vld [vmem:[%s8682_s2] sm:$0xff]  ;;  %v1367_v28 = vld [vmem:[%s8682_s2 + $0x8] sm:$0xff] }
 0x224   : > { %v746_v39 = vadd.f32 %v5695_v29, %v5408_v30  ;;  %v1368_v29 = vld [vmem:[%s8682_s2 + $0x10] sm:$0xff]  ;;  %v6313_v30 = vpack.c.bf16 %v1367_v28, %v1366_v27 }
 0x226   : > { %6314 = vmatpush1.bf16.msra.mxu0 %v6313_v30 }
 0x227   : > { %6315 = vmatprep.subr.bf16.mxu0 %v6871_v19 }
 0x22a   : > { %v5728_v31 = vpop.f32.mrb[0].mxu1 }
 0x22b   : > { %v5729_v33 = vpop.f32.mrb[1].mxu1 }
 0x22c   : > { %v5730_v35 = vadd.f32 %v5729_v33, %v5728_v31  ;;  %v1369_v31 = vld [vmem:[%s8682_s2 + $0x18] sm:$0xff] }
 0x22d   : > { %v6316_v33 = vpack.c.bf16 %v1369_v31, %v1368_v29 }
 0x22e   : > { %v816_v36 = vadd.f32 %v5730_v35, %v741_v34  ;;  %v5731_v37 = vpop.f32.mrb[2].mxu1  ;;  %v1370_v34 = vld [vmem:[%s8682_s2 + $0x20] sm:$0xff]  ;;  %v1371_v35 = vld [vmem:[%s8682_s2 + $0x28] sm:$0xff] }
 0x22f   : > { %v5732_v38 = vpop.f32.mrb[3].mxu1  ;;  %6317 = vmatpush1.bf16.msra.mxu0 %v6316_v33 }
 0x230   : > { %v5733_v40 = vadd.f32 %v5732_v38, %v5731_v37  ;;  %6318 = vmatprep.subr.bf16.mxu0 %v6871_v19  ;;  %v1372_v37 = vld [vmem:[%s8682_s2 + $0x30] sm:$0xff]  ;;  %v1373_v38 = vld [vmem:[%s8682_s2 + $0x38] sm:$0xff] }
 0x232   : > { %v821_v41 = vadd.f32 %v5733_v40, %v746_v39  ;;  %v5911_v42 = vpop.f32.mrb[4].mxu1  ;;  %v6322_v39 = vpack.c.bf16 %v1373_v38, %v1372_v37  ;;  %v1374_v40 = vld [vmem:[%s8682_s2 + $0x40] sm:$0xff] }
 0x233   : > { %v965_v43 = vpop.f32.mrb[5].mxu1  ;;  %v5419_v38 = vld [vmem:[%s8683_s3 + $0x1] ss:$0 sm:$0xff] }
 0x238   : > { %v5766_v44 = vpop.f32.mrb[4].mxu0 }
 0x239   : > { %v5767_v46 = vpop.f32.mrb[5].mxu0 }
 0x23a   : > { %v5768_v47 = vadd.f32 %v5767_v46, %v5766_v44  ;;  %v1377_v44 = vld [vmem:[%s8682_s2 + $0x58] sm:$0xff] }
 0x23c   : > { %v891_v48 = vadd.f32 %v5768_v47, %v816_v36  ;;  %v5769_v49 = vpop.f32.mrb[6].mxu0  ;;  %v6319_v36 = vpack.c.bf16 %v1371_v35, %v1370_v34  ;;  %v1378_v47 = vld [vmem:[%s8682_s2 + $0x60] sm:$0xff] }
 0x23d   : > { %v5770_v50 = vpop.f32.mrb[7].mxu0 }
 0x23e   : > { %v966_v51 = vadd.f32 %v965_v43, %v891_v48  ;;  %v5771_v52 = vadd.f32 %v5770_v50, %v5769_v49  ;;  %6320 = vmatpush1.bf16.msra.mxu0 %v6319_v36  ;;  %v1376_v43 = vld [vmem:[%s8682_s2 + $0x50] sm:$0xff]  ;;  %v1379_v48 = vld [vmem:[%s8682_s2 + $0x68] sm:$0xff] }
 0x23f   : > { %6321 = vmatprep.subr.bf16.mxu0 %v6871_v19  ;;  %v6328_v46 = vpack.c.bf16 %v1377_v44, %v1376_v43  ;;  %v6331_v49 = vpack.c.bf16 %v1379_v48, %v1378_v47  ;;  %v1380_v50 = vld [vmem:[%s8682_s2 + $0x70] sm:$0xff] }
 0x240   : > { %v896_v53 = vadd.f32 %v5771_v52, %v821_v41  ;;  %v976_v55 = vsel %vm433_vm8, %v966_v51, 0.0  ;;  %v1375_v41 = vld [vmem:[%s8682_s2 + $0x48] sm:$0xff] }
 0x242   : > { %v971_v54 = vadd.f32 %v5911_v42, %v896_v53  ;;  %6323 = vmatpush1.bf16.msra.mxu0 %v6322_v39  ;;  %v6325_v42 = vpack.c.bf16 %v1375_v41, %v1374_v40  ;;  %v1382_v53 = vld [vmem:[%s8682_s2 + $0x80] sm:$0xff] }
 0x243   : > { %6324 = vmatprep.subr.bf16.mxu0 %v6871_v19 }
 0x244   : > { %v977_v56 = vsel %vm433_vm8, %v971_v54, 0.0 }
 0x245   : > { %v978_v57 = vadd.f32 %v977_v56, %v976_v55 }
 0x246   : > { %6326 = vmatpush1.bf16.msra.mxu0 %v6325_v42 }
 0x247   : > { %v979_v58 = vrot.slane %v978_v57, 4  ;;  %6327 = vmatprep.subr.bf16.mxu0 %v6871_v19 }
 0x249   : > { %v980_v59 = vadd.f32 %v979_v58, %v978_v57 }
 0x24a   : > { %6329 = vmatpush1.bf16.msra.mxu0 %v6328_v46 }
 0x24b   : > { %v981_v60 = vrot.slane %v980_v59, 2  ;;  %6330 = vmatprep.subr.bf16.mxu0 %v6871_v19 }
 0x24d   : > { %v982_v61 = vadd.f32 %v981_v60, %v980_v59 }
 0x24e   : > { %6332 = vmatpush1.bf16.msra.mxu0 %v6331_v49 }
 0x24f   : > { %v983_v62 = vrot.slane %v982_v61, 1  ;;  %6333 = vmatprep.subr.bf16.mxu0 %v6871_v19 }
 0x251   : > { %v984_v63 = vadd.f32 %v983_v62, %v982_v61  ;;  %v5417_v61 = vld [vmem:[%s8684_s4] ss:$0 sm:$0xff] }
 0x253   : > { %5921 = vmatmul.mubr.msk.f32.vlgmr.msra.gmra.mrb[6].mxu1 %vm433_vm8, %v984_v63 }
 0x254   : > { %5924 = vmatpush3.msk.msra.mxu1 %vm1064_vm3, %v7389_v0  ;;  %5925 = vmatprep.mubr.msk.f32.mxu1 %vm6872_vm2, %v6860_v32 }
 0x255   : > { %6306 = vmatprep.subr.bf16.mxu1 %v6871_v19 }
 0x326   : > { %v1054_v1 = vpop.f32.mrb[6].mxu1 }
 0x327   : > { %v1059_v2 = vmul.f32 0.0078125, %v1054_v1  ;;  %v5922_v3 = vpop.f32.mrb[7].mxu1  ;;  %v5418_v1 = vld [vmem:[%s8685_s5] ss:$0 sm:$0xff] }
 0x329   : > { %5926 = vmatmul.mubr.msk.f32.vlgmr.msra.gmra.mrb[8].mxu1 %vm1060_vm4, %v1059_v2 }
 0x32a   : > { %6308 = vmatpush3.bf16.msra.mxu1 %v7363_v18  ;;  %5936 = vmatprep.mubr.msk.f32.mxu1 %vm6872_vm2, %v6860_v32 }
 0x32b   : > { %6309 = vmatprep.subr.bf16.mxu1 %v6871_v19 }
 0x32e   : > { %6311 = vmatpush3.bf16.msra.mxu1 %v7375_v22 }
 0x32f   : > { %5939 = vmatprep.subr.mxu1 %v6860_v32 }
 0x3fc   : > { %v1134_v6 = vpop.f32.mrb[8].mxu1 }
 0x3fd   : > { %v1141_v45 = vrot.slane %v1134_v6, %v7405_v5  ;;  %v5927_v7 = vpop.f32.mrb[9].mxu1 }
 0x3fe   : > { %v1385_v7 = vld [vmem:[%s8682_s2 + $0x98] sm:$0xff] }
 0x3ff   : > { %v7408_v8 = vsub.f32 %v966_v51, %v1141_v45  ;;  %v7410_v9 = vsub.f32 %v971_v54, %v1141_v45  ;;  %v1381_v51 = vld [vmem:[%s8682_s2 + $0x78] sm:$0xff]  ;;  %v1383_v54 = vld [vmem:[%s8682_s2 + $0x88] sm:$0xff]  ;;  %v1384_v45 = vld [vmem:[%s8682_s2 + $0x90] sm:$0xff] }
 0x400   : > { %v6334_v52 = vpack.c.bf16 %v1381_v51, %v1380_v50  ;;  %v6337_v55 = vpack.c.bf16 %v1383_v54, %v1382_v53 }
 0x401   : > { %v1144_v10 = vmul.f32 %v7408_v8, %v7408_v8  ;;  %v1145_v11 = vmul.f32 %v7410_v9, %v7410_v9 }
 0x402   : > { %6335 = vmatpush1.bf16.msra.mxu0 %v6334_v52 }
 0x403   : > { %v1146_v12 = vsel %vm433_vm8, %v1144_v10, 0.0  ;;  %v1147_v26 = vsel %vm433_vm8, %v1145_v11, 0.0  ;;  %6336 = vmatprep.subr.bf16.mxu0 %v6871_v19 }
 0x404   : > { %v1148_v13 = vadd.f32 %v1147_v26, %v1146_v12 }
 0x406   : > { %v1149_v14 = vrot.slane %v1148_v13, 4  ;;  %6338 = vmatpush1.bf16.msra.mxu0 %v6337_v55 }
 0x407   : > { %6339 = vmatprep.subr.bf16.mxu0 %v6871_v19 }
 0x408   : > { %v1150_v15 = vadd.f32 %v1149_v14, %v1148_v13 }
 0x40a   : > { %v1151_v16 = vrot.slane %v1150_v15, 2 }
 0x40c   : > { %v1152_v17 = vadd.f32 %v1151_v16, %v1150_v15 }
 0x40e   : > { %v1153_v20 = vrot.slane %v1152_v17, 1 }
 0x410   : > { %v1154_v21 = vadd.f32 %v1153_v20, %v1152_v17 }
 0x412   : > { %5937 = vmatmul.mubr.msk.f32.vlgmr.msra.gmra.mrb[10].mxu1 %vm433_vm8, %v1154_v21 }
 0x413   : > { %5940 = vmatpush3.msk.msra.mxu1 %vm1064_vm3, %v7389_v0  ;;  %5941 = vmatprep.mubr.msk.f32.mxu1 %vm6872_vm2, %v6860_v32 }
 0x414   : > { %6342 = vmatprep.subr.bf16.mxu1 %v6871_v19 }
 0x4e5   : > { %v1224_v23 = vpop.f32.mrb[10].mxu1 }
 0x4e6   : > { %v1228_v24 = vmul.f32 0.0078125, %v1224_v23  ;;  %v5938_v25 = vpop.f32.mrb[11].mxu1 }
 0x4e8   : > { %5942 = vmatmul.mubr.msk.f32.vlgmr.msra.gmra.mrb[12].mxu1 %vm1060_vm4, %v1228_v24 }
 0x4e9   : > { %6344 = vmatpush3.bf16.msra.mxu1 %v7363_v18  ;;  %5952 = vmatprep.mubr.msk.f32.mxu1 %vm6872_vm2, %v6860_v32 }
 0x4ea   : > { %6345 = vmatprep.subr.bf16.mxu1 %v6871_v19 }
 0x4ed   : > { %6347 = vmatpush3.bf16.msra.mxu1 %v7375_v22 }
 0x4ee   : > { %5955 = vmatprep.subr.mxu1 %v6860_v32 }
 0x5bb   : > { %v1298_v56 = vpop.f32.mrb[12].mxu1 }
 0x5bc   : > { %v1299_v57 = vadd.f32 1e-05, %v1298_v56  ;;  %v5943_v58 = vpop.f32.mrb[13].mxu1 }
 0x5be   : > { %6743 = vrsqrt.f32 %v1299_v57 }
 0x5c8   : > { %v6744_v59 = vpop.eup %6743 }
 0x5c9   : > { %v1306_v60 = vrot.slane %v6744_v59, %v7405_v5 }
 0x5cb   : > { %v1307_v62 = vmul.f32 %v1306_v60, %v7408_v8  ;;  %v1308_v63 = vmul.f32 %v1306_v60, %v7410_v9  ;;  %v6340_v8 = vpack.c.bf16 %v1385_v7, %v1384_v45 }
 0x5cd   : > { %v1313_v2 = vmul.f32 %v5417_v61, %v1307_v62  ;;  %v1314_v3 = vmul.f32 %v5417_v61, %v1308_v63  ;;  %6341 = vmatpush1.bf16.msra.mxu0 %v6340_v8 }
 0x5ce   : > { %6384 = vmatprep.subr.bf16.mxu0 %v6871_v19 }
 0x5cf   : > { %v7504_v4 = vadd.f32 %v5418_v1, %v1313_v2  ;;  %v7506_v6 = vadd.f32 %v5418_v1, %v1314_v3 }
 0x5d1   : > { %v1321_v9 = vmax.f32 %v7504_v4, 0.0  ;;  %v1322_v10 = vmax.f32 %v7506_v6, 0.0 }
 0x5d3   : > { %1323 = vst.msk [vmem:[#allocation3 + $0x2] sm:$0xff] %vm433_vm8, %v1321_v9  ;;  %1324 = vst.msk [vmem:[#allocation3 + $0xa] sm:$0xff] %vm433_vm8, %v1322_v10 }
 0x5da   : > { %v1333_v11 = vld [vmem:[#allocation3 + $0x4] sm:$0xff]  ;;  %v1334_v29 = vld [vmem:[#allocation3 + $0xc] sm:$0xff] }
 0x5db   : > { %v1329_v12 = vld [vmem:[#allocation3 + $0x2] sm:$0xff]  ;;  %5420 = vmatprep.mubr.msk.f32.mxu0 %vm433_vm8, %v1333_v11  ;;  %v1332_v15 = vld [vmem:[#allocation3 + $0xb] sm:$0xff] }
 0x5dc   : > { %v1327_v26 = vld [vmem:[#allocation3 + $0x1] sm:$0xff]  ;;  %1345 = vrot.lane.b32.xlu0 %v1329_v12, %s6868_s21  ;;  %v1328_v13 = vld [vmem:[#allocation3 + $0x9] sm:$0xff] }
 0x5dd   : > { %1337 = vrot.lane.b32.xlu1 %v1327_v26, %s6865_s17  ;;  %v1331_v14 = vld [vmem:[#allocation3 + $0x3] sm:$0xff] }
 0x5de   : > { %v1330_v16 = vld [vmem:[#allocation3 + $0xa] sm:$0xff]  ;;  %v1325_v21 = vld [vmem:[#allocation3] sm:$0xff] }
 0x5df   : > { %v1326_v30 = vld [vmem:[#allocation3 + $0x8] sm:$0xff] }
 0x5e0   : > { %1339 = vrot.lane.b32.xlu0 %v1328_v13, %s6865_s17 }
 0x5e1   : > { %1353 = vrot.lane.b32.xlu1 %v1331_v14, %s6873_s14 }
 0x5e4   : > { %1355 = vrot.lane.b32.xlu0 %v1332_v15, %s6873_s14 }
 0x5e5   : > { %1347 = vrot.lane.b32.xlu1 %v1330_v16, %s6868_s21  ;;  %v5430_v16 = vld [vmem:[%s8682_s2 + $0xa0] sm:$0xff] }
 0x64e   : > { %v1346_v17 = vpop.permute.xlu0 %1345 }
 0x64f   : > { %v1338_v20 = vpop.permute.xlu1 %1337 }
 0x650   : > { %v1359_v23 = vsel %vm433_vm8, %v1325_v21, %v1338_v20  ;;  %v5432_v20 = vld [vmem:[%s8682_s2 + $0xb0] sm:$0xff] }
 0x651   : > { %v1361_v27 = vsel %vm556_vm1, %v1359_v23, %v1346_v17  ;;  %v5431_v17 = vld [vmem:[%s8682_s2 + $0xa8] sm:$0xff]  ;;  %v5433_v23 = vld [vmem:[%s8682_s2 + $0xb8] sm:$0xff] }
 0x652   : > { %v1340_v24 = vpop.permute.xlu0 %1339  ;;  %v6355_v21 = vpack.c.bf16 %v5431_v17, %v5430_v16 }
 0x653   : > { %v1354_v25 = vpop.permute.xlu1 %1353  ;;  %v1360_v33 = vsel %vm433_vm8, %v1326_v30, %v1340_v24  ;;  %v6358_v24 = vpack.c.bf16 %v5433_v23, %v5432_v20  ;;  %v5437_v30 = vld [vmem:[%s8682_s2 + $0xd8] sm:$0xff] }
 0x654   : > { %v1364_v28 = vsel %vm1363_vm6, %v1361_v27, %v1354_v25  ;;  %v5434_v25 = vld [vmem:[%s8682_s2 + $0xc0] sm:$0xff]  ;;  %v5435_v27 = vld [vmem:[%s8682_s2 + $0xc8] sm:$0xff] }
 0x655   : > { %1462 = vmatmul.mubr.f32.vlgmr.msra.gmra.mrb[8].mxu0 %v1364_v28  ;;  %v6361_v28 = vpack.c.bf16 %v5435_v27, %v5434_v25 }
 0x656   : > { %5421 = vmatprep.mubr.msk.f32.mxu0 %vm433_vm8, %v1334_v29  ;;  %v1356_v31 = vpop.permute.xlu0 %1355  ;;  %6386 = vmatpush3.bf16.msra.mxu0 %v7363_v18  ;;  %v5436_v29 = vld [vmem:[%s8682_s2 + $0xd0] sm:$0xff] }
 0x657   : > { %v1348_v34 = vpop.permute.xlu1 %1347  ;;  %6387 = vmatprep.subr.bf16.mxu0 %v6871_v19 }
 0x658   : > { %v1362_v35 = vsel %vm556_vm1, %v1360_v33, %v1348_v34  ;;  %v5438_v33 = vld [vmem:[%s8682_s2 + $0xe0] sm:$0xff]  ;;  %v5439_v34 = vld [vmem:[%s8682_s2 + $0xe8] sm:$0xff] }
 0x659   : > { %v1365_v36 = vsel %vm1363_vm6, %v1362_v35, %v1356_v31  ;;  %v6364_v31 = vpack.c.bf16 %v5437_v30, %v5436_v29  ;;  %v6367_v35 = vpack.c.bf16 %v5439_v34, %v5438_v33 }
 0x65a   : > { %1467 = vmatmul.mubr.f32.gmra.mrb[10].mxu0 %v1365_v36  ;;  %v5440_v36 = vld [vmem:[%s8682_s2 + $0xf0] sm:$0xff] }
 0x65b   : > { %6389 = vmatpush3.bf16.msra.mxu0 %v7375_v22  ;;  %5984 = vmatprep.mubr.msk.f32.mxu0 %vm6872_vm2, %v6860_v32 }
 0x65c   : > { %5987 = vmatprep.subr.mxu0 %v6860_v32 }
 0x728   : > { %v1463_v37 = vpop.f32.mrb[8].mxu0 }
 0x729   : > { %v1465_v39 = vpop.f32.mrb[9].mxu0  ;;  %v1464_v40 = vadd.f32 %v5419_v38, %v1463_v37  ;;  %v5441_v37 = vld [vmem:[%s8682_s2 + $0xf8] sm:$0xff] }
 0x72a   : > { %v5442_v39 = vld [vmem:[%s8682_s2 + $0x100] sm:$0xff] }
 0x72b   : > { %v1474_v44 = vsel %vm433_vm8, %v1464_v40, 0.0 }
 0x72d   : > { %v1468_v41 = vpop.f32.mrb[10].mxu0 }
 0x72e   : > { %v1469_v42 = vadd.f32 %v5419_v38, %v1468_v41  ;;  %v1470_v43 = vpop.f32.mrb[11].mxu0  ;;  %v6370_v38 = vpack.c.bf16 %v5441_v37, %v5440_v36 }
 0x72f   : > { %v5445_v43 = vld [vmem:[%s8682_s2 + $0x118] sm:$0xff] }
 0x730   : > { %v1475_v46 = vsel %vm433_vm8, %v1469_v42, 0.0 }
 0x731   : > { %v1476_v47 = vadd.f32 %v1475_v46, %v1474_v44  ;;  %v5446_v46 = vld [vmem:[%s8682_s2 + $0x120] sm:$0xff] }
 0x733   : > { %v1477_v48 = vrot.slane %v1476_v47, 4 }
 0x735   : > { %v1478_v49 = vadd.f32 %v1477_v48, %v1476_v47  ;;  %v5447_v47 = vld [vmem:[%s8682_s2 + $0x128] sm:$0xff] }
 0x736   : > { %v6379_v48 = vpack.c.bf16 %v5447_v47, %v5446_v46 }
 0x737   : > { %v1479_v50 = vrot.slane %v1478_v49, 2 }
 0x739   : > { %v1480_v51 = vadd.f32 %v1479_v50, %v1478_v49 }
 0x73b   : > { %v1481_v52 = vrot.slane %v1480_v51, 1 }
 0x73d   : > { %v1482_v53 = vadd.f32 %v1481_v52, %v1480_v51 }
 0x73f   : > { %5953 = vmatmul.mubr.msk.f32.vlgmr.msra.gmra.mrb[14].mxu1 %vm433_vm8, %v1482_v53 }
 0x740   : > { %5956 = vmatpush3.msk.msra.mxu1 %vm1064_vm3, %v7389_v0  ;;  %5957 = vmatprep.mubr.msk.f32.mxu1 %vm6872_vm2, %v6860_v32 }
 0x741   : > { %6348 = vmatprep.subr.bf16.mxu1 %v6871_v19 }
 0x812   : > { %v1552_v54 = vpop.f32.mrb[14].mxu1 }
 0x813   : > { %v1556_v55 = vmul.f32 0.0078125, %v1552_v54  ;;  %v5954_v56 = vpop.f32.mrb[15].mxu1  ;;  %v5428_v54 = vld [vmem:[%s8684_s4 + $0x1] ss:$0 sm:$0xff] }
 0x815   : > { %5958 = vmatmul.mubr.msk.f32.vlgmr.msra.gmra.mrb[16].mxu1 %vm1060_vm4, %v1556_v55 }
 0x816   : > { %6350 = vmatpush3.bf16.msra.mxu1 %v7363_v18  ;;  %5968 = vmatprep.mubr.msk.f32.mxu1 %vm6872_vm2, %v6860_v32 }
 0x817   : > { %6351 = vmatprep.subr.bf16.mxu1 %v6871_v19 }
 0x81a   : > { %6353 = vmatpush3.bf16.msra.mxu1 %v7375_v22 }
 0x81b   : > { %5971 = vmatprep.subr.mxu1 %v6860_v32 }
 0x8e8   : > { %v1626_v57 = vpop.f32.mrb[16].mxu1 }
 0x8e9   : > { %v1633_v58 = vrot.slane %v1626_v57, %v7405_v5  ;;  %v5959_v59 = vpop.f32.mrb[17].mxu1  ;;  %v5429_v57 = vld [vmem:[%s8685_s5 + $0x1] ss:$0 sm:$0xff] }
 0x8eb   : > { %v7562_v60 = vsub.f32 %v1464_v40, %v1633_v58  ;;  %v7564_v61 = vsub.f32 %v1469_v42, %v1633_v58  ;;  %v5443_v40 = vld [vmem:[%s8682_s2 + $0x108] sm:$0xff]  ;;  %v5444_v42 = vld [vmem:[%s8682_s2 + $0x110] sm:$0xff] }
 0x8ec   : > { %v6373_v41 = vpack.c.bf16 %v5443_v40, %v5442_v39  ;;  %v6376_v44 = vpack.c.bf16 %v5445_v43, %v5444_v42 }
 0x8ed   : > { %v1636_v62 = vmul.f32 %v7562_v60, %v7562_v60  ;;  %v1637_v63 = vmul.f32 %v7564_v61, %v7564_v61 }
 0x8ef   : > { %v1638_v1 = vsel %vm433_vm8, %v1636_v62, 0.0  ;;  %v1639_v2 = vsel %vm433_vm8, %v1637_v63, 0.0 }
 0x8f0   : > { %v1640_v3 = vadd.f32 %v1639_v2, %v1638_v1  ;;  %v5448_v1 = vld [vmem:[%s8682_s2 + $0x130] sm:$0xff]  ;;  %v5449_v2 = vld [vmem:[%s8682_s2 + $0x138] sm:$0xff] }
 0x8f2   : > { %v1641_v45 = vrot.slane %v1640_v3, 4 }
 0x8f4   : > { %v1642_v7 = vadd.f32 %v1641_v45, %v1640_v3  ;;  %v6382_v3 = vpack.c.bf16 %v5449_v2, %v5448_v1 }
 0x8f6   : > { %v1643_v8 = vrot.slane %v1642_v7, 2 }
 0x8f8   : > { %v1644_v11 = vadd.f32 %v1643_v8, %v1642_v7 }
 0x8fa   : > { %v1645_v12 = vrot.slane %v1644_v11, 1 }
 0x8fc   : > { %v1646_v26 = vadd.f32 %v1645_v12, %v1644_v11 }
 0x8fe   : > { %5969 = vmatmul.mubr.msk.f32.vlgmr.msra.gmra.mrb[18].mxu1 %vm433_vm8, %v1646_v26 }
 0x8ff   : > { %5972 = vmatpush3.msk.msra.mxu1 %vm1064_vm3, %v7389_v0  ;;  %5973 = vmatprep.mubr.msk.f32.mxu1 %vm6872_vm2, %v6860_v32 }
 0x900   : > { %6354 = vmatprep.subr.bf16.mxu1 %v6871_v19 }
 0x9d1   : > { %v1716_v13 = vpop.f32.mrb[18].mxu1 }
 0x9d2   : > { %v1720_v14 = vmul.f32 0.0078125, %v1716_v13  ;;  %v5970_v15 = vpop.f32.mrb[19].mxu1 }
 0x9d4   : > { %5974 = vmatmul.mubr.msk.f32.vlgmr.msra.gmra.mrb[20].mxu1 %vm1060_vm4, %v1720_v14 }
 0x9d5   : > { %6356 = vmatpush1.bf16.msra.mxu1 %v6355_v21 }
 0x9d6   : > { %6357 = vmatprep.subr.bf16.mxu1 %v6871_v19 }
 0x9d9   : > { %6359 = vmatpush1.bf16.msra.mxu1 %v6358_v24 }
 0x9da   : > { %6360 = vmatprep.subr.bf16.mxu1 %v6871_v19 }
 0x9dd   : > { %6362 = vmatpush1.bf16.msra.mxu1 %v6361_v28 }
 0x9de   : > { %6363 = vmatprep.subr.bf16.mxu1 %v6871_v19 }
 0x9e1   : > { %6365 = vmatpush1.bf16.msra.mxu1 %v6364_v31 }
 0x9e2   : > { %6366 = vmatprep.subr.bf16.mxu1 %v6871_v19 }
 0x9e5   : > { %6368 = vmatpush1.bf16.msra.mxu1 %v6367_v35  ;;  %v5450_v35 = vld [vmem:[%s8683_s3 + $0x2] ss:$0 sm:$0xff] }
 0x9e6   : > { %6369 = vmatprep.subr.bf16.mxu1 %v6871_v19 }
 0x9e9   : > { %6371 = vmatpush1.bf16.msra.mxu1 %v6370_v38 }
 0x9ea   : > { %6372 = vmatprep.subr.bf16.mxu1 %v6871_v19 }
 0x9ed   : > { %6374 = vmatpush1.bf16.msra.mxu1 %v6373_v41 }
 0x9ee   : > { %6375 = vmatprep.subr.bf16.mxu1 %v6871_v19 }
 0x9f1   : > { %6377 = vmatpush1.bf16.msra.mxu1 %v6376_v44 }
 0x9f2   : > { %6378 = vmatprep.subr.bf16.mxu1 %v6871_v19 }
 0x9f5   : > { %6380 = vmatpush1.bf16.msra.mxu1 %v6379_v48 }
 0x9f6   : > { %6381 = vmatprep.subr.bf16.mxu1 %v6871_v19 }
 0x9f9   : > { %6383 = vmatpush1.bf16.msra.mxu1 %v6382_v3 }
 0x9fa   : > { %6426 = vmatprep.subr.bf16.mxu1 %v6871_v19 }
 0xaa7   : > { %v1790_v49 = vpop.f32.mrb[20].mxu1 }
 0xaa8   : > { %v1791_v50 = vadd.f32 1e-05, %v1790_v49  ;;  %v5975_v51 = vpop.f32.mrb[21].mxu1 }
 0xaaa   : > { %6745 = vrsqrt.f32 %v1791_v50 }
 0xab4   : > { %v6746_v52 = vpop.eup %6745 }
 0xab5   : > { %v1798_v53 = vrot.slane %v6746_v52, %v7405_v5 }
 0xab7   : > { %v1799_v55 = vmul.f32 %v1798_v53, %v7562_v60  ;;  %v1800_v56 = vmul.f32 %v1798_v53, %v7564_v61 }
 0xab9   : > { %v1805_v58 = vmul.f32 %v5428_v54, %v1799_v55  ;;  %v1806_v59 = vmul.f32 %v5428_v54, %v1800_v56 }
 0xabb   : > { %v1811_v62 = vadd.f32 %v5429_v57, %v1805_v58  ;;  %v1812_v63 = vadd.f32 %v5429_v57, %v1806_v59 }
 0xabd   : > { %v1813_v60 = vmax.f32 %v1811_v62, 0.0  ;;  %v1814_v45 = vmax.f32 %v1812_v63, 0.0 }
 0xabf   : > { %1815 = vst.msk [vmem:[#allocation3 + $0x2] sm:$0xff] %vm433_vm8, %v1813_v60  ;;  %1816 = vst.msk [vmem:[#allocation3 + $0xa] sm:$0xff] %vm433_vm8, %v1814_v45 }
 0xac6   : > { %v1825_v61 = vld [vmem:[#allocation3 + $0x4] sm:$0xff]  ;;  %v1826_v25 = vld [vmem:[#allocation3 + $0xc] sm:$0xff] }
 0xac7   : > { %v1821_v7 = vld [vmem:[#allocation3 + $0x2] sm:$0xff]  ;;  %5451 = vmatprep.mubr.msk.f32.mxu1 %vm433_vm8, %v1825_v61  ;;  %v1824_v26 = vld [vmem:[#allocation3 + $0xb] sm:$0xff] }
 0xac8   : > { %v1819_v8 = vld [vmem:[#allocation3 + $0x1] sm:$0xff]  ;;  %1837 = vrot.lane.b32.xlu0 %v1821_v7, %s6868_s21  ;;  %v1820_v11 = vld [vmem:[#allocation3 + $0x9] sm:$0xff] }
 0xac9   : > { %1829 = vrot.lane.b32.xlu1 %v1819_v8, %s6865_s17  ;;  %v1823_v12 = vld [vmem:[#allocation3 + $0x3] sm:$0xff] }
 0xaca   : > { %v1822_v13 = vld [vmem:[#allocation3 + $0xa] sm:$0xff]  ;;  %v1817_v16 = vld [vmem:[#allocation3] sm:$0xff] }
 0xacb   : > { %v1818_v27 = vld [vmem:[#allocation3 + $0x8] sm:$0xff] }
 0xacc   : > { %1831 = vrot.lane.b32.xlu0 %v1820_v11, %s6865_s17 }
 0xacd   : > { %1845 = vrot.lane.b32.xlu1 %v1823_v12, %s6873_s14 }
 0xad0   : > { %1847 = vrot.lane.b32.xlu0 %v1824_v26, %s6873_s14 }
 0xad1   : > { %1839 = vrot.lane.b32.xlu1 %v1822_v13, %s6868_s21  ;;  %v5461_v13 = vld [vmem:[%s8682_s2 + $0x140] sm:$0xff] }
 0xb3a   : > { %v1838_v14 = vpop.permute.xlu0 %1837 }
 0xb3b   : > { %v1830_v15 = vpop.permute.xlu1 %1829 }
 0xb3c   : > { %v1851_v17 = vsel %vm433_vm8, %v1817_v16, %v1830_v15  ;;  %v5463_v15 = vld [vmem:[%s8682_s2 + $0x150] sm:$0xff] }
 0xb3d   : > { %v1853_v23 = vsel %vm556_vm1, %v1851_v17, %v1838_v14  ;;  %v5462_v14 = vld [vmem:[%s8682_s2 + $0x148] sm:$0xff]  ;;  %v5464_v17 = vld [vmem:[%s8682_s2 + $0x158] sm:$0xff] }
 0xb3e   : > { %v1832_v20 = vpop.permute.xlu0 %1831  ;;  %v6397_v16 = vpack.c.bf16 %v5462_v14, %v5461_v13 }
 0xb3f   : > { %v1846_v21 = vpop.permute.xlu1 %1845  ;;  %v1852_v29 = vsel %vm433_vm8, %v1818_v27, %v1832_v20  ;;  %v6400_v20 = vpack.c.bf16 %v5464_v17, %v5463_v15  ;;  %v5468_v27 = vld [vmem:[%s8682_s2 + $0x178] sm:$0xff] }
 0xb40   : > { %v1855_v24 = vsel %vm1363_vm6, %v1853_v23, %v1846_v21  ;;  %v5465_v21 = vld [vmem:[%s8682_s2 + $0x160] sm:$0xff]  ;;  %v5466_v23 = vld [vmem:[%s8682_s2 + $0x168] sm:$0xff] }
 0xb41   : > { %1954 = vmatmul.mubr.f32.vlgmr.msra.gmra.mrb[22].mxu1 %v1855_v24  ;;  %v6403_v24 = vpack.c.bf16 %v5466_v23, %v5465_v21 }
 0xb42   : > { %5452 = vmatprep.mubr.msk.f32.mxu1 %vm433_vm8, %v1826_v25  ;;  %v1848_v28 = vpop.permute.xlu0 %1847  ;;  %6428 = vmatpush3.bf16.msra.mxu1 %v7363_v18  ;;  %v5467_v25 = vld [vmem:[%s8682_s2 + $0x170] sm:$0xff] }
 0xb43   : > { %v1840_v30 = vpop.permute.xlu1 %1839  ;;  %6429 = vmatprep.subr.bf16.mxu1 %v6871_v19 }
 0xb44   : > { %v1854_v31 = vsel %vm556_vm1, %v1852_v29, %v1840_v30  ;;  %v5469_v29 = vld [vmem:[%s8682_s2 + $0x180] sm:$0xff]  ;;  %v5470_v30 = vld [vmem:[%s8682_s2 + $0x188] sm:$0xff] }
 0xb45   : > { %v1856_v33 = vsel %vm1363_vm6, %v1854_v31, %v1848_v28  ;;  %v6406_v28 = vpack.c.bf16 %v5468_v27, %v5467_v25  ;;  %v6409_v31 = vpack.c.bf16 %v5470_v30, %v5469_v29  ;;  %v5481_v29 = vld [vmem:[%s8683_s3 + $0x3] ss:$0 sm:$0xff] }
 0xb46   : > { %1959 = vmatmul.mubr.f32.gmra.mrb[24].mxu1 %v1856_v33  ;;  %v5471_v33 = vld [vmem:[%s8682_s2 + $0x190] sm:$0xff] }
 0xb47   : > { %6431 = vmatpush3.bf16.msra.mxu1 %v7375_v22  ;;  %6016 = vmatprep.mubr.msk.f32.mxu1 %vm6872_vm2, %v6860_v32 }
 0xb48   : > { %6019 = vmatprep.subr.mxu1 %v6860_v32 }
 0xc14   : > { %v1955_v34 = vpop.f32.mrb[22].mxu1 }
 0xc15   : > { %v1957_v36 = vpop.f32.mrb[23].mxu1  ;;  %v1956_v37 = vadd.f32 %v5450_v35, %v1955_v34  ;;  %v5472_v34 = vld [vmem:[%s8682_s2 + $0x198] sm:$0xff] }
 0xc16   : > { %v5473_v36 = vld [vmem:[%s8682_s2 + $0x1a0] sm:$0xff] }
 0xc17   : > { %v1966_v41 = vsel %vm433_vm8, %v1956_v37, 0.0 }
 0xc19   : > { %v1960_v38 = vpop.f32.mrb[24].mxu1 }
 0xc1a   : > { %v1961_v39 = vadd.f32 %v5450_v35, %v1960_v38  ;;  %v1962_v40 = vpop.f32.mrb[25].mxu1  ;;  %v6412_v35 = vpack.c.bf16 %v5472_v34, %v5471_v33 }
 0xc1b   : > { %v5476_v40 = vld [vmem:[%s8682_s2 + $0x1b8] sm:$0xff] }
 0xc1c   : > { %v1967_v42 = vsel %vm433_vm8, %v1961_v39, 0.0 }
 0xc1d   : > { %v1968_v43 = vadd.f32 %v1967_v42, %v1966_v41  ;;  %v5477_v42 = vld [vmem:[%s8682_s2 + $0x1c0] sm:$0xff] }
 0xc1f   : > { %v1969_v44 = vrot.slane %v1968_v43, 4 }
 0xc21   : > { %v1970_v46 = vadd.f32 %v1969_v44, %v1968_v43  ;;  %v5478_v43 = vld [vmem:[%s8682_s2 + $0x1c8] sm:$0xff] }
 0xc22   : > { %v6421_v44 = vpack.c.bf16 %v5478_v43, %v5477_v42 }
 0xc23   : > { %v1971_v47 = vrot.slane %v1970_v46, 2 }
 0xc25   : > { %v1972_v48 = vadd.f32 %v1971_v47, %v1970_v46 }
 0xc27   : > { %v1973_v49 = vrot.slane %v1972_v48, 1 }
 0xc29   : > { %v1974_v50 = vadd.f32 %v1973_v49, %v1972_v48 }
 0xc2b   : > { %5985 = vmatmul.mubr.msk.f32.vlgmr.msra.gmra.mrb[12].mxu0 %vm433_vm8, %v1974_v50 }
 0xc2c   : > { %5988 = vmatpush3.msk.msra.mxu0 %vm1064_vm3, %v7389_v0  ;;  %5989 = vmatprep.mubr.msk.f32.mxu0 %vm6872_vm2, %v6860_v32 }
 0xc2d   : > { %6390 = vmatprep.subr.bf16.mxu0 %v6871_v19 }
 0xcfe   : > { %v2044_v51 = vpop.f32.mrb[12].mxu0 }
 0xcff   : > { %v2048_v52 = vmul.f32 0.0078125, %v2044_v51  ;;  %v5986_v53 = vpop.f32.mrb[13].mxu0  ;;  %v5459_v51 = vld [vmem:[%s8684_s4 + $0x2] ss:$0 sm:$0xff] }
 0xd01   : > { %5990 = vmatmul.mubr.msk.f32.vlgmr.msra.gmra.mrb[14].mxu0 %vm1060_vm4, %v2048_v52 }
 0xd02   : > { %6392 = vmatpush3.bf16.msra.mxu0 %v7363_v18  ;;  %6000 = vmatprep.mubr.msk.f32.mxu0 %vm6872_vm2, %v6860_v32 }
 0xd03   : > { %6393 = vmatprep.subr.bf16.mxu0 %v6871_v19 }
 0xd06   : > { %6395 = vmatpush3.bf16.msra.mxu0 %v7375_v22 }
 0xd07   : > { %6003 = vmatprep.subr.mxu0 %v6860_v32 }
 0xdd4   : > { %v2118_v54 = vpop.f32.mrb[14].mxu0 }
 0xdd5   : > { %v2125_v55 = vrot.slane %v2118_v54, %v7405_v5  ;;  %v5991_v56 = vpop.f32.mrb[15].mxu0  ;;  %v5460_v54 = vld [vmem:[%s8685_s5 + $0x2] ss:$0 sm:$0xff] }
 0xdd7   : > { %v7699_v57 = vsub.f32 %v1956_v37, %v2125_v55  ;;  %v7701_v58 = vsub.f32 %v1961_v39, %v2125_v55  ;;  %v5474_v37 = vld [vmem:[%s8682_s2 + $0x1a8] sm:$0xff]  ;;  %v5475_v39 = vld [vmem:[%s8682_s2 + $0x1b0] sm:$0xff] }
 0xdd8   : > { %v6415_v38 = vpack.c.bf16 %v5474_v37, %v5473_v36  ;;  %v6418_v41 = vpack.c.bf16 %v5476_v40, %v5475_v39 }
 0xdd9   : > { %v2128_v59 = vmul.f32 %v7699_v57, %v7699_v57  ;;  %v2129_v62 = vmul.f32 %v7701_v58, %v7701_v58 }
 0xddb   : > { %v2130_v63 = vsel %vm433_vm8, %v2128_v59, 0.0  ;;  %v2131_v1 = vsel %vm433_vm8, %v2129_v62, 0.0 }
 0xddc   : > { %v2132_v2 = vadd.f32 %v2131_v1, %v2130_v63 }
 0xdde   : > { %v2133_v3 = vrot.slane %v2132_v2, 4 }
 0xde0   : > { %v2134_v60 = vadd.f32 %v2133_v3, %v2132_v2 }
 0xde2   : > { %v2135_v45 = vrot.slane %v2134_v60, 2 }
 0xde4   : > { %v2136_v61 = vadd.f32 %v2135_v45, %v2134_v60 }
 0xde6   : > { %v2137_v7 = vrot.slane %v2136_v61, 1 }
 0xde8   : > { %v2138_v8 = vadd.f32 %v2137_v7, %v2136_v61 }
 0xdea   : > { %6001 = vmatmul.mubr.msk.f32.vlgmr.msra.gmra.mrb[16].mxu0 %vm433_vm8, %v2138_v8 }
 0xdeb   : > { %6004 = vmatpush3.msk.msra.mxu0 %vm1064_vm3, %v7389_v0  ;;  %6005 = vmatprep.mubr.msk.f32.mxu0 %vm6872_vm2, %v6860_v32 }
 0xdec   : > { %6396 = vmatprep.subr.bf16.mxu0 %v6871_v19 }
 0xebd   : > { %v2208_v11 = vpop.f32.mrb[16].mxu0 }
 0xebe   : > { %v2212_v12 = vmul.f32 0.0078125, %v2208_v11  ;;  %v6002_v26 = vpop.f32.mrb[17].mxu0 }
 0xec0   : > { %6006 = vmatmul.mubr.msk.f32.vlgmr.msra.gmra.mrb[18].mxu0 %vm1060_vm4, %v2212_v12 }
 0xec1   : > { %6398 = vmatpush1.bf16.msra.mxu0 %v6397_v16 }
 0xec2   : > { %6399 = vmatprep.subr.bf16.mxu0 %v6871_v19 }
 0xec5   : > { %6401 = vmatpush1.bf16.msra.mxu0 %v6400_v20 }
 0xec6   : > { %6402 = vmatprep.subr.bf16.mxu0 %v6871_v19 }
 0xec9   : > { %6404 = vmatpush1.bf16.msra.mxu0 %v6403_v24 }
 0xeca   : > { %6405 = vmatprep.subr.bf16.mxu0 %v6871_v19 }
 0xecd   : > { %6407 = vmatpush1.bf16.msra.mxu0 %v6406_v28 }
 0xece   : > { %6408 = vmatprep.subr.bf16.mxu0 %v6871_v19 }
 0xed1   : > { %6410 = vmatpush1.bf16.msra.mxu0 %v6409_v31 }
 0xed2   : > { %6411 = vmatprep.subr.bf16.mxu0 %v6871_v19 }
 0xed5   : > { %6413 = vmatpush1.bf16.msra.mxu0 %v6412_v35 }
 0xed6   : > { %6414 = vmatprep.subr.bf16.mxu0 %v6871_v19 }
 0xed9   : > { %6416 = vmatpush1.bf16.msra.mxu0 %v6415_v38 }
 0xeda   : > { %6417 = vmatprep.subr.bf16.mxu0 %v6871_v19 }
 0xedd   : > { %6419 = vmatpush1.bf16.msra.mxu0 %v6418_v41 }
 0xede   : > { %6420 = vmatprep.subr.bf16.mxu0 %v6871_v19 }
 0xee1   : > { %6422 = vmatpush1.bf16.msra.mxu0 %v6421_v44 }
 0xee2   : > { %6423 = vmatprep.subr.bf16.mxu0 %v6871_v19 }
 0xf93   : > { %v2282_v46 = vpop.f32.mrb[18].mxu0 }
 0xf94   : > { %v2283_v47 = vadd.f32 1e-05, %v2282_v46  ;;  %v6007_v48 = vpop.f32.mrb[19].mxu0 }
 0xf96   : > { %6747 = vrsqrt.f32 %v2283_v47 }
 0xfa0   : > { %v6748_v49 = vpop.eup %6747 }
 0xfa1   : > { %v2290_v50 = vrot.slane %v6748_v49, %v7405_v5 }
 0xfa3   : > { %v2291_v52 = vmul.f32 %v2290_v50, %v7699_v57  ;;  %v2292_v53 = vmul.f32 %v2290_v50, %v7701_v58  ;;  %v5479_v57 = vld [vmem:[%s8682_s2 + $0x1d0] sm:$0xff]  ;;  %v5480_v58 = vld [vmem:[%s8682_s2 + $0x1d8] sm:$0xff] }
 0xfa4   : > { %v6424_v2 = vpack.c.bf16 %v5480_v58, %v5479_v57 }
 0xfa5   : > { %v2297_v55 = vmul.f32 %v5459_v51, %v2291_v52  ;;  %v2298_v56 = vmul.f32 %v5459_v51, %v2292_v53 }
 0xfa6   : > { %6425 = vmatpush1.bf16.msra.mxu0 %v6424_v2 }
 0xfa7   : > { %v2303_v59 = vadd.f32 %v5460_v54, %v2297_v55  ;;  %v2304_v62 = vadd.f32 %v5460_v54, %v2298_v56  ;;  %6468 = vmatprep.subr.bf16.mxu0 %v6871_v19 }
 0xfa9   : > { %v7790_v63 = vadd.f32 %v2303_v59, %v1321_v9  ;;  %v7794_v1 = vadd.f32 %v2304_v62, %v1322_v10 }
 0xfab   : > { %v2307_v3 = vmax.f32 %v7790_v63, 0.0  ;;  %v2308_v60 = vmax.f32 %v7794_v1, 0.0 }
 0xfad   : > { %2309 = vst.msk [vmem:[#allocation3 + $0x2] sm:$0xff] %vm433_vm8, %v2307_v3  ;;  %2310 = vst.msk [vmem:[#allocation3 + $0xa] sm:$0xff] %vm433_vm8, %v2308_v60 }
 0xfb4   : > { %v2319_v4 = vld [vmem:[#allocation3 + $0x4] sm:$0xff]  ;;  %v2320_v17 = vld [vmem:[#allocation3 + $0xc] sm:$0xff] }
 0xfb5   : > { %v2315_v6 = vld [vmem:[#allocation3 + $0x2] sm:$0xff]  ;;  %5482 = vmatprep.mubr.msk.f32.mxu0 %vm433_vm8, %v2319_v4  ;;  %v2318_v61 = vld [vmem:[#allocation3 + $0xb] sm:$0xff] }
 0xfb6   : > { %v2313_v9 = vld [vmem:[#allocation3 + $0x1] sm:$0xff]  ;;  %2331 = vrot.lane.b32.xlu0 %v2315_v6, %s6868_s21  ;;  %v2314_v10 = vld [vmem:[#allocation3 + $0x9] sm:$0xff] }
 0xfb7   : > { %2323 = vrot.lane.b32.xlu1 %v2313_v9, %s6865_s17  ;;  %v2317_v45 = vld [vmem:[#allocation3 + $0x3] sm:$0xff] }
 0xfb8   : > { %v2316_v7 = vld [vmem:[#allocation3 + $0xa] sm:$0xff]  ;;  %v2311_v12 = vld [vmem:[#allocation3] sm:$0xff] }
 0xfb9   : > { %v2312_v20 = vld [vmem:[#allocation3 + $0x8] sm:$0xff]  ;;  %v7864_v9 = vld [vmem:[%s8687_s7] sm:$0xf] }
 0xfba   : > { %2325 = vrot.lane.b32.xlu0 %v2314_v10, %s6865_s17 }
 0xfbb   : > { %2339 = vrot.lane.b32.xlu1 %v2317_v45, %s6873_s14 }
 0xfbe   : > { %2341 = vrot.lane.b32.xlu0 %v2318_v61, %s6873_s14 }
 0xfbf   : > { %2333 = vrot.lane.b32.xlu1 %v2316_v7, %s6868_s21  ;;  %v5492_v7 = vld [vmem:[%s8682_s2 + $0x1e0] sm:$0xff] }
0x1028   : > { %v2332_v8 = vpop.permute.xlu0 %2331 }
0x1029   : > { %v2324_v11 = vpop.permute.xlu1 %2323 }
0x102a   : > { %v2345_v26 = vsel %vm433_vm8, %v2311_v12, %v2324_v11  ;;  %v5494_v11 = vld [vmem:[%s8682_s2 + $0x1f0] sm:$0xff] }
0x102b   : > { %v2347_v15 = vsel %vm556_vm1, %v2345_v26, %v2332_v8  ;;  %v5493_v8 = vld [vmem:[%s8682_s2 + $0x1e8] sm:$0xff]  ;;  %v5495_v26 = vld [vmem:[%s8682_s2 + $0x1f8] sm:$0xff] }
0x102c   : > { %v2326_v13 = vpop.permute.xlu0 %2325  ;;  %v6439_v12 = vpack.c.bf16 %v5493_v8, %v5492_v7 }
0x102d   : > { %v2340_v14 = vpop.permute.xlu1 %2339  ;;  %v2346_v23 = vsel %vm433_vm8, %v2312_v20, %v2326_v13  ;;  %v6442_v13 = vpack.c.bf16 %v5495_v26, %v5494_v11  ;;  %v5499_v20 = vld [vmem:[%s8682_s2 + $0x218] sm:$0xff] }
0x102e   : > { %v2349_v16 = vsel %vm1363_vm6, %v2347_v15, %v2340_v14  ;;  %v5496_v14 = vld [vmem:[%s8682_s2 + $0x200] sm:$0xff]  ;;  %v5497_v15 = vld [vmem:[%s8682_s2 + $0x208] sm:$0xff] }
0x102f   : > { %2448 = vmatmul.mubr.f32.vlgmr.msra.gmra.mrb[20].mxu0 %v2349_v16  ;;  %v6445_v16 = vpack.c.bf16 %v5497_v15, %v5496_v14 }
0x1030   : > { %5483 = vmatprep.mubr.msk.f32.mxu0 %vm433_vm8, %v2320_v17  ;;  %v2342_v21 = vpop.permute.xlu0 %2341  ;;  %6470 = vmatpush3.bf16.msra.mxu0 %v7363_v18  ;;  %v5498_v17 = vld [vmem:[%s8682_s2 + $0x210] sm:$0xff] }
0x1031   : > { %v2334_v24 = vpop.permute.xlu1 %2333  ;;  %6471 = vmatprep.subr.bf16.mxu0 %v6871_v19 }
0x1032   : > { %v2348_v25 = vsel %vm556_vm1, %v2346_v23, %v2334_v24  ;;  %v5500_v23 = vld [vmem:[%s8682_s2 + $0x220] sm:$0xff]  ;;  %v5501_v24 = vld [vmem:[%s8682_s2 + $0x228] sm:$0xff] }
0x1033   : > { %v2350_v27 = vsel %vm1363_vm6, %v2348_v25, %v2342_v21  ;;  %v6448_v21 = vpack.c.bf16 %v5499_v20, %v5498_v17  ;;  %v6451_v25 = vpack.c.bf16 %v5501_v24, %v5500_v23 }
0x1034   : > { %2453 = vmatmul.mubr.f32.gmra.mrb[22].mxu0 %v2350_v27  ;;  %v5502_v27 = vld [vmem:[%s8682_s2 + $0x230] sm:$0xff] }
0x1035   : > { %6473 = vmatpush3.bf16.msra.mxu0 %v7375_v22  ;;  %6048 = vmatprep.mubr.msk.f32.mxu0 %vm6872_vm2, %v6860_v32 }
0x1036   : > { %6051 = vmatprep.subr.mxu0 %v6860_v32 }
0x1102   : > { %v2449_v28 = vpop.f32.mrb[20].mxu0 }
0x1103   : > { %v2451_v30 = vpop.f32.mrb[21].mxu0  ;;  %v2450_v31 = vadd.f32 %v5481_v29, %v2449_v28  ;;  %v5503_v28 = vld [vmem:[%s8682_s2 + $0x238] sm:$0xff] }
0x1104   : > { %v5504_v30 = vld [vmem:[%s8682_s2 + $0x240] sm:$0xff] }
0x1105   : > { %v2460_v36 = vsel %vm433_vm8, %v2450_v31, 0.0 }
0x1107   : > { %v2454_v33 = vpop.f32.mrb[22].mxu0 }
0x1108   : > { %v2455_v34 = vadd.f32 %v5481_v29, %v2454_v33  ;;  %v2456_v35 = vpop.f32.mrb[23].mxu0  ;;  %v6454_v29 = vpack.c.bf16 %v5503_v28, %v5502_v27 }
0x1109   : > { %v5507_v35 = vld [vmem:[%s8682_s2 + $0x258] sm:$0xff] }
0x110a   : > { %v2461_v37 = vsel %vm433_vm8, %v2455_v34, 0.0 }
0x110b   : > { %v2462_v38 = vadd.f32 %v2461_v37, %v2460_v36  ;;  %v5508_v37 = vld [vmem:[%s8682_s2 + $0x260] sm:$0xff] }
0x110d   : > { %v2463_v39 = vrot.slane %v2462_v38, 4 }
0x110f   : > { %v2464_v40 = vadd.f32 %v2463_v39, %v2462_v38  ;;  %v5509_v38 = vld [vmem:[%s8682_s2 + $0x268] sm:$0xff] }
0x1110   : > { %v6463_v39 = vpack.c.bf16 %v5509_v38, %v5508_v37 }
0x1111   : > { %v2465_v41 = vrot.slane %v2464_v40, 2 }
0x1113   : > { %v2466_v42 = vadd.f32 %v2465_v41, %v2464_v40 }
0x1115   : > { %v2467_v43 = vrot.slane %v2466_v42, 1 }
0x1117   : > { %v2468_v44 = vadd.f32 %v2467_v43, %v2466_v42 }
0x1119   : > { %6017 = vmatmul.mubr.msk.f32.vlgmr.msra.gmra.mrb[26].mxu1 %vm433_vm8, %v2468_v44 }
0x111a   : > { %6020 = vmatpush3.msk.msra.mxu1 %vm1064_vm3, %v7389_v0  ;;  %6021 = vmatprep.mubr.msk.f32.mxu1 %vm6872_vm2, %v6860_v32 }
0x111b   : > { %6432 = vmatprep.subr.bf16.mxu1 %v6871_v19 }
0x11ec   : > { %v2538_v46 = vpop.f32.mrb[26].mxu1 }
0x11ed   : > { %v2542_v47 = vmul.f32 0.0078125, %v2538_v46  ;;  %v6018_v48 = vpop.f32.mrb[27].mxu1  ;;  %v5490_v46 = vld [vmem:[%s8684_s4 + $0x3] ss:$0 sm:$0xff] }
0x11ef   : > { %6022 = vmatmul.mubr.msk.f32.vlgmr.msra.gmra.mrb[28].mxu1 %vm1060_vm4, %v2542_v47 }
0x11f0   : > { %6434 = vmatpush3.bf16.msra.mxu1 %v7363_v18  ;;  %6032 = vmatprep.mubr.msk.f32.mxu1 %vm6872_vm2, %v6860_v32 }
0x11f1   : > { %6435 = vmatprep.subr.bf16.mxu1 %v6871_v19 }
0x11f4   : > { %6437 = vmatpush3.bf16.msra.mxu1 %v7375_v22 }
0x11f5   : > { %6035 = vmatprep.subr.mxu1 %v6860_v32 }
0x12c2   : > { %v2612_v0 = vpop.f32.mrb[28].mxu1 }
0x12c3   : > { %v2619_v49 = vrot.slane %v2612_v0, %v7405_v5  ;;  %v6023_v50 = vpop.f32.mrb[29].mxu1  ;;  %v5491_v0 = vld [vmem:[%s8685_s5 + $0x3] ss:$0 sm:$0xff] }
0x12c5   : > { %v7850_v51 = vsub.f32 %v2450_v31, %v2619_v49  ;;  %v7852_v52 = vsub.f32 %v2455_v34, %v2619_v49  ;;  %v5505_v31 = vld [vmem:[%s8682_s2 + $0x248] sm:$0xff]  ;;  %v5506_v34 = vld [vmem:[%s8682_s2 + $0x250] sm:$0xff] }
0x12c6   : > { %v6457_v33 = vpack.c.bf16 %v5505_v31, %v5504_v30  ;;  %v6460_v36 = vpack.c.bf16 %v5507_v35, %v5506_v34 }
0x12c7   : > { %v2622_v53 = vmul.f32 %v7850_v51, %v7850_v51  ;;  %v2623_v54 = vmul.f32 %v7852_v52, %v7852_v52 }
0x12c9   : > { %v2624_v55 = vsel %vm433_vm8, %v2622_v53, 0.0  ;;  %v2625_v56 = vsel %vm433_vm8, %v2623_v54, 0.0 }
0x12ca   : > { %v2626_v59 = vadd.f32 %v2625_v56, %v2624_v55  ;;  %v5510_v55 = vld [vmem:[%s8682_s2 + $0x270] sm:$0xff]  ;;  %v5511_v56 = vld [vmem:[%s8682_s2 + $0x278] sm:$0xff] }
0x12cc   : > { %v2627_v62 = vrot.slane %v2626_v59, 4 }
0x12ce   : > { %v2628_v57 = vadd.f32 %v2627_v62, %v2626_v59  ;;  %v6466_v59 = vpack.c.bf16 %v5511_v56, %v5510_v55 }
0x12d0   : > { %v2629_v58 = vrot.slane %v2628_v57, 2 }
0x12d2   : > { %v2630_v2 = vadd.f32 %v2629_v58, %v2628_v57 }
0x12d4   : > { %v2631_v4 = vrot.slane %v2630_v2, 1 }
0x12d6   : > { %v2632_v6 = vadd.f32 %v2631_v4, %v2630_v2 }
0x12d8   : > { %6033 = vmatmul.mubr.msk.f32.vlgmr.msra.gmra.mrb[30].mxu1 %vm433_vm8, %v2632_v6 }
0x12d9   : > { %6036 = vmatpush3.msk.msra.mxu1 %vm1064_vm3, %v7864_v9  ;;  %6037 = vmatprep.mubr.msk.f32.mxu1 %vm6872_vm2, %v6860_v32 }
0x12da   : > { %6438 = vmatprep.subr.bf16.mxu1 %v6871_v19 }
0x13ab   : > { %v2702_v10 = vpop.f32.mrb[30].mxu1 }
0x13ac   : > { %v2706_v45 = vmul.f32 0.0078125, %v2702_v10  ;;  %v6034_v61 = vpop.f32.mrb[31].mxu1 }
0x13ae   : > { %6038 = vmatmul.mubr.msk.f32.vlgmr.msra.gmra.mrb[32].mxu1 %vm1060_vm4, %v2706_v45 }
0x13af   : > { %6440 = vmatpush1.bf16.msra.mxu1 %v6439_v12 }
0x13b0   : > { %6441 = vmatprep.subr.bf16.mxu1 %v6871_v19 }
0x13b3   : > { %6443 = vmatpush1.bf16.msra.mxu1 %v6442_v13 }
0x13b4   : > { %6444 = vmatprep.subr.bf16.mxu1 %v6871_v19 }
0x13b7   : > { %6446 = vmatpush1.bf16.msra.mxu1 %v6445_v16 }
0x13b8   : > { %6447 = vmatprep.subr.bf16.mxu1 %v6871_v19 }
0x13bb   : > { %6449 = vmatpush1.bf16.msra.mxu1 %v6448_v21 }
0x13bc   : > { %6450 = vmatprep.subr.bf16.mxu1 %v6871_v19 }
0x13bf   : > { %6452 = vmatpush1.bf16.msra.mxu1 %v6451_v25  ;;  %v5512_v25 = vld [vmem:[%s8683_s3 + $0x4] ss:$0 sm:$0xff] }
0x13c0   : > { %6453 = vmatprep.subr.bf16.mxu1 %v6871_v19 }
0x13c3   : > { %6455 = vmatpush1.bf16.msra.mxu1 %v6454_v29 }
0x13c4   : > { %6456 = vmatprep.subr.bf16.mxu1 %v6871_v19 }
0x13c7   : > { %6458 = vmatpush1.bf16.msra.mxu1 %v6457_v33 }
0x13c8   : > { %6459 = vmatprep.subr.bf16.mxu1 %v6871_v19 }
0x13cb   : > { %6461 = vmatpush1.bf16.msra.mxu1 %v6460_v36 }
0x13cc   : > { %6462 = vmatprep.subr.bf16.mxu1 %v6871_v19 }
0x13cf   : > { %6464 = vmatpush1.bf16.msra.mxu1 %v6463_v39 }
0x13d0   : > { %6465 = vmatprep.subr.bf16.mxu1 %v6871_v19 }
0x13d3   : > { %6467 = vmatpush1.bf16.msra.mxu1 %v6466_v59 }
0x13d4   : > { %6510 = vmatprep.subr.bf16.mxu1 %v6871_v19 }
0x1481   : > { %v2776_v40 = vpop.f32.mrb[32].mxu1 }
0x1482   : > { %v2777_v41 = vadd.f32 1e-05, %v2776_v40  ;;  %v6039_v42 = vpop.f32.mrb[33].mxu1 }
0x1484   : > { %6749 = vrsqrt.f32 %v2777_v41 }
0x148e   : > { %v6750_v43 = vpop.eup %6749 }
0x148f   : > { %v2784_v44 = vrot.slane %v6750_v43, %v7405_v5 }
0x1491   : > { %v2785_v47 = vmul.f32 %v2784_v44, %v7850_v51  ;;  %v2786_v48 = vmul.f32 %v2784_v44, %v7852_v52 }
0x1493   : > { %v2791_v49 = vmul.f32 %v5490_v46, %v2785_v47  ;;  %v2792_v50 = vmul.f32 %v5490_v46, %v2786_v48 }
0x1495   : > { %v2797_v53 = vadd.f32 %v5491_v0, %v2791_v49  ;;  %v2798_v54 = vadd.f32 %v5491_v0, %v2792_v50 }
0x1497   : > { %v2799_v51 = vmax.f32 %v2797_v53, 0.0  ;;  %v2800_v62 = vmax.f32 %v2798_v54, 0.0 }
0x1499   : > { %2801 = vst.msk [vmem:[#allocation3 + $0x2] sm:$0xff] %vm433_vm8, %v2799_v51  ;;  %2802 = vst.msk [vmem:[#allocation3 + $0xa] sm:$0xff] %vm433_vm8, %v2800_v62 }
0x14a0   : > { %v2811_v52 = vld [vmem:[#allocation3 + $0x4] sm:$0xff]  ;;  %v2812_v14 = vld [vmem:[#allocation3 + $0xc] sm:$0xff] }
0x14a1   : > { %v2807_v57 = vld [vmem:[#allocation3 + $0x2] sm:$0xff]  ;;  %5513 = vmatprep.mubr.msk.f32.mxu1 %vm433_vm8, %v2811_v52  ;;  %v2810_v6 = vld [vmem:[#allocation3 + $0xb] sm:$0xff] }
0x14a2   : > { %v2805_v58 = vld [vmem:[#allocation3 + $0x1] sm:$0xff]  ;;  %2823 = vrot.lane.b32.xlu0 %v2807_v57, %s6868_s21  ;;  %v2806_v2 = vld [vmem:[#allocation3 + $0x9] sm:$0xff] }
0x14a3   : > { %2815 = vrot.lane.b32.xlu1 %v2805_v58, %s6865_s17  ;;  %v2809_v4 = vld [vmem:[#allocation3 + $0x3] sm:$0xff] }
0x14a4   : > { %v2808_v10 = vld [vmem:[#allocation3 + $0xa] sm:$0xff]  ;;  %v2803_v7 = vld [vmem:[#allocation3] sm:$0xff] }
0x14a5   : > { %v2804_v15 = vld [vmem:[#allocation3 + $0x8] sm:$0xff] }
0x14a6   : > { %2817 = vrot.lane.b32.xlu0 %v2806_v2, %s6865_s17 }
0x14a7   : > { %2831 = vrot.lane.b32.xlu1 %v2809_v4, %s6873_s14 }
0x14aa   : > { %2833 = vrot.lane.b32.xlu0 %v2810_v6, %s6873_s14 }
0x14ab   : > { %2825 = vrot.lane.b32.xlu1 %v2808_v10, %s6868_s21  ;;  %v5523_v10 = vld [vmem:[%s8682_s2 + $0x280] sm:$0xff] }
0x1514   : > { %v2824_v45 = vpop.permute.xlu0 %2823 }
0x1515   : > { %v2816_v61 = vpop.permute.xlu1 %2815 }
0x1516   : > { %v2837_v8 = vsel %vm433_vm8, %v2803_v7, %v2816_v61  ;;  %v5525_v61 = vld [vmem:[%s8682_s2 + $0x290] sm:$0xff] }
0x1517   : > { %v2839_v26 = vsel %vm556_vm1, %v2837_v8, %v2824_v45  ;;  %v5524_v45 = vld [vmem:[%s8682_s2 + $0x288] sm:$0xff]  ;;  %v5526_v8 = vld [vmem:[%s8682_s2 + $0x298] sm:$0xff] }
0x1518   : > { %v2818_v11 = vpop.permute.xlu0 %2817  ;;  %v6481_v7 = vpack.c.bf16 %v5524_v45, %v5523_v10 }
0x1519   : > { %v2832_v12 = vpop.permute.xlu1 %2831  ;;  %v2838_v17 = vsel %vm433_vm8, %v2804_v15, %v2818_v11  ;;  %v6484_v11 = vpack.c.bf16 %v5526_v8, %v5525_v61  ;;  %v5530_v15 = vld [vmem:[%s8682_s2 + $0x2b8] sm:$0xff] }
0x151a   : > { %v2841_v13 = vsel %vm1363_vm6, %v2839_v26, %v2832_v12  ;;  %v5527_v12 = vld [vmem:[%s8682_s2 + $0x2a0] sm:$0xff]  ;;  %v5528_v26 = vld [vmem:[%s8682_s2 + $0x2a8] sm:$0xff] }
0x151b   : > { %2940 = vmatmul.mubr.f32.vlgmr.msra.gmra.mrb[34].mxu1 %v2841_v13  ;;  %v6487_v13 = vpack.c.bf16 %v5528_v26, %v5527_v12 }
0x151c   : > { %5514 = vmatprep.mubr.msk.f32.mxu1 %vm433_vm8, %v2812_v14  ;;  %v2834_v16 = vpop.permute.xlu0 %2833  ;;  %6512 = vmatpush3.bf16.msra.mxu1 %v7363_v18  ;;  %v5529_v14 = vld [vmem:[%s8682_s2 + $0x2b0] sm:$0xff] }
0x151d   : > { %v2826_v20 = vpop.permute.xlu1 %2825  ;;  %6513 = vmatprep.subr.bf16.mxu1 %v6871_v19 }
0x151e   : > { %v2840_v21 = vsel %vm556_vm1, %v2838_v17, %v2826_v20  ;;  %v5531_v17 = vld [vmem:[%s8682_s2 + $0x2c0] sm:$0xff]  ;;  %v5532_v20 = vld [vmem:[%s8682_s2 + $0x2c8] sm:$0xff] }
0x151f   : > { %v2842_v23 = vsel %vm1363_vm6, %v2840_v21, %v2834_v16  ;;  %v6490_v16 = vpack.c.bf16 %v5530_v15, %v5529_v14  ;;  %v6493_v21 = vpack.c.bf16 %v5532_v20, %v5531_v17  ;;  %v5543_v17 = vld [vmem:[%s8683_s3 + $0x5] ss:$0 sm:$0xff] }
0x1520   : > { %2945 = vmatmul.mubr.f32.gmra.mrb[36].mxu1 %v2842_v23  ;;  %v5533_v23 = vld [vmem:[%s8682_s2 + $0x2d0] sm:$0xff] }
0x1521   : > { %6515 = vmatpush3.bf16.msra.mxu1 %v7375_v22  ;;  %6080 = vmatprep.mubr.msk.f32.mxu1 %vm6872_vm2, %v6860_v32 }
0x1522   : > { %6083 = vmatprep.subr.mxu1 %v6860_v32 }
0x15ee   : > { %v2941_v24 = vpop.f32.mrb[34].mxu1 }
0x15ef   : > { %v2943_v27 = vpop.f32.mrb[35].mxu1  ;;  %v2942_v28 = vadd.f32 %v5512_v25, %v2941_v24  ;;  %v5534_v24 = vld [vmem:[%s8682_s2 + $0x2d8] sm:$0xff] }
0x15f0   : > { %v5535_v27 = vld [vmem:[%s8682_s2 + $0x2e0] sm:$0xff] }
0x15f1   : > { %v2952_v33 = vsel %vm433_vm8, %v2942_v28, 0.0 }
0x15f3   : > { %v2946_v29 = vpop.f32.mrb[36].mxu1 }
0x15f4   : > { %v2947_v30 = vadd.f32 %v5512_v25, %v2946_v29  ;;  %v2948_v31 = vpop.f32.mrb[37].mxu1  ;;  %v6496_v25 = vpack.c.bf16 %v5534_v24, %v5533_v23 }
0x15f5   : > { %v5538_v31 = vld [vmem:[%s8682_s2 + $0x2f8] sm:$0xff] }
0x15f6   : > { %v2953_v34 = vsel %vm433_vm8, %v2947_v30, 0.0 }
0x15f7   : > { %v2954_v35 = vadd.f32 %v2953_v34, %v2952_v33  ;;  %v5539_v34 = vld [vmem:[%s8682_s2 + $0x300] sm:$0xff] }
0x15f9   : > { %v2955_v36 = vrot.slane %v2954_v35, 4 }
0x15fb   : > { %v2956_v37 = vadd.f32 %v2955_v36, %v2954_v35  ;;  %v5540_v35 = vld [vmem:[%s8682_s2 + $0x308] sm:$0xff] }
0x15fc   : > { %v6505_v36 = vpack.c.bf16 %v5540_v35, %v5539_v34 }
0x15fd   : > { %v2957_v38 = vrot.slane %v2956_v37, 2 }
0x15ff   : > { %v2958_v39 = vadd.f32 %v2957_v38, %v2956_v37 }
0x1601   : > { %v2959_v40 = vrot.slane %v2958_v39, 1 }
0x1603   : > { %v2960_v41 = vadd.f32 %v2959_v40, %v2958_v39 }
0x1605   : > { %6049 = vmatmul.mubr.msk.f32.vlgmr.msra.gmra.mrb[24].mxu0 %vm433_vm8, %v2960_v41 }
0x1606   : > { %6052 = vmatpush3.msk.msra.mxu0 %vm1064_vm3, %v7864_v9  ;;  %6053 = vmatprep.mubr.msk.f32.mxu0 %vm6872_vm2, %v6860_v32 }
0x1607   : > { %6474 = vmatprep.subr.bf16.mxu0 %v6871_v19 }
0x16d8   : > { %v3030_v42 = vpop.f32.mrb[24].mxu0 }
0x16d9   : > { %v3034_v43 = vmul.f32 0.0078125, %v3030_v42  ;;  %v6050_v44 = vpop.f32.mrb[25].mxu0  ;;  %v5521_v42 = vld [vmem:[%s8684_s4 + $0x4] ss:$0 sm:$0xff] }
0x16db   : > { %6054 = vmatmul.mubr.msk.f32.vlgmr.msra.gmra.mrb[26].mxu0 %vm1060_vm4, %v3034_v43 }
0x16dc   : > { %6476 = vmatpush3.bf16.msra.mxu0 %v7363_v18  ;;  %6064 = vmatprep.mubr.msk.f32.mxu0 %vm6872_vm2, %v6860_v32 }
0x16dd   : > { %6477 = vmatprep.subr.bf16.mxu0 %v6871_v19 }
0x16e0   : > { %6479 = vmatpush3.bf16.msra.mxu0 %v7375_v22 }
0x16e1   : > { %6067 = vmatprep.subr.mxu0 %v6860_v32 }
0x17ae   : > { %v3104_v46 = vpop.f32.mrb[26].mxu0 }
0x17af   : > { %v3111_v47 = vrot.slane %v3104_v46, %v7405_v5  ;;  %v6055_v48 = vpop.f32.mrb[27].mxu0  ;;  %v5522_v46 = vld [vmem:[%s8685_s5 + $0x4] ss:$0 sm:$0xff] }
0x17b1   : > { %v7992_v0 = vsub.f32 %v2942_v28, %v3111_v47  ;;  %v7994_v49 = vsub.f32 %v2947_v30, %v3111_v47  ;;  %v5536_v28 = vld [vmem:[%s8682_s2 + $0x2e8] sm:$0xff]  ;;  %v5537_v30 = vld [vmem:[%s8682_s2 + $0x2f0] sm:$0xff] }
0x17b2   : > { %v6499_v29 = vpack.c.bf16 %v5536_v28, %v5535_v27  ;;  %v6502_v33 = vpack.c.bf16 %v5538_v31, %v5537_v30 }
0x17b3   : > { %v3114_v50 = vmul.f32 %v7992_v0, %v7992_v0  ;;  %v3115_v53 = vmul.f32 %v7994_v49, %v7994_v49 }
0x17b5   : > { %v3116_v54 = vsel %vm433_vm8, %v3114_v50, 0.0  ;;  %v3117_v55 = vsel %vm433_vm8, %v3115_v53, 0.0 }
0x17b6   : > { %v3118_v56 = vadd.f32 %v3117_v55, %v3116_v54 }
0x17b8   : > { %v3119_v59 = vrot.slane %v3118_v56, 4 }
0x17ba   : > { %v3120_v51 = vadd.f32 %v3119_v59, %v3118_v56 }
0x17bc   : > { %v3121_v62 = vrot.slane %v3120_v51, 2 }
0x17be   : > { %v3122_v52 = vadd.f32 %v3121_v62, %v3120_v51 }
0x17c0   : > { %v3123_v57 = vrot.slane %v3122_v52, 1 }
0x17c2   : > { %v3124_v58 = vadd.f32 %v3123_v57, %v3122_v52 }
0x17c4   : > { %6065 = vmatmul.mubr.msk.f32.vlgmr.msra.gmra.mrb[28].mxu0 %vm433_vm8, %v3124_v58 }
0x17c5   : > { %6068 = vmatpush3.msk.msra.mxu0 %vm1064_vm3, %v7864_v9  ;;  %6069 = vmatprep.mubr.msk.f32.mxu0 %vm6872_vm2, %v6860_v32 }
0x17c6   : > { %6480 = vmatprep.subr.bf16.mxu0 %v6871_v19 }
0x1897   : > { %v3194_v2 = vpop.f32.mrb[28].mxu0 }
0x1898   : > { %v3198_v4 = vmul.f32 0.0078125, %v3194_v2  ;;  %v6066_v6 = vpop.f32.mrb[29].mxu0 }
0x189a   : > { %6070 = vmatmul.mubr.msk.f32.vlgmr.msra.gmra.mrb[30].mxu0 %vm1060_vm4, %v3198_v4 }
0x189b   : > { %6482 = vmatpush1.bf16.msra.mxu0 %v6481_v7 }
0x189c   : > { %6483 = vmatprep.subr.bf16.mxu0 %v6871_v19 }
0x189f   : > { %6485 = vmatpush1.bf16.msra.mxu0 %v6484_v11 }
0x18a0   : > { %6486 = vmatprep.subr.bf16.mxu0 %v6871_v19 }
0x18a3   : > { %6488 = vmatpush1.bf16.msra.mxu0 %v6487_v13 }
0x18a4   : > { %6489 = vmatprep.subr.bf16.mxu0 %v6871_v19 }
0x18a7   : > { %6491 = vmatpush1.bf16.msra.mxu0 %v6490_v16 }
0x18a8   : > { %6492 = vmatprep.subr.bf16.mxu0 %v6871_v19 }
0x18ab   : > { %6494 = vmatpush1.bf16.msra.mxu0 %v6493_v21 }
0x18ac   : > { %6495 = vmatprep.subr.bf16.mxu0 %v6871_v19 }
0x18af   : > { %6497 = vmatpush1.bf16.msra.mxu0 %v6496_v25 }
0x18b0   : > { %6498 = vmatprep.subr.bf16.mxu0 %v6871_v19 }
0x18b3   : > { %6500 = vmatpush1.bf16.msra.mxu0 %v6499_v29 }
0x18b4   : > { %6501 = vmatprep.subr.bf16.mxu0 %v6871_v19 }
0x18b7   : > { %6503 = vmatpush1.bf16.msra.mxu0 %v6502_v33 }
0x18b8   : > { %6504 = vmatprep.subr.bf16.mxu0 %v6871_v19 }
0x18bb   : > { %6506 = vmatpush1.bf16.msra.mxu0 %v6505_v36 }
0x18bc   : > { %6507 = vmatprep.subr.bf16.mxu0 %v6871_v19 }
0x196d   : > { %v3268_v37 = vpop.f32.mrb[30].mxu0 }
0x196e   : > { %v3269_v38 = vadd.f32 1e-05, %v3268_v37  ;;  %v6071_v39 = vpop.f32.mrb[31].mxu0 }
0x1970   : > { %6751 = vrsqrt.f32 %v3269_v38 }
0x197a   : > { %v6752_v40 = vpop.eup %6751 }
0x197b   : > { %v3276_v41 = vrot.slane %v6752_v40, %v7405_v5 }
0x197d   : > { %v3277_v43 = vmul.f32 %v3276_v41, %v7992_v0  ;;  %v3278_v44 = vmul.f32 %v3276_v41, %v7994_v49  ;;  %v5541_v0 = vld [vmem:[%s8682_s2 + $0x310] sm:$0xff]  ;;  %v5542_v49 = vld [vmem:[%s8682_s2 + $0x318] sm:$0xff] }
0x197e   : > { %v6508_v56 = vpack.c.bf16 %v5542_v49, %v5541_v0 }
0x197f   : > { %v3283_v47 = vmul.f32 %v5521_v42, %v3277_v43  ;;  %v3284_v48 = vmul.f32 %v5521_v42, %v3278_v44 }
0x1980   : > { %6509 = vmatpush1.bf16.msra.mxu0 %v6508_v56 }
0x1981   : > { %v3289_v50 = vadd.f32 %v5522_v46, %v3283_v47  ;;  %v3290_v53 = vadd.f32 %v5522_v46, %v3284_v48  ;;  %6552 = vmatprep.subr.bf16.mxu0 %v6871_v19 }
0x1983   : > { %v8083_v54 = vadd.f32 %v3289_v50, %v2307_v3  ;;  %v8087_v55 = vadd.f32 %v3290_v53, %v2308_v60 }
0x1985   : > { %v3293_v59 = vmax.f32 %v8083_v54, 0.0  ;;  %v3294_v51 = vmax.f32 %v8087_v55, 0.0 }
0x1987   : > { %3295 = vst.msk [vmem:[#allocation3 + $0x2] sm:$0xff] %vm433_vm8, %v3293_v59  ;;  %3296 = vst.msk [vmem:[#allocation3 + $0xa] sm:$0xff] %vm433_vm8, %v3294_v51 }
0x198e   : > { %v3305_v63 = vld [vmem:[#allocation3 + $0x4] sm:$0xff]  ;;  %v3306_v8 = vld [vmem:[#allocation3 + $0xc] sm:$0xff] }
0x198f   : > { %v3301_v1 = vld [vmem:[#allocation3 + $0x2] sm:$0xff]  ;;  %5544 = vmatprep.mubr.msk.f32.mxu0 %vm433_vm8, %v3305_v63  ;;  %v3304_v52 = vld [vmem:[#allocation3 + $0xb] sm:$0xff] }
0x1990   : > { %v3299_v3 = vld [vmem:[#allocation3 + $0x1] sm:$0xff]  ;;  %3317 = vrot.lane.b32.xlu0 %v3301_v1, %s6868_s21  ;;  %v3300_v60 = vld [vmem:[#allocation3 + $0x9] sm:$0xff] }
0x1991   : > { %3309 = vrot.lane.b32.xlu1 %v3299_v3, %s6865_s17  ;;  %v3303_v62 = vld [vmem:[#allocation3 + $0x3] sm:$0xff] }
0x1992   : > { %v3302_v57 = vld [vmem:[#allocation3 + $0xa] sm:$0xff]  ;;  %v3297_v4 = vld [vmem:[#allocation3] sm:$0xff] }
0x1993   : > { %v3298_v11 = vld [vmem:[#allocation3 + $0x8] sm:$0xff] }
0x1994   : > { %3311 = vrot.lane.b32.xlu0 %v3300_v60, %s6865_s17 }
0x1995   : > { %3325 = vrot.lane.b32.xlu1 %v3303_v62, %s6873_s14 }
0x1998   : > { %3327 = vrot.lane.b32.xlu0 %v3304_v52, %s6873_s14 }
0x1999   : > { %3319 = vrot.lane.b32.xlu1 %v3302_v57, %s6868_s21  ;;  %v5554_v57 = vld [vmem:[%s8682_s2 + $0x320] sm:$0xff] }
0x1a02   : > { %v3318_v58 = vpop.permute.xlu0 %3317 }
0x1a03   : > { %v3310_v2 = vpop.permute.xlu1 %3309 }
0x1a04   : > { %v3331_v6 = vsel %vm433_vm8, %v3297_v4, %v3310_v2  ;;  %v5556_v2 = vld [vmem:[%s8682_s2 + $0x330] sm:$0xff] }
0x1a05   : > { %v3333_v61 = vsel %vm556_vm1, %v3331_v6, %v3318_v58  ;;  %v5555_v58 = vld [vmem:[%s8682_s2 + $0x328] sm:$0xff]  ;;  %v5557_v6 = vld [vmem:[%s8682_s2 + $0x338] sm:$0xff] }
0x1a06   : > { %v3312_v10 = vpop.permute.xlu0 %3311  ;;  %v6523_v4 = vpack.c.bf16 %v5555_v58, %v5554_v57 }
0x1a07   : > { %v3326_v45 = vpop.permute.xlu1 %3325  ;;  %v3332_v26 = vsel %vm433_vm8, %v3298_v11, %v3312_v10  ;;  %v6526_v10 = vpack.c.bf16 %v5557_v6, %v5556_v2  ;;  %v5561_v11 = vld [vmem:[%s8682_s2 + $0x358] sm:$0xff] }
0x1a08   : > { %v3335_v7 = vsel %vm1363_vm6, %v3333_v61, %v3326_v45  ;;  %v5558_v45 = vld [vmem:[%s8682_s2 + $0x340] sm:$0xff]  ;;  %v5559_v61 = vld [vmem:[%s8682_s2 + $0x348] sm:$0xff] }
0x1a09   : > { %3434 = vmatmul.mubr.f32.vlgmr.msra.gmra.mrb[32].mxu0 %v3335_v7  ;;  %v6529_v7 = vpack.c.bf16 %v5559_v61, %v5558_v45 }
0x1a0a   : > { %5545 = vmatprep.mubr.msk.f32.mxu0 %vm433_vm8, %v3306_v8  ;;  %v3328_v12 = vpop.permute.xlu0 %3327  ;;  %6554 = vmatpush3.bf16.msra.mxu0 %v7363_v18  ;;  %v5560_v8 = vld [vmem:[%s8682_s2 + $0x350] sm:$0xff] }
0x1a0b   : > { %v3320_v13 = vpop.permute.xlu1 %3319  ;;  %6555 = vmatprep.subr.bf16.mxu0 %v6871_v19 }
0x1a0c   : > { %v3334_v14 = vsel %vm556_vm1, %v3332_v26, %v3320_v13  ;;  %v5562_v26 = vld [vmem:[%s8682_s2 + $0x360] sm:$0xff]  ;;  %v5563_v13 = vld [vmem:[%s8682_s2 + $0x368] sm:$0xff] }
0x1a0d   : > { %v3336_v15 = vsel %vm1363_vm6, %v3334_v14, %v3328_v12  ;;  %v6532_v12 = vpack.c.bf16 %v5561_v11, %v5560_v8  ;;  %v6535_v14 = vpack.c.bf16 %v5563_v13, %v5562_v26 }
0x1a0e   : > { %3439 = vmatmul.mubr.f32.gmra.mrb[34].mxu0 %v3336_v15  ;;  %v5564_v15 = vld [vmem:[%s8682_s2 + $0x370] sm:$0xff] }
0x1a0f   : > { %6557 = vmatpush3.bf16.msra.mxu0 %v7375_v22  ;;  %6112 = vmatprep.mubr.msk.f32.mxu0 %vm6872_vm2, %v6860_v32 }
0x1a10   : > { %6115 = vmatprep.subr.mxu0 %v6860_v32 }
0x1adc   : > { %v3435_v16 = vpop.f32.mrb[32].mxu0 }
0x1add   : > { %v3437_v20 = vpop.f32.mrb[33].mxu0  ;;  %v3436_v21 = vadd.f32 %v5543_v17, %v3435_v16  ;;  %v5565_v16 = vld [vmem:[%s8682_s2 + $0x378] sm:$0xff] }
0x1ade   : > { %v5566_v20 = vld [vmem:[%s8682_s2 + $0x380] sm:$0xff] }
0x1adf   : > { %v3446_v27 = vsel %vm433_vm8, %v3436_v21, 0.0 }
0x1ae1   : > { %v3440_v23 = vpop.f32.mrb[34].mxu0 }
0x1ae2   : > { %v3441_v24 = vadd.f32 %v5543_v17, %v3440_v23  ;;  %v3442_v25 = vpop.f32.mrb[35].mxu0  ;;  %v6538_v17 = vpack.c.bf16 %v5565_v16, %v5564_v15 }
0x1ae3   : > { %v5569_v25 = vld [vmem:[%s8682_s2 + $0x398] sm:$0xff] }
0x1ae4   : > { %v3447_v28 = vsel %vm433_vm8, %v3441_v24, 0.0 }
0x1ae5   : > { %v3448_v29 = vadd.f32 %v3447_v28, %v3446_v27  ;;  %v5570_v28 = vld [vmem:[%s8682_s2 + $0x3a0] sm:$0xff] }
0x1ae7   : > { %v3449_v30 = vrot.slane %v3448_v29, 4 }
0x1ae9   : > { %v3450_v31 = vadd.f32 %v3449_v30, %v3448_v29  ;;  %v5571_v29 = vld [vmem:[%s8682_s2 + $0x3a8] sm:$0xff] }
0x1aea   : > { %v6547_v30 = vpack.c.bf16 %v5571_v29, %v5570_v28 }
0x1aeb   : > { %v3451_v33 = vrot.slane %v3450_v31, 2 }
0x1aed   : > { %v3452_v34 = vadd.f32 %v3451_v33, %v3450_v31 }
0x1aef   : > { %v3453_v35 = vrot.slane %v3452_v34, 1 }
0x1af1   : > { %v3454_v36 = vadd.f32 %v3453_v35, %v3452_v34 }
0x1af3   : > { %6081 = vmatmul.mubr.msk.f32.vlgmr.msra.gmra.mrb[38].mxu1 %vm433_vm8, %v3454_v36 }
0x1af4   : > { %6084 = vmatpush3.msk.msra.mxu1 %vm1064_vm3, %v7864_v9  ;;  %6085 = vmatprep.mubr.msk.f32.mxu1 %vm6872_vm2, %v6860_v32 }
0x1af5   : > { %6516 = vmatprep.subr.bf16.mxu1 %v6871_v19 }
0x1bc6   : > { %v3524_v37 = vpop.f32.mrb[38].mxu1 }
0x1bc7   : > { %v3528_v38 = vmul.f32 0.0078125, %v3524_v37  ;;  %v6082_v39 = vpop.f32.mrb[39].mxu1  ;;  %v5552_v37 = vld [vmem:[%s8684_s4 + $0x5] ss:$0 sm:$0xff] }
0x1bc9   : > { %6086 = vmatmul.mubr.msk.f32.vlgmr.msra.gmra.mrb[40].mxu1 %vm1060_vm4, %v3528_v38 }
0x1bca   : > { %6518 = vmatpush3.bf16.msra.mxu1 %v7363_v18  ;;  %6096 = vmatprep.mubr.msk.f32.mxu1 %vm6872_vm2, %v6860_v32 }
0x1bcb   : > { %6519 = vmatprep.subr.bf16.mxu1 %v6871_v19 }
0x1bce   : > { %6521 = vmatpush3.bf16.msra.mxu1 %v7375_v22 }
0x1bcf   : > { %6099 = vmatprep.subr.mxu1 %v6860_v32 }
0x1c9c   : > { %v3598_v40 = vpop.f32.mrb[40].mxu1 }
0x1c9d   : > { %v3605_v41 = vrot.slane %v3598_v40, %v7405_v5  ;;  %v6087_v42 = vpop.f32.mrb[41].mxu1  ;;  %v5553_v40 = vld [vmem:[%s8685_s5 + $0x5] ss:$0 sm:$0xff] }
0x1c9f   : > { %v8143_v43 = vsub.f32 %v3436_v21, %v3605_v41  ;;  %v8145_v44 = vsub.f32 %v3441_v24, %v3605_v41  ;;  %v5567_v21 = vld [vmem:[%s8682_s2 + $0x388] sm:$0xff]  ;;  %v5568_v24 = vld [vmem:[%s8682_s2 + $0x390] sm:$0xff] }
0x1ca0   : > { %v6541_v23 = vpack.c.bf16 %v5567_v21, %v5566_v20  ;;  %v6544_v27 = vpack.c.bf16 %v5569_v25, %v5568_v24 }
0x1ca1   : > { %v3608_v46 = vmul.f32 %v8143_v43, %v8143_v43  ;;  %v3609_v47 = vmul.f32 %v8145_v44, %v8145_v44 }
0x1ca3   : > { %v3610_v48 = vsel %vm433_vm8, %v3608_v46, 0.0  ;;  %v3611_v50 = vsel %vm433_vm8, %v3609_v47, 0.0 }
0x1ca4   : > { %v3612_v53 = vadd.f32 %v3611_v50, %v3610_v48  ;;  %v5572_v48 = vld [vmem:[%s8682_s2 + $0x3b0] sm:$0xff]  ;;  %v5573_v50 = vld [vmem:[%s8682_s2 + $0x3b8] sm:$0xff] }
0x1ca6   : > { %v3613_v0 = vrot.slane %v3612_v53, 4 }
0x1ca8   : > { %v3614_v49 = vadd.f32 %v3613_v0, %v3612_v53  ;;  %v6550_v53 = vpack.c.bf16 %v5573_v50, %v5572_v48 }
0x1caa   : > { %v3615_v56 = vrot.slane %v3614_v49, 2 }
0x1cac   : > { %v3616_v63 = vadd.f32 %v3615_v56, %v3614_v49 }
0x1cae   : > { %v3617_v1 = vrot.slane %v3616_v63, 1 }
0x1cb0   : > { %v3618_v3 = vadd.f32 %v3617_v1, %v3616_v63 }
0x1cb2   : > { %6097 = vmatmul.mubr.msk.f32.vlgmr.msra.gmra.mrb[42].mxu1 %vm433_vm8, %v3618_v3 }
0x1cb3   : > { %6100 = vmatpush3.msk.msra.mxu1 %vm1064_vm3, %v7864_v9  ;;  %6101 = vmatprep.mubr.msk.f32.mxu1 %vm6872_vm2, %v6860_v32 }
0x1cb4   : > { %6522 = vmatprep.subr.bf16.mxu1 %v6871_v19 }
0x1d85   : > { %v3688_v60 = vpop.f32.mrb[42].mxu1 }
0x1d86   : > { %v3692_v62 = vmul.f32 0.0078125, %v3688_v60  ;;  %v6098_v52 = vpop.f32.mrb[43].mxu1 }
0x1d88   : > { %6102 = vmatmul.mubr.msk.f32.vlgmr.msra.gmra.mrb[44].mxu1 %vm1060_vm4, %v3692_v62 }
0x1d89   : > { %6524 = vmatpush1.bf16.msra.mxu1 %v6523_v4 }
0x1d8a   : > { %6525 = vmatprep.subr.bf16.mxu1 %v6871_v19 }
0x1d8d   : > { %6527 = vmatpush1.bf16.msra.mxu1 %v6526_v10 }
0x1d8e   : > { %6528 = vmatprep.subr.bf16.mxu1 %v6871_v19 }
0x1d91   : > { %6530 = vmatpush1.bf16.msra.mxu1 %v6529_v7 }
0x1d92   : > { %6531 = vmatprep.subr.bf16.mxu1 %v6871_v19 }
0x1d95   : > { %6533 = vmatpush1.bf16.msra.mxu1 %v6532_v12 }
0x1d96   : > { %6534 = vmatprep.subr.bf16.mxu1 %v6871_v19 }
0x1d99   : > { %6536 = vmatpush1.bf16.msra.mxu1 %v6535_v14  ;;  %v5574_v14 = vld [vmem:[%s8683_s3 + $0x6] ss:$0 sm:$0xff] }
0x1d9a   : > { %6537 = vmatprep.subr.bf16.mxu1 %v6871_v19 }
0x1d9d   : > { %6539 = vmatpush1.bf16.msra.mxu1 %v6538_v17 }
0x1d9e   : > { %6540 = vmatprep.subr.bf16.mxu1 %v6871_v19 }
0x1da1   : > { %6542 = vmatpush1.bf16.msra.mxu1 %v6541_v23 }
0x1da2   : > { %6543 = vmatprep.subr.bf16.mxu1 %v6871_v19 }
0x1da5   : > { %6545 = vmatpush1.bf16.msra.mxu1 %v6544_v27 }
0x1da6   : > { %6546 = vmatprep.subr.bf16.mxu1 %v6871_v19 }
0x1da9   : > { %6548 = vmatpush1.bf16.msra.mxu1 %v6547_v30 }
0x1daa   : > { %6549 = vmatprep.subr.bf16.mxu1 %v6871_v19 }
0x1dad   : > { %6551 = vmatpush1.bf16.msra.mxu1 %v6550_v53 }
0x1dae   : > { %6594 = vmatprep.subr.bf16.mxu1 %v6871_v19 }
0x1e5b   : > { %v3762_v31 = vpop.f32.mrb[44].mxu1 }
0x1e5c   : > { %v3763_v33 = vadd.f32 1e-05, %v3762_v31  ;;  %v6103_v34 = vpop.f32.mrb[45].mxu1 }
0x1e5e   : > { %6753 = vrsqrt.f32 %v3763_v33 }
0x1e68   : > { %v6754_v35 = vpop.eup %6753 }
0x1e69   : > { %v3770_v36 = vrot.slane %v6754_v35, %v7405_v5 }
0x1e6b   : > { %v3771_v38 = vmul.f32 %v3770_v36, %v8143_v43  ;;  %v3772_v39 = vmul.f32 %v3770_v36, %v8145_v44 }
0x1e6d   : > { %v3777_v41 = vmul.f32 %v5552_v37, %v3771_v38  ;;  %v3778_v42 = vmul.f32 %v5552_v37, %v3772_v39 }
0x1e6f   : > { %v3783_v46 = vadd.f32 %v5553_v40, %v3777_v41  ;;  %v3784_v47 = vadd.f32 %v5553_v40, %v3778_v42 }
0x1e71   : > { %v3785_v43 = vmax.f32 %v3783_v46, 0.0  ;;  %v3786_v0 = vmax.f32 %v3784_v47, 0.0 }
0x1e73   : > { %3787 = vst.msk [vmem:[#allocation3 + $0x2] sm:$0xff] %vm433_vm8, %v3785_v43  ;;  %3788 = vst.msk [vmem:[#allocation3 + $0xa] sm:$0xff] %vm433_vm8, %v3786_v0 }
0x1e7a   : > { %v3797_v44 = vld [vmem:[#allocation3 + $0x4] sm:$0xff]  ;;  %v3798_v45 = vld [vmem:[#allocation3 + $0xc] sm:$0xff] }
0x1e7b   : > { %v3793_v49 = vld [vmem:[#allocation3 + $0x2] sm:$0xff]  ;;  %5575 = vmatprep.mubr.msk.f32.mxu1 %vm433_vm8, %v3797_v44  ;;  %v3796_v3 = vld [vmem:[#allocation3 + $0xb] sm:$0xff] }
0x1e7c   : > { %v3791_v56 = vld [vmem:[#allocation3 + $0x1] sm:$0xff]  ;;  %3809 = vrot.lane.b32.xlu0 %v3793_v49, %s6868_s21  ;;  %v3792_v63 = vld [vmem:[#allocation3 + $0x9] sm:$0xff] }
0x1e7d   : > { %3801 = vrot.lane.b32.xlu1 %v3791_v56, %s6865_s17  ;;  %v3795_v1 = vld [vmem:[#allocation3 + $0x3] sm:$0xff] }
0x1e7e   : > { %v3794_v60 = vld [vmem:[#allocation3 + $0xa] sm:$0xff]  ;;  %v3789_v57 = vld [vmem:[#allocation3] sm:$0xff] }
0x1e7f   : > { %v3790_v61 = vld [vmem:[#allocation3 + $0x8] sm:$0xff] }
0x1e80   : > { %3803 = vrot.lane.b32.xlu0 %v3792_v63, %s6865_s17 }
0x1e81   : > { %3817 = vrot.lane.b32.xlu1 %v3795_v1, %s6873_s14 }
0x1e84   : > { %3819 = vrot.lane.b32.xlu0 %v3796_v3, %s6873_s14 }
0x1e85   : > { %3811 = vrot.lane.b32.xlu1 %v3794_v60, %s6868_s21  ;;  %v5585_v60 = vld [vmem:[%s8682_s2 + $0x3c0] sm:$0xff] }
0x1eee   : > { %v3810_v62 = vpop.permute.xlu0 %3809 }
0x1eef   : > { %v3802_v52 = vpop.permute.xlu1 %3801 }
0x1ef0   : > { %v3823_v58 = vsel %vm433_vm8, %v3789_v57, %v3802_v52  ;;  %v5588_v57 = vld [vmem:[%s8682_s2 + $0x3d8] sm:$0xff] }
0x1ef1   : > { %v3825_v6 = vsel %vm556_vm1, %v3823_v58, %v3810_v62  ;;  %v5586_v62 = vld [vmem:[%s8682_s2 + $0x3c8] sm:$0xff] }
0x1ef2   : > { %v3804_v2 = vpop.permute.xlu0 %3803  ;;  %v6565_v52 = vpack.c.bf16 %v5586_v62, %v5585_v60 }
0x1ef3   : > { %v3818_v4 = vpop.permute.xlu1 %3817  ;;  %v3824_v8 = vsel %vm433_vm8, %v3790_v61, %v3804_v2  ;;  %v5589_v2 = vld [vmem:[%s8682_s2 + $0x3e0] sm:$0xff] }
0x1ef4   : > { %v3827_v10 = vsel %vm1363_vm6, %v3825_v6, %v3818_v4  ;;  %v5590_v4 = vld [vmem:[%s8682_s2 + $0x3e8] sm:$0xff] }
0x1ef5   : > { %3926 = vmatmul.mubr.f32.vlgmr.msra.gmra.mrb[46].mxu1 %v3827_v10  ;;  %v6571_v6 = vpack.c.bf16 %v5590_v4, %v5589_v2  ;;  %v5591_v10 = vld [vmem:[%s8682_s2 + $0x3f0] sm:$0xff] }
0x1ef6   : > { %5576 = vmatprep.mubr.msk.f32.mxu1 %vm433_vm8, %v3798_v45  ;;  %v3820_v7 = vpop.permute.xlu0 %3819  ;;  %6596 = vmatpush3.bf16.msra.mxu1 %v7363_v18  ;;  %v5592_v45 = vld [vmem:[%s8682_s2 + $0x3f8] sm:$0xff] }
0x1ef7   : > { %v3812_v11 = vpop.permute.xlu1 %3811  ;;  %6597 = vmatprep.subr.bf16.mxu1 %v6871_v19  ;;  %v6574_v61 = vpack.c.bf16 %v5592_v45, %v5591_v10 }
0x1ef8   : > { %v3826_v12 = vsel %vm556_vm1, %v3824_v8, %v3812_v11  ;;  %v5594_v8 = vld [vmem:[%s8682_s2 + $0x408] sm:$0xff] }
0x1ef9   : > { %v3828_v26 = vsel %vm1363_vm6, %v3826_v12, %v3820_v7  ;;  %v5593_v7 = vld [vmem:[%s8682_s2 + $0x400] sm:$0xff]  ;;  %v5595_v12 = vld [vmem:[%s8682_s2 + $0x410] sm:$0xff] }
0x1efa   : > { %3931 = vmatmul.mubr.f32.gmra.mrb[48].mxu1 %v3828_v26  ;;  %v6577_v11 = vpack.c.bf16 %v5594_v8, %v5593_v7  ;;  %v5596_v26 = vld [vmem:[%s8682_s2 + $0x418] sm:$0xff] }
0x1efb   : > { %6599 = vmatpush3.bf16.msra.mxu1 %v7375_v22  ;;  %6144 = vmatprep.mubr.msk.f32.mxu1 %vm6872_vm2, %v6860_v32 }
0x1efc   : > { %6147 = vmatprep.subr.mxu1 %v6860_v32 }
0x1fc8   : > { %v3927_v13 = vpop.f32.mrb[46].mxu1 }
0x1fc9   : > { %v3929_v15 = vpop.f32.mrb[47].mxu1  ;;  %v3928_v16 = vadd.f32 %v5574_v14, %v3927_v13  ;;  %v6580_v13 = vpack.c.bf16 %v5596_v26, %v5595_v12 }
0x1fca   : > { %v5598_v15 = vld [vmem:[%s8682_s2 + $0x428] sm:$0xff] }
0x1fcb   : > { %v3938_v23 = vsel %vm433_vm8, %v3928_v16, 0.0 }
0x1fcd   : > { %v3932_v17 = vpop.f32.mrb[48].mxu1 }
0x1fce   : > { %v3933_v20 = vadd.f32 %v5574_v14, %v3932_v17  ;;  %v3934_v21 = vpop.f32.mrb[49].mxu1  ;;  %v5597_v14 = vld [vmem:[%s8682_s2 + $0x420] sm:$0xff]  ;;  %v5599_v17 = vld [vmem:[%s8682_s2 + $0x430] sm:$0xff] }
0x1fd0   : > { %v3939_v24 = vsel %vm433_vm8, %v3933_v20, 0.0 }
0x1fd1   : > { %v3940_v25 = vadd.f32 %v3939_v24, %v3938_v23  ;;  %v5601_v23 = vld [vmem:[%s8682_s2 + $0x440] sm:$0xff]  ;;  %v5602_v24 = vld [vmem:[%s8682_s2 + $0x448] sm:$0xff] }
0x1fd3   : > { %v3941_v27 = vrot.slane %v3940_v25, 4 }
0x1fd5   : > { %v3942_v28 = vadd.f32 %v3941_v27, %v3940_v25  ;;  %v6589_v25 = vpack.c.bf16 %v5602_v24, %v5601_v23 }
0x1fd7   : > { %v3943_v29 = vrot.slane %v3942_v28, 2 }
0x1fd9   : > { %v3944_v30 = vadd.f32 %v3943_v29, %v3942_v28 }
0x1fdb   : > { %v3945_v31 = vrot.slane %v3944_v30, 1 }
0x1fdd   : > { %v3946_v33 = vadd.f32 %v3945_v31, %v3944_v30 }
0x1fdf   : > { %6113 = vmatmul.mubr.msk.f32.vlgmr.msra.gmra.mrb[36].mxu0 %vm433_vm8, %v3946_v33  ;;  %v5583_v33 = vld [vmem:[%s8684_s4 + $0x6] ss:$0 sm:$0xff] }
0x1fe0   : > { %6116 = vmatpush3.msk.msra.mxu0 %vm1064_vm3, %v7864_v9  ;;  %6117 = vmatprep.mubr.msk.f32.mxu0 %vm6872_vm2, %v6860_v32 }
0x1fe1   : > { %6558 = vmatprep.subr.bf16.mxu0 %v6871_v19 }
0x20b2   : > { %v4016_v34 = vpop.f32.mrb[36].mxu0 }
0x20b3   : > { %v4020_v35 = vmul.f32 0.0078125, %v4016_v34  ;;  %v6114_v36 = vpop.f32.mrb[37].mxu0 }
0x20b4   : > { %v5584_v36 = vld [vmem:[%s8685_s5 + $0x6] ss:$0 sm:$0xff] }
0x20b5   : > { %6118 = vmatmul.mubr.msk.f32.vlgmr.msra.gmra.mrb[38].mxu0 %vm1060_vm4, %v4020_v35 }
0x20b6   : > { %6560 = vmatpush3.bf16.msra.mxu0 %v7363_v18  ;;  %6128 = vmatprep.mubr.msk.f32.mxu0 %vm6872_vm2, %v6860_v32 }
0x20b7   : > { %6561 = vmatprep.subr.bf16.mxu0 %v6871_v19 }
0x20ba   : > { %6563 = vmatpush3.bf16.msra.mxu0 %v7375_v22 }
0x20bb   : > { %6131 = vmatprep.subr.mxu0 %v6860_v32 }
0x2188   : > { %v4090_v37 = vpop.f32.mrb[38].mxu0 }
0x2189   : > { %v4097_v38 = vrot.slane %v4090_v37, %v7405_v5  ;;  %v6119_v39 = vpop.f32.mrb[39].mxu0 }
0x218b   : > { %v8280_v40 = vsub.f32 %v3928_v16, %v4097_v38  ;;  %v8282_v41 = vsub.f32 %v3933_v20, %v4097_v38  ;;  %v6583_v16 = vpack.c.bf16 %v5598_v15, %v5597_v14  ;;  %v5600_v20 = vld [vmem:[%s8682_s2 + $0x438] sm:$0xff] }
0x218c   : > { %v6586_v21 = vpack.c.bf16 %v5600_v20, %v5599_v17 }
0x218d   : > { %v4100_v42 = vmul.f32 %v8280_v40, %v8280_v40  ;;  %v4101_v46 = vmul.f32 %v8282_v41, %v8282_v41 }
0x218f   : > { %v4102_v47 = vsel %vm433_vm8, %v4100_v42, 0.0  ;;  %v4103_v48 = vsel %vm433_vm8, %v4101_v46, 0.0 }
0x2190   : > { %v4104_v50 = vadd.f32 %v4103_v48, %v4102_v47 }
0x2192   : > { %v4105_v53 = vrot.slane %v4104_v50, 4 }
0x2194   : > { %v4106_v43 = vadd.f32 %v4105_v53, %v4104_v50 }
0x2196   : > { %v4107_v0 = vrot.slane %v4106_v43, 2 }
0x2198   : > { %v4108_v44 = vadd.f32 %v4107_v0, %v4106_v43 }
0x219a   : > { %v4109_v49 = vrot.slane %v4108_v44, 1 }
0x219c   : > { %v4110_v56 = vadd.f32 %v4109_v49, %v4108_v44 }
0x219e   : > { %6129 = vmatmul.mubr.msk.f32.vlgmr.msra.gmra.mrb[40].mxu0 %vm433_vm8, %v4110_v56 }
0x219f   : > { %6132 = vmatpush3.msk.msra.mxu0 %vm1064_vm3, %v7864_v9  ;;  %6133 = vmatprep.mubr.msk.f32.mxu0 %vm6872_vm2, %v6860_v32  ;;  %v5587_v9 = vld [vmem:[%s8682_s2 + $0x3d0] sm:$0xff] }
0x21a0   : > { %6564 = vmatprep.subr.bf16.mxu0 %v6871_v19  ;;  %v6568_v58 = vpack.c.bf16 %v5588_v57, %v5587_v9 }
0x2271   : > { %v4180_v63 = vpop.f32.mrb[40].mxu0 }
0x2272   : > { %v4184_v1 = vmul.f32 0.0078125, %v4180_v63  ;;  %v6130_v3 = vpop.f32.mrb[41].mxu0 }
0x2274   : > { %6134 = vmatmul.mubr.msk.f32.vlgmr.msra.gmra.mrb[42].mxu0 %vm1060_vm4, %v4184_v1 }
0x2275   : > { %6566 = vmatpush1.bf16.msra.mxu0 %v6565_v52 }
0x2276   : > { %6567 = vmatprep.subr.bf16.mxu0 %v6871_v19 }
0x2279   : > { %6569 = vmatpush1.bf16.msra.mxu0 %v6568_v58 }
0x227a   : > { %6570 = vmatprep.subr.bf16.mxu0 %v6871_v19 }
0x227d   : > { %6572 = vmatpush1.bf16.msra.mxu0 %v6571_v6 }
0x227e   : > { %6573 = vmatprep.subr.bf16.mxu0 %v6871_v19 }
0x2281   : > { %6575 = vmatpush1.bf16.msra.mxu0 %v6574_v61  ;;  %v5605_v61 = vld [vmem:[%s8683_s3 + $0x7] ss:$0 sm:$0xff] }
0x2282   : > { %6576 = vmatprep.subr.bf16.mxu0 %v6871_v19 }
0x2285   : > { %6578 = vmatpush1.bf16.msra.mxu0 %v6577_v11 }
0x2286   : > { %6579 = vmatprep.subr.bf16.mxu0 %v6871_v19 }
0x2289   : > { %6581 = vmatpush1.bf16.msra.mxu0 %v6580_v13 }
0x228a   : > { %6582 = vmatprep.subr.bf16.mxu0 %v6871_v19 }
0x228d   : > { %6584 = vmatpush1.bf16.msra.mxu0 %v6583_v16 }
0x228e   : > { %6585 = vmatprep.subr.bf16.mxu0 %v6871_v19 }
0x2291   : > { %6587 = vmatpush1.bf16.msra.mxu0 %v6586_v21 }
0x2292   : > { %6588 = vmatprep.subr.bf16.mxu0 %v6871_v19 }
0x2295   : > { %6590 = vmatpush1.bf16.msra.mxu0 %v6589_v25  ;;  %v8421_v25 = vld [vmem:[%s8687_s7] sm:$0xf] }
0x2296   : > { %6591 = vmatprep.subr.bf16.mxu0 %v6871_v19 }
0x2347   : > { %v4254_v27 = vpop.f32.mrb[42].mxu0 }
0x2348   : > { %v4255_v28 = vadd.f32 1e-05, %v4254_v27  ;;  %v6135_v29 = vpop.f32.mrb[43].mxu0 }
0x234a   : > { %6755 = vrsqrt.f32 %v4255_v28 }
0x2354   : > { %v6756_v30 = vpop.eup %6755 }
0x2355   : > { %v4262_v31 = vrot.slane %v6756_v30, %v7405_v5 }
0x2357   : > { %v4263_v34 = vmul.f32 %v4262_v31, %v8280_v40  ;;  %v4264_v35 = vmul.f32 %v4262_v31, %v8282_v41  ;;  %v5603_v40 = vld [vmem:[%s8682_s2 + $0x450] sm:$0xff]  ;;  %v5604_v41 = vld [vmem:[%s8682_s2 + $0x458] sm:$0xff] }
0x2358   : > { %v6592_v48 = vpack.c.bf16 %v5604_v41, %v5603_v40 }
0x2359   : > { %v4269_v37 = vmul.f32 %v5583_v33, %v4263_v34  ;;  %v4270_v38 = vmul.f32 %v5583_v33, %v4264_v35 }
0x235a   : > { %6593 = vmatpush1.bf16.msra.mxu0 %v6592_v48 }
0x235b   : > { %v4275_v39 = vadd.f32 %v5584_v36, %v4269_v37  ;;  %v4276_v42 = vadd.f32 %v5584_v36, %v4270_v38  ;;  %6636 = vmatprep.subr.bf16.mxu0 %v6871_v19 }
0x235d   : > { %v8371_v46 = vadd.f32 %v4275_v39, %v3293_v59  ;;  %v8375_v47 = vadd.f32 %v4276_v42, %v3294_v51 }
0x235f   : > { %v4279_v50 = vmax.f32 %v8371_v46, 0.0  ;;  %v4280_v53 = vmax.f32 %v8375_v47, 0.0 }
0x2361   : > { %4281 = vst.msk [vmem:[#allocation3 + $0x2] sm:$0xff] %vm433_vm8, %v4279_v50  ;;  %4282 = vst.msk [vmem:[#allocation3 + $0xa] sm:$0xff] %vm433_vm8, %v4280_v53 }
0x2368   : > { %v4291_v54 = vld [vmem:[#allocation3 + $0x4] sm:$0xff]  ;;  %v4292_v52 = vld [vmem:[#allocation3 + $0xc] sm:$0xff] }
0x2369   : > { %v4287_v55 = vld [vmem:[#allocation3 + $0x2] sm:$0xff]  ;;  %5606 = vmatprep.mubr.msk.f32.mxu0 %vm433_vm8, %v4291_v54  ;;  %v4290_v0 = vld [vmem:[#allocation3 + $0xb] sm:$0xff] }
0x236a   : > { %v4285_v59 = vld [vmem:[#allocation3 + $0x1] sm:$0xff]  ;;  %4303 = vrot.lane.b32.xlu0 %v4287_v55, %s6868_s21  ;;  %v4286_v51 = vld [vmem:[#allocation3 + $0x9] sm:$0xff] }
0x236b   : > { %4295 = vrot.lane.b32.xlu1 %v4285_v59, %s6865_s17  ;;  %v4289_v43 = vld [vmem:[#allocation3 + $0x3] sm:$0xff] }
0x236c   : > { %v4288_v44 = vld [vmem:[#allocation3 + $0xa] sm:$0xff]  ;;  %v4283_v63 = vld [vmem:[#allocation3] sm:$0xff] }
0x236d   : > { %v4284_v57 = vld [vmem:[#allocation3 + $0x8] sm:$0xff] }
0x236e   : > { %4297 = vrot.lane.b32.xlu0 %v4286_v51, %s6865_s17 }
0x236f   : > { %4311 = vrot.lane.b32.xlu1 %v4289_v43, %s6873_s14 }
0x2372   : > { %4313 = vrot.lane.b32.xlu0 %v4290_v0, %s6873_s14 }
0x2373   : > { %4305 = vrot.lane.b32.xlu1 %v4288_v44, %s6868_s21  ;;  %v5616_v44 = vld [vmem:[%s8682_s2 + $0x460] sm:$0xff] }
0x23dc   : > { %v4304_v49 = vpop.permute.xlu0 %4303 }
0x23dd   : > { %v4296_v56 = vpop.permute.xlu1 %4295 }
0x23de   : > { %v4317_v1 = vsel %vm433_vm8, %v4283_v63, %v4296_v56  ;;  %v5618_v56 = vld [vmem:[%s8682_s2 + $0x470] sm:$0xff] }
0x23df   : > { %v4319_v62 = vsel %vm556_vm1, %v4317_v1, %v4304_v49  ;;  %v5617_v49 = vld [vmem:[%s8682_s2 + $0x468] sm:$0xff]  ;;  %v5619_v1 = vld [vmem:[%s8682_s2 + $0x478] sm:$0xff] }
0x23e0   : > { %v4298_v3 = vpop.permute.xlu0 %4297  ;;  %v6607_v63 = vpack.c.bf16 %v5617_v49, %v5616_v44 }
0x23e1   : > { %v4312_v60 = vpop.permute.xlu1 %4311  ;;  %v4318_v2 = vsel %vm433_vm8, %v4284_v57, %v4298_v3  ;;  %v6610_v3 = vpack.c.bf16 %v5619_v1, %v5618_v56  ;;  %v5623_v57 = vld [vmem:[%s8682_s2 + $0x498] sm:$0xff] }
0x23e2   : > { %v4321_v9 = vsel %vm1363_vm6, %v4319_v62, %v4312_v60  ;;  %v5620_v60 = vld [vmem:[%s8682_s2 + $0x480] sm:$0xff]  ;;  %v5621_v62 = vld [vmem:[%s8682_s2 + $0x488] sm:$0xff] }
0x23e3   : > { %4420 = vmatmul.mubr.f32.vlgmr.msra.gmra.mrb[44].mxu0 %v4321_v9  ;;  %v6613_v9 = vpack.c.bf16 %v5621_v62, %v5620_v60 }
0x23e4   : > { %5607 = vmatprep.mubr.msk.f32.mxu0 %vm433_vm8, %v4292_v52  ;;  %v4314_v58 = vpop.permute.xlu0 %4313  ;;  %6638 = vmatpush3.bf16.msra.mxu0 %v7363_v18  ;;  %v5622_v52 = vld [vmem:[%s8682_s2 + $0x490] sm:$0xff] }
0x23e5   : > { %v4306_v4 = vpop.permute.xlu1 %4305  ;;  %6639 = vmatprep.subr.bf16.mxu0 %v6871_v19 }
0x23e6   : > { %v4320_v6 = vsel %vm556_vm1, %v4318_v2, %v4306_v4  ;;  %v5624_v2 = vld [vmem:[%s8682_s2 + $0x4a0] sm:$0xff]  ;;  %v5625_v4 = vld [vmem:[%s8682_s2 + $0x4a8] sm:$0xff] }
0x23e7   : > { %v4322_v10 = vsel %vm1363_vm6, %v4320_v6, %v4314_v58  ;;  %v6616_v58 = vpack.c.bf16 %v5623_v57, %v5622_v52  ;;  %v6619_v6 = vpack.c.bf16 %v5625_v4, %v5624_v2 }
0x23e8   : > { %4425 = vmatmul.mubr.f32.gmra.mrb[46].mxu0 %v4322_v10  ;;  %v5626_v10 = vld [vmem:[%s8682_s2 + $0x4b0] sm:$0xff] }
0x23e9   : > { %6641 = vmatpush3.bf16.msra.mxu0 %v7375_v22  ;;  %6176 = vmatprep.mubr.msk.f32.mxu0 %vm6872_vm2, %v6860_v32 }
0x23ea   : > { %6179 = vmatprep.subr.mxu0 %v6860_v32 }
0x24b6   : > { %v4421_v45 = vpop.f32.mrb[44].mxu0 }
0x24b7   : > { %v4423_v7 = vpop.f32.mrb[45].mxu0  ;;  %v4422_v8 = vadd.f32 %v5605_v61, %v4421_v45  ;;  %v5627_v45 = vld [vmem:[%s8682_s2 + $0x4b8] sm:$0xff] }
0x24b8   : > { %v5628_v7 = vld [vmem:[%s8682_s2 + $0x4c0] sm:$0xff] }
0x24b9   : > { %v4432_v13 = vsel %vm433_vm8, %v4422_v8, 0.0 }
0x24bb   : > { %v4426_v11 = vpop.f32.mrb[46].mxu0 }
0x24bc   : > { %v4427_v12 = vadd.f32 %v5605_v61, %v4426_v11  ;;  %v4428_v26 = vpop.f32.mrb[47].mxu0  ;;  %v6622_v61 = vpack.c.bf16 %v5627_v45, %v5626_v10 }
0x24bd   : > { %v5631_v26 = vld [vmem:[%s8682_s2 + $0x4d8] sm:$0xff] }
0x24be   : > { %v4433_v14 = vsel %vm433_vm8, %v4427_v12, 0.0 }
0x24bf   : > { %v4434_v15 = vadd.f32 %v4433_v14, %v4432_v13  ;;  %v5632_v14 = vld [vmem:[%s8682_s2 + $0x4e0] sm:$0xff] }
0x24c1   : > { %v4435_v16 = vrot.slane %v4434_v15, 4 }
0x24c3   : > { %v4436_v17 = vadd.f32 %v4435_v16, %v4434_v15  ;;  %v5633_v15 = vld [vmem:[%s8682_s2 + $0x4e8] sm:$0xff] }
0x24c4   : > { %v6631_v16 = vpack.c.bf16 %v5633_v15, %v5632_v14 }
0x24c5   : > { %v4437_v20 = vrot.slane %v4436_v17, 2 }
0x24c7   : > { %v4438_v21 = vadd.f32 %v4437_v20, %v4436_v17 }
0x24c9   : > { %v4439_v23 = vrot.slane %v4438_v21, 1 }
0x24cb   : > { %v4440_v24 = vadd.f32 %v4439_v23, %v4438_v21 }
0x24cd   : > { %6145 = vmatmul.mubr.msk.f32.vlgmr.msra.gmra.mrb[50].mxu1 %vm433_vm8, %v4440_v24 }
0x24ce   : > { %6148 = vmatpush3.msk.msra.mxu1 %vm1064_vm3, %v8421_v25  ;;  %6149 = vmatprep.mubr.msk.f32.mxu1 %vm6872_vm2, %v6860_v32 }
0x24cf   : > { %6600 = vmatprep.subr.bf16.mxu1 %v6871_v19 }
0x25a0   : > { %v4510_v27 = vpop.f32.mrb[50].mxu1 }
0x25a1   : > { %v4514_v28 = vmul.f32 0.0078125, %v4510_v27  ;;  %v6146_v29 = vpop.f32.mrb[51].mxu1  ;;  %v5614_v27 = vld [vmem:[%s8684_s4 + $0x7] ss:$0 sm:$0xff] }
0x25a3   : > { %6150 = vmatmul.mubr.msk.f32.vlgmr.msra.gmra.mrb[52].mxu1 %vm1060_vm4, %v4514_v28 }
0x25a4   : > { %6602 = vmatpush3.bf16.msra.mxu1 %v7363_v18  ;;  %6160 = vmatprep.mubr.msk.f32.mxu1 %vm6872_vm2, %v6860_v32 }
0x25a5   : > { %6603 = vmatprep.subr.bf16.mxu1 %v6871_v19 }
0x25a8   : > { %6605 = vmatpush3.bf16.msra.mxu1 %v7375_v22 }
0x25a9   : > { %6163 = vmatprep.subr.mxu1 %v6860_v32 }
0x2676   : > { %v4584_v30 = vpop.f32.mrb[52].mxu1 }
0x2677   : > { %v4591_v31 = vrot.slane %v4584_v30, %v7405_v5  ;;  %v6151_v33 = vpop.f32.mrb[53].mxu1  ;;  %v5615_v30 = vld [vmem:[%s8685_s5 + $0x7] ss:$0 sm:$0xff] }
0x2679   : > { %v8436_v34 = vsub.f32 %v4422_v8, %v4591_v31  ;;  %v8438_v35 = vsub.f32 %v4427_v12, %v4591_v31  ;;  %v5629_v8 = vld [vmem:[%s8682_s2 + $0x4c8] sm:$0xff]  ;;  %v5630_v12 = vld [vmem:[%s8682_s2 + $0x4d0] sm:$0xff] }
0x267a   : > { %v6625_v11 = vpack.c.bf16 %v5629_v8, %v5628_v7  ;;  %v6628_v13 = vpack.c.bf16 %v5631_v26, %v5630_v12 }
0x267b   : > { %v4594_v36 = vmul.f32 %v8436_v34, %v8436_v34  ;;  %v4595_v37 = vmul.f32 %v8438_v35, %v8438_v35 }
0x267d   : > { %v4596_v38 = vsel %vm433_vm8, %v4594_v36, 0.0  ;;  %v4597_v39 = vsel %vm433_vm8, %v4595_v37, 0.0 }
0x267e   : > { %v4598_v42 = vadd.f32 %v4597_v39, %v4596_v38  ;;  %v5634_v38 = vld [vmem:[%s8682_s2 + $0x4f0] sm:$0xff]  ;;  %v5635_v39 = vld [vmem:[%s8682_s2 + $0x4f8] sm:$0xff] }
0x2680   : > { %v4599_v40 = vrot.slane %v4598_v42, 4 }
0x2682   : > { %v4600_v41 = vadd.f32 %v4599_v40, %v4598_v42  ;;  %v6634_v42 = vpack.c.bf16 %v5635_v39, %v5634_v38 }
0x2684   : > { %v4601_v48 = vrot.slane %v4600_v41, 2 }
0x2686   : > { %v4602_v54 = vadd.f32 %v4601_v48, %v4600_v41 }
0x2688   : > { %v4603_v55 = vrot.slane %v4602_v54, 1 }
0x268a   : > { %v4604_v59 = vadd.f32 %v4603_v55, %v4602_v54 }
0x268c   : > { %6161 = vmatmul.mubr.msk.f32.vlgmr.msra.gmra.mrb[54].mxu1 %vm433_vm8, %v4604_v59 }
0x268d   : > { %6164 = vmatpush3.msk.msra.mxu1 %vm1064_vm3, %v8421_v25  ;;  %6165 = vmatprep.mubr.msk.f32.mxu1 %vm6872_vm2, %v6860_v32 }
0x268e   : > { %6606 = vmatprep.subr.bf16.mxu1 %v6871_v19 }
0x275f   : > { %v4674_v51 = vpop.f32.mrb[54].mxu1 }
0x2760   : > { %v4678_v43 = vmul.f32 0.0078125, %v4674_v51  ;;  %v6162_v0 = vpop.f32.mrb[55].mxu1 }
0x2762   : > { %6166 = vmatmul.mubr.msk.f32.vlgmr.msra.gmra.mrb[56].mxu1 %vm1060_vm4, %v4678_v43 }
0x2763   : > { %6608 = vmatpush1.bf16.msra.mxu1 %v6607_v63 }
0x2764   : > { %6609 = vmatprep.subr.bf16.mxu1 %v6871_v19 }
0x2767   : > { %6611 = vmatpush1.bf16.msra.mxu1 %v6610_v3 }
0x2768   : > { %6612 = vmatprep.subr.bf16.mxu1 %v6871_v19 }
0x276b   : > { %6614 = vmatpush1.bf16.msra.mxu1 %v6613_v9 }
0x276c   : > { %6615 = vmatprep.subr.bf16.mxu1 %v6871_v19 }
0x276f   : > { %6617 = vmatpush1.bf16.msra.mxu1 %v6616_v58 }
0x2770   : > { %6618 = vmatprep.subr.bf16.mxu1 %v6871_v19 }
0x2773   : > { %6620 = vmatpush1.bf16.msra.mxu1 %v6619_v6  ;;  %v5636_v6 = vld [vmem:[%s8683_s3 + $0x8] ss:$0 sm:$0xff] }
0x2774   : > { %6621 = vmatprep.subr.bf16.mxu1 %v6871_v19 }
0x2777   : > { %6623 = vmatpush1.bf16.msra.mxu1 %v6622_v61 }
0x2778   : > { %6624 = vmatprep.subr.bf16.mxu1 %v6871_v19 }
0x277b   : > { %6626 = vmatpush1.bf16.msra.mxu1 %v6625_v11 }
0x277c   : > { %6627 = vmatprep.subr.bf16.mxu1 %v6871_v19 }
0x277f   : > { %6629 = vmatpush1.bf16.msra.mxu1 %v6628_v13 }
0x2780   : > { %6630 = vmatprep.subr.bf16.mxu1 %v6871_v19 }
0x2783   : > { %6632 = vmatpush1.bf16.msra.mxu1 %v6631_v16 }
0x2784   : > { %6633 = vmatprep.subr.bf16.mxu1 %v6871_v19 }
0x2787   : > { %6635 = vmatpush1.bf16.msra.mxu1 %v6634_v42 }
0x2835   : > { %v4748_v17 = vpop.f32.mrb[56].mxu1 }
0x2836   : > { %v4749_v20 = vadd.f32 1e-05, %v4748_v17  ;;  %v6167_v21 = vpop.f32.mrb[57].mxu1 }
0x2838   : > { %6757 = vrsqrt.f32 %v4749_v20 }
0x2842   : > { %v6758_v23 = vpop.eup %6757 }
0x2843   : > { %v4756_v24 = vrot.slane %v6758_v23, %v7405_v5 }
0x2845   : > { %v4757_v28 = vmul.f32 %v4756_v24, %v8436_v34  ;;  %v4758_v29 = vmul.f32 %v4756_v24, %v8438_v35 }
0x2847   : > { %v4763_v31 = vmul.f32 %v5614_v27, %v4757_v28  ;;  %v4764_v33 = vmul.f32 %v5614_v27, %v4758_v29 }
0x2849   : > { %v4769_v36 = vadd.f32 %v5615_v30, %v4763_v31  ;;  %v4770_v37 = vadd.f32 %v5615_v30, %v4764_v33 }
0x284b   : > { %v4771_v34 = vmax.f32 %v4769_v36, 0.0  ;;  %v4772_v40 = vmax.f32 %v4770_v37, 0.0 }
0x284d   : > { %4773 = vst.msk [vmem:[#allocation3 + $0x2] sm:$0xff] %vm433_vm8, %v4771_v34  ;;  %4774 = vst.msk [vmem:[#allocation3 + $0xa] sm:$0xff] %vm433_vm8, %v4772_v40 }
0x2854   : > { %v4783_v35 = vld [vmem:[#allocation3 + $0x4] sm:$0xff]  ;;  %v4784_v60 = vld [vmem:[#allocation3 + $0xc] sm:$0xff] }
0x2855   : > { %v4779_v41 = vld [vmem:[#allocation3 + $0x2] sm:$0xff]  ;;  %5637 = vmatprep.mubr.msk.f32.mxu1 %vm433_vm8, %v4783_v35  ;;  %v4782_v59 = vld [vmem:[#allocation3 + $0xb] sm:$0xff] }
0x2856   : > { %v4777_v48 = vld [vmem:[#allocation3 + $0x1] sm:$0xff]  ;;  %4795 = vrot.lane.b32.xlu0 %v4779_v41, %s6868_s21  ;;  %v4778_v54 = vld [vmem:[#allocation3 + $0x9] sm:$0xff] }
0x2857   : > { %4787 = vrot.lane.b32.xlu1 %v4777_v48, %s6865_s17  ;;  %v4781_v55 = vld [vmem:[#allocation3 + $0x3] sm:$0xff] }
0x2858   : > { %v4780_v51 = vld [vmem:[#allocation3 + $0xa] sm:$0xff]  ;;  %v4775_v44 = vld [vmem:[#allocation3] sm:$0xff] }
0x2859   : > { %v4776_v62 = vld [vmem:[#allocation3 + $0x8] sm:$0xff] }
0x285a   : > { %4789 = vrot.lane.b32.xlu0 %v4778_v54, %s6865_s17 }
0x285b   : > { %4803 = vrot.lane.b32.xlu1 %v4781_v55, %s6873_s14 }
0x285e   : > { %4805 = vrot.lane.b32.xlu0 %v4782_v59, %s6873_s14  ;;  %s5288_s14 = sshll.u32 %s7132_s25, 4  ;;  %s6767_s25 = sshll.u32 %s6874_s23, 4  ;;  %s8575_s14 = int_to_ptr.vmem [resolvable:$true] %s5288_s14  ;;  %s6768_s25 = int_to_ptr.vmem [resolvable:$false] %s6767_s25 }
0x285f   : > { %4797 = vrot.lane.b32.xlu1 %v4780_v51, %s6868_s21  ;;  %s6763_s29 = scalar_lea.vmem %s8575_s14, 256  ;;  %s6769_s24 = scalar_lea.vmem %s6768_s25, 512 }
0x2860   : > { %p6764_p11 = scmp.ne.s32.totalorder %s8575_s14, %s6763_s29  ;;  %p6770_p0 = scmp.lt.s32.totalorder %s8575_s14, %s6768_s25 }
0x2861   : > { %p6771_p1 = scmp.lt.s32.totalorder %s6769_s24, %s6763_s29 }
0x2862   : > { %p6765_p12 = pnand %p6764_p11, %p6965_p5 }
0x2863   : > { %p6772_p2 = por %p6771_p1, %p6770_p0 }
0x2864   : > { %p6766_p13 = pneg %p6765_p12 }
0x2866   : > { %p6773_p3 = pnand %p6772_p2, %p6766_p13 }
0x28c8   : > { %v4796_v43 = vpop.permute.xlu0 %4795 }
0x28c9   : > { %v4788_v0 = vpop.permute.xlu1 %4787 }
0x28ca   : > { %v4809_v49 = vsel %vm433_vm8, %v4775_v44, %v4788_v0 }
0x28cb   : > { %v4811_v1 = vsel %vm556_vm1, %v4809_v49, %v4796_v43 }
0x28cc   : > { %v4790_v56 = vpop.permute.xlu0 %4789 }
0x28cd   : > { %v4804_v63 = vpop.permute.xlu1 %4803  ;;  %v4810_v52 = vsel %vm433_vm8, %v4776_v62, %v4790_v56 }
0x28ce   : > { %v4813_v3 = vsel %vm1363_vm6, %v4811_v1, %v4804_v63 }
0x28cf   : > { %4912 = vmatmul.mubr.f32.vlgmr.msra.gmra.mrb[58].mxu1 %v4813_v3 }
0x28d0   : > { %5638 = vmatprep.mubr.msk.f32.mxu1 %vm433_vm8, %v4784_v60  ;;  %v4806_v9 = vpop.permute.xlu0 %4805 }
0x28d1   : > { %v4798_v57 = vpop.permute.xlu1 %4797 }
0x28d2   : > { %v4812_v58 = vsel %vm556_vm1, %v4810_v52, %v4798_v57 }
0x28d3   : > { %v4814_v2 = vsel %vm1363_vm6, %v4812_v58, %v4806_v9 }
0x28d4   : > { %4917 = vmatmul.mubr.f32.gmra.mrb[60].mxu1 %v4814_v2 }
0x29a2   : > { %v4913_v4 = vpop.f32.mrb[58].mxu1 }
0x29a3   : > { %v4915_v10 = vpop.f32.mrb[59].mxu1  ;;  %v4914_v45 = vadd.f32 %v5636_v6, %v4913_v4 }
0x29a5   : > { %v4924_v11 = vsel %vm433_vm8, %v4914_v45, 0.0 }
0x29a7   : > { %v4918_v61 = vpop.f32.mrb[60].mxu1 }
0x29a8   : > { %v4919_v7 = vadd.f32 %v5636_v6, %v4918_v61  ;;  %v4920_v8 = vpop.f32.mrb[61].mxu1 }
0x29aa   : > { %v4925_v12 = vsel %vm433_vm8, %v4919_v7, 0.0 }
0x29ab   : > { %v4926_v26 = vadd.f32 %v4925_v12, %v4924_v11 }
0x29ad   : > { %v4927_v13 = vrot.slane %v4926_v26, 4 }
0x29af   : > { %v4928_v14 = vadd.f32 %v4927_v13, %v4926_v26 }
0x29b1   : > { %v4929_v15 = vrot.slane %v4928_v14, 2 }
0x29b3   : > { %v4930_v16 = vadd.f32 %v4929_v15, %v4928_v14 }
0x29b5   : > { %v4931_v17 = vrot.slane %v4930_v16, 1 }
0x29b7   : > { %v4932_v20 = vadd.f32 %v4931_v17, %v4930_v16 }
0x29b9   : > { %6177 = vmatmul.mubr.msk.f32.vlgmr.msra.gmra.mrb[48].mxu0 %vm433_vm8, %v4932_v20 }
0x29ba   : > { %6180 = vmatpush3.msk.msra.mxu0 %vm1064_vm3, %v8421_v25  ;;  %6181 = vmatprep.mubr.msk.f32.mxu0 %vm6872_vm2, %v6860_v32 }
0x29bb   : > { %6642 = vmatprep.subr.bf16.mxu0 %v6871_v19 }
0x2a8c   : > { %v5002_v21 = vpop.f32.mrb[48].mxu0 }
0x2a8d   : > { %v5006_v23 = vmul.f32 0.0078125, %v5002_v21  ;;  %v6178_v24 = vpop.f32.mrb[49].mxu0 }
0x2a8f   : > { %6182 = vmatmul.mubr.msk.f32.vlgmr.msra.gmra.mrb[50].mxu0 %vm1060_vm4, %v5006_v23 }
0x2a90   : > { %6644 = vmatpush3.bf16.msra.mxu0 %v7363_v18  ;;  %6192 = vmatprep.mubr.msk.f32.mxu0 %vm6872_vm2, %v6860_v32 }
0x2a91   : > { %6645 = vmatprep.subr.bf16.mxu0 %v6871_v19 }
0x2a94   : > { %6647 = vmatpush3.bf16.msra.mxu0 %v7375_v22 }
0x2a95   : > { %6195 = vmatprep.subr.mxu0 %v6860_v32 }
0x2b62   : > { %v5076_v27 = vpop.f32.mrb[50].mxu0 }
0x2b63   : > { %v5083_v28 = vrot.slane %v5076_v27, %v7405_v5  ;;  %v6183_v29 = vpop.f32.mrb[51].mxu0 }
0x2b65   : > { %v5084_v30 = vsub.f32 %v4914_v45, %v5083_v28  ;;  %v5085_v31 = vsub.f32 %v4919_v7, %v5083_v28 }
0x2b67   : > { %v5086_v33 = vmul.f32 %v5084_v30, %v5084_v30  ;;  %v5087_v36 = vmul.f32 %v5085_v31, %v5085_v31 }
0x2b69   : > { %v5088_v37 = vsel %vm433_vm8, %v5086_v33, 0.0  ;;  %v5089_v18 = vsel %vm433_vm8, %v5087_v36, 0.0 }
0x2b6a   : > { %v5090_v38 = vadd.f32 %v5089_v18, %v5088_v37 }
0x2b6c   : > { %v5091_v19 = vrot.slane %v5090_v38, 4 }
0x2b6e   : > { %v5092_v22 = vadd.f32 %v5091_v19, %v5090_v38 }
0x2b70   : > { %v5093_v39 = vrot.slane %v5092_v22, 2 }
0x2b72   : > { %v5094_v42 = vadd.f32 %v5093_v39, %v5092_v22 }
0x2b74   : > { %v5095_v34 = vrot.slane %v5094_v42, 1 }
0x2b76   : > { %v5096_v40 = vadd.f32 %v5095_v34, %v5094_v42 }
0x2b78   : > { %6193 = vmatmul.mubr.msk.f32.vlgmr.msra.gmra.mrb[52].mxu0 %vm433_vm8, %v5096_v40 }
0x2b79   : > { %6196 = vmatpush3.msk.msra.mxu0 %vm1064_vm3, %v8421_v25  ;;  %6197 = vmatprep.mubr.msk.f32.mxu0 %vm6872_vm2, %v6860_v32 }
0x2c4b   : > { %v5166_v35 = vpop.f32.mrb[52].mxu0 }
0x2c4c   : > { %v5170_v41 = vmul.f32 0.0078125, %v5166_v35  ;;  %v6194_v48 = vpop.f32.mrb[53].mxu0 }
0x2c4e   : > { %6198 = vmatmul.mubr.msk.f32.vlgmr.msra.gmra.mrb[54].mxu0 %vm1060_vm4, %v5170_v41 }
0x2c4f   : > { %6776 = shalt.err (!%p6773_p3)
}
0x2c50   : > { %s6777_s16 = scalar_lea.hbm %s8583_s22, 256  ;;  %s6781_s18 = scalar_lea.hbm %s8688_s8, 512 }
0x2c51   : > { %p6778_p4 = scmp.ne.s32.totalorder %s8583_s22, %s6777_s16  ;;  %p6782_p9 = scmp.lt.u32.totalorder %s8583_s22, %s8688_s8 }
0x2c52   : > { %p6783_p10 = scmp.lt.u32.totalorder %s6781_s18, %s6777_s16  ;;  %p6785_p12 = scmp.lt.u32.totalorder %s6777_s16, %s8583_s22 }
0x2c53   : > { %p6779_p7 = pnand %p6778_p4, %p6965_p5 }
0x2c54   : > { %p6784_p11 = por %p6783_p10, %p6782_p9 }
0x2c55   : > { %p6780_p8 = pneg %p6779_p7 }
0x2c56   : > { %p6786_p13 = por %p6785_p12, %p6784_p11 }
0x2c58   : > { %p6787_p0 = pnand %p6786_p13, %p6780_p8 }
0x2c5a   : > { %6790 = shalt.err (!%p6787_p0)
}
0x2c5b   : > { %s6875_s29 = smov 128   ;;  %s8698_s25 = smov 8   ;;  %v5645_v51 = vld [vmem:[%s8684_s4 + $0x8] ss:$0 sm:$0xff] }
0x2c5c   : > { %6652 = dma.vmem_to_hbm [thread:$0]  (%p6965_p5), %s8575_s14, 256, %s8583_s22, %s5270_s28, %s6875_s29, %s6875_s29, %s8698_s25  }
0x2c5d   : > { %v5646_v44 = vld [vmem:[%s8685_s5 + $0x8] ss:$0 sm:$0xff]  ;;  %s8699_s14 = sshll.u32 %s7097_s26, 4  ;;  %s8632_s23 = scalar_lea.hbm %s8689_s9, %s5656_s0 }
0x2c5e   : > { %s336_s22 = scalar_lea.vmem [#allocation6], %s8699_s14  ;;  %s5275_s24 = scalar_lea.sflag [#allocation7], %s7097_s26 }
0x2c5f   : > { %s5304_s28 = sshll.u32 %s336_s22, 4  ;;  %s6876_s17 = smov [#allocation6]   ;;  %s8625_s28 = int_to_ptr.vmem [resolvable:$true] %s5304_s28 }
0x2c60   : > { %s6791_s16 = scalar_lea.vmem %s8625_s28, 256  ;;  %s6795_s21 = sshll.u32 %s6876_s17, 4  ;;  %s6796_s21 = int_to_ptr.vmem [resolvable:$false] %s6795_s21 }
0x2c61   : > { %p6792_p1 = scmp.ne.s32.totalorder %s8625_s28, %s6791_s16  ;;  %s6797_s14 = scalar_lea.vmem %s6796_s21, 512 }
0x2c62   : > { %p6798_p4 = scmp.lt.s32.totalorder %s8625_s28, %s6796_s21  ;;  %p6799_p7 = scmp.lt.s32.totalorder %s6797_s14, %s6791_s16 }
0x2c63   : > { %p6793_p2 = pnand %p6792_p1, %p6965_p5 }
0x2c64   : > { %p6800_p8 = por %p6799_p7, %p6798_p4 }
0x2c65   : > { %p6794_p3 = pneg %p6793_p2 }
0x2c67   : > { %p6801_p9 = pnand %p6800_p8, %p6794_p3 }
0x2d21   : > { %v5240_v32 = vpop.f32.mrb[54].mxu0 }
0x2d22   : > { %v5241_v25 = vadd.f32 1e-05, %v5240_v32  ;;  %v6199_v54 = vpop.f32.mrb[55].mxu0 }
0x2d24   : > { %6759 = vrsqrt.f32 %v5241_v25 }
0x2d2e   : > { %v6760_v55 = vpop.eup %6759 }
0x2d2f   : > { %v5248_v59 = vrot.slane %v6760_v55, %v7405_v5 }
0x2d31   : > { %v5249_v43 = vmul.f32 %v5248_v59, %v5084_v30  ;;  %v5250_v0 = vmul.f32 %v5248_v59, %v5085_v31 }
0x2d33   : > { %v5255_v49 = vmul.f32 %v5645_v51, %v5249_v43  ;;  %v5256_v56 = vmul.f32 %v5645_v51, %v5250_v0 }
0x2d35   : > { %v5261_v63 = vadd.f32 %v5646_v44, %v5255_v49  ;;  %v5262_v5 = vadd.f32 %v5646_v44, %v5256_v56 }
0x2d37   : > { %v5263_v1 = vadd.f32 %v5261_v63, %v4279_v50  ;;  %v5264_v3 = vadd.f32 %v5262_v5, %v4280_v53 }
0x2d39   : > { %v5265_v60 = vmax.f32 %v5263_v1, 0.0  ;;  %v5266_v62 = vmax.f32 %v5264_v3, 0.0 }
0x2d3b   : > { %5267 = vst.msk [vmem:[%s336_s22] sm:$0xff] %vm433_vm8, %v5265_v60  ;;  %5268 = vst.msk [vmem:[%s336_s22 + $0x8] sm:$0xff] %vm433_vm8, %v5266_v62 }
0x2d3c   : > { %6804 = shalt.err (!%p6801_p9)
}
0x2d3d   : > { %s6805_s13 = scalar_lea.hbm %s8632_s23, 256  ;;  %s6809_s18 = scalar_lea.hbm %s8689_s9, 512 }
0x2d3e   : > { %p6806_p10 = scmp.ne.s32.totalorder %s8632_s23, %s6805_s13  ;;  %p6810_p13 = scmp.lt.u32.totalorder %s8632_s23, %s8689_s9 }
0x2d3f   : > { %p6811_p0 = scmp.lt.u32.totalorder %s6809_s18, %s6805_s13  ;;  %p6813_p2 = scmp.lt.u32.totalorder %s6805_s13, %s8632_s23 }
0x2d40   : > { %p6807_p11 = pnand %p6806_p10, %p6965_p5 }
0x2d41   : > { %p6812_p1 = por %p6811_p0, %p6810_p13 }
0x2d42   : > { %p6808_p12 = pneg %p6807_p11 }
0x2d43   : > { %p6814_p3 = por %p6813_p2, %p6812_p1 }
0x2d45   : > { %p6815_p4 = pnand %p6814_p3, %p6808_p12 }
0x2d47   : > { %6818 = shalt.err (!%p6815_p4)
}
0x2d48   : > { %6653 = dma.vmem_to_hbm [thread:$0]  (%p6965_p5), %s8625_s28, 256, %s8632_s23, %s5275_s24, %s6875_s29, %s6875_s29, %s8698_s25  }
0x2d49 PF: > { %p6663_p7 = scmp.ge.s32.totalorder %s6857_s12, 2  ;;  %s5319_s16 = sand.u32 1, %s6845_s30  }
0x2d4a   : > { %s5320_s21 = scalar_lea.sflag [#allocation5], %s5319_s16 }
0x2d4b   : > { %p6657_p8 = pnand %p6663_p7, %p6969_p6 }
0x2d4d   : > { %6836 = dma.done.wait (!%p6657_p8), %s5320_s21, 256  }
0x2d4e   : > { %6838 = vsyncadd (!%p6657_p8), %s5320_s21, 4294967040  ;;  %s5329_s19 = scalar_lea.sflag [#allocation7], %s5319_s16 }
0x2d4f   : > { %6840 = dma.done.wait (!%p6657_p8), %s5329_s19, 256  }
0x2d50   : > { %6842 = vsyncadd (!%p6657_p8), %s5329_s19, 4294967040  ;;  %s8700_s26 = sld [smem:[#allocation10_spill]]  ;;  %p23_p5 = scmp.ge.s32.totalorder %s6952_s15, 4  }
0x2d51   : > { %s8701_s30 = smov %s6849_s10  ;;  %s8702_s10 = smov %s6853_s11 }
0x2d52   : > { %s8704_s12 = smov %s6952_s15  ;;  %25 = sbr.rel (!%p23_p5) target bundleno = 7 (0x7), region = 111 }
0x2d56   : > { %s8703_s11 = smov %s8700_s26 }
0x2d59   :  { %5334 = vsyncpa [#allocation5], 1 }
0x2d5a   :  { %5336 = vsyncpa [#allocation5 + $0x1], 1 }
0x2d5b   :  { %5337 = vsyncpa [#allocation7], 1 }
0x2d5c   :  { %5339 = vsyncpa [#allocation7 + $0x1], 1 }

</bundles_post_ra>
